<compile_context>
chip_gen: v6e
topology: v6e:2x2x1
jax: 0.10.0
libtpu: 0.0.40
codegen_flags: <defaults>
</compile_context>

<pallas_src>
import functools

import jax
import jax.numpy as jnp
import numpy as np
from jax.experimental import pallas as pl
from jax.experimental.pallas import tpu as pltpu

_VMEM_LIMIT_BYTES = 32 * 1024 * 1024  # explicit (raises v5e's 16 MiB default)


def _round_up(x, m):
    return (x + m - 1) // m * m


# --------------------------------------------------------------------------
# Kernel 1: fused im2col matmul + bias + per-block partial BN statistics
# --------------------------------------------------------------------------
def _conv_stats_kernel(p_ref, w_ref, b_ref, y_ref, s_ref, sq_ref, *, m_total, tm):
    i = pl.program_id(0)

    # One big MXU matmul instead of 9 tiny per-tap matmuls.
    acc = jnp.dot(p_ref[...], w_ref[...], preferred_element_type=jnp.float32)
    acc = acc + b_ref[...]                      # (tm, Cp) f32
    y_ref[...] = acc

    # Partial BatchNorm statistics for this block only (written to a distinct
    # output row-block per grid step -> safe under "parallel" semantics).
    # Mask out rows that are padding beyond the true M = N*H*W.
    row = i * tm + jax.lax.broadcasted_iota(jnp.int32, (tm, 1), 0)
    valid = (row < m_total).astype(jnp.float32)
    av = acc * valid
    s_blk = jnp.sum(av, axis=0, keepdims=True)        # (1, Cp)
    sq_blk = jnp.sum(av * acc, axis=0, keepdims=True)  # (1, Cp)  (= sum of acc^2 on valid rows)

    # Store into an (8, Cp)-aligned block: row 0 holds the sums, rows 1..7 are 0.
    rid = jax.lax.broadcasted_iota(jnp.int32, s_ref.shape, 0)
    s_ref[...] = jnp.where(rid == 0, s_blk, 0.0)
    sq_ref[...] = jnp.where(rid == 0, sq_blk, 0.0)


# --------------------------------------------------------------------------
# Kernel 2: fused BatchNorm affine + ReLU (lane-dense, in-place via aliasing)
# --------------------------------------------------------------------------
def _bn_relu_kernel(y_ref, scale_ref, shift_ref, o_ref):
    o_ref[...] = jnp.maximum(y_ref[...] * scale_ref[...] + shift_ref[...], 0.0)


# --------------------------------------------------------------------------
# REBNCONV = Conv2d(3x3, dilation=d, padding=d) -> BatchNorm2d (batch stats) -> ReLU
# --------------------------------------------------------------------------
def rebnconv_pallas(x_nhwc, p, *, dirate=1, eps=1e-5):
    N, H, W, Cin = x_nhwc.shape
    Cout = p["w"].shape[0]
    d = int(dirate)

    M = N * H * W
    K = 9 * Cin
    Kp = _round_up(K, 128)          # lane-dense K
    Cp = _round_up(Cout, 128)       # lane-dense output channels
    tm = min(512, _round_up(M, 8))  # big sublane blocks (~roofline on v6e)
    Mp = _round_up(M, tm)
    G = Mp // tm

    # ---- XLA glue: im2col (9 shifted NHWC slices on the channel axis) ----
    xp = jnp.pad(x_nhwc, ((0, 0), (d, d), (d, d), (0, 0)))
    cols = [xp[:, ky * d:ky * d + H, kx * d:kx * d + W, :]
            for ky in range(3) for kx in range(3)]
    patches = jnp.concatenate(cols, axis=-1).reshape(M, K)
    patches = jnp.pad(patches, ((0, Mp - M), (0, Kp - K))).astype(jnp.bfloat16)

    # OIHW -> (ky, kx, cin, cout) -> (9*Cin, Cout), zero-padded to (Kp, Cp).
    w_mat = jnp.transpose(p["w"], (2, 3, 1, 0)).reshape(K, Cout)
    w_mat = jnp.pad(w_mat, ((0, Kp - K), (0, Cp - Cout))).astype(jnp.bfloat16)
    b_row = jnp.pad(p["b"], (0, Cp - Cout)).reshape(1, Cp).astype(jnp.float32)

    kern = functools.partial(_conv_stats_kernel, m_total=M, tm=tm)
    y, psum, psq = pl.pallas_call(
        kern,
        out_shape=(
            jax.ShapeDtypeStruct((Mp, Cp), jnp.float32),
            jax.ShapeDtypeStruct((G * 8, Cp), jnp.float32),
            jax.ShapeDtypeStruct((G * 8, Cp), jnp.float32),
        ),
        grid_spec=pltpu.PrefetchScalarGridSpec(
            num_scalar_prefetch=0,
            grid=(G,),
            in_specs=[
                pl.BlockSpec((tm, Kp), lambda i: (i, 0)),
                pl.BlockSpec((Kp, Cp), lambda i: (0, 0)),
                pl.BlockSpec((1, Cp), lambda i: (0, 0)),
            ],
            out_specs=[
                pl.BlockSpec((tm, Cp), lambda i: (i, 0)),
                pl.BlockSpec((8, Cp), lambda i: (i, 0)),
                pl.BlockSpec((8, Cp), lambda i: (i, 0)),
            ],
        ),
        compiler_params=pltpu.CompilerParams(
            dimension_semantics=("parallel",),
            vmem_limit_bytes=_VMEM_LIMIT_BYTES,
        ),
    )(patches, w_mat, b_row)

    # ---- tiny scalar glue: partial sums -> BN train-mode scale / shift ----
    count = float(M)
    mean = jnp.sum(psum, axis=0) / count
    # TODO(synk): single-pass E[x^2]-E[x]^2 can cancel if |mean| >> std; f32
    # accumulation + clamp is adequate at these scales (a two-pass stats kernel
    # would cost an extra full read of y).
    var = jnp.maximum(jnp.sum(psq, axis=0) / count - mean * mean, 0.0)
    gamma = jnp.pad(p["gamma"], (0, Cp - Cout)).astype(jnp.float32)
    beta = jnp.pad(p["beta"], (0, Cp - Cout)).astype(jnp.float32)
    scale_v = gamma / jnp.sqrt(var + eps)
    shift_v = beta - mean * scale_v
    scale = scale_v.reshape(1, Cp)
    shift = shift_v.reshape(1, Cp)

    # ---- kernel 2: BN affine + ReLU, in place over y ----
    out2d = pl.pallas_call(
        _bn_relu_kernel,
        out_shape=jax.ShapeDtypeStruct((Mp, Cp), jnp.float32),
        grid_spec=pltpu.PrefetchScalarGridSpec(
            num_scalar_prefetch=0,
            grid=(G,),
            in_specs=[
                pl.BlockSpec((tm, Cp), lambda i: (i, 0)),
                pl.BlockSpec((1, Cp), lambda i: (0, 0)),
                pl.BlockSpec((1, Cp), lambda i: (0, 0)),
            ],
            out_specs=pl.BlockSpec((tm, Cp), lambda i: (i, 0)),
        ),
        compiler_params=pltpu.CompilerParams(
            dimension_semantics=("parallel",),
            vmem_limit_bytes=_VMEM_LIMIT_BYTES,
        ),
        input_output_aliases={0: 0},
    )(y, scale, shift)

    return out2d[:M, :Cout].reshape(N, H, W, Cout)


# --------------------------------------------------------------------------
# Pure-JAX reference REBNCONV (same bf16-operand / f32-accumulate policy)
# --------------------------------------------------------------------------
def rebnconv_reference(x_nhwc, p, *, dirate=1, eps=1e-5):
    d = int(dirate)
    Cout = p["w"].shape[0]
    w_hwio = jnp.transpose(p["w"], (2, 3, 1, 0))
    conv = jax.lax.conv_general_dilated(
        x_nhwc.astype(jnp.bfloat16), w_hwio.astype(jnp.bfloat16),
        window_strides=(1, 1),
        padding=((d, d), (d, d)),
        rhs_dilation=(d, d),
        dimension_numbers=("NHWC", "HWIO", "NHWC"),
        preferred_element_type=jnp.float32,
    ) + p["b"].reshape(1, 1, 1, Cout)
    mean = conv.mean(axis=(0, 1, 2), keepdims=True)
    var = ((conv - mean) ** 2).mean(axis=(0, 1, 2), keepdims=True)
    y = (conv - mean) / jnp.sqrt(var + eps) * p["gamma"].reshape(1, 1, 1, Cout) \
        + p["beta"].reshape(1, 1, 1, Cout)
    return jnp.maximum(y, 0.0)


# --------------------------------------------------------------------------
# XLA glue: MaxPool2d(2, stride=2, ceil_mode=True) and bilinear upsample
# (align_corners=True), concat, residual add. (Pure data movement / tiny ops.)
# --------------------------------------------------------------------------
def _maxpool2x2_ceil(x):  # NHWC
    _, H, W, _ = x.shape
    ph, pw = (-H) % 2, (-W) % 2
    init = jnp.array(-jnp.inf, dtype=x.dtype)
    return jax.lax.reduce_window(
        x, init, jax.lax.max,
        window_dimensions=(1, 2, 2, 1), window_strides=(1, 2, 2, 1),
        padding=((0, 0), (0, ph), (0, pw), (0, 0)))


def _upsample_like(src, tar):  # NHWC, bilinear, align_corners=True
    N, H, W, C = src.shape
    th, tw = tar.shape[1], tar.shape[2]
    if (H, W) == (th, tw):
        return src

    def grid(out, inp):
        if out == 1:
            return jnp.zeros((1,), jnp.float32)
        return jnp.arange(out, dtype=jnp.float32) * ((inp - 1) / (out - 1))

    ys, xs = grid(th, H), grid(tw, W)
    y0 = jnp.floor(ys).astype(jnp.int32)
    x0 = jnp.floor(xs).astype(jnp.int32)
    y1 = jnp.minimum(y0 + 1, H - 1)
    x1 = jnp.minimum(x0 + 1, W - 1)
    wy = (ys - y0.astype(jnp.float32)).reshape(1, th, 1, 1)
    wx = (xs - x0.astype(jnp.float32)).reshape(1, 1, tw, 1)
    r0 = jnp.take(src, y0, axis=1)
    r1 = jnp.take(src, y1, axis=1)
    a = jnp.take(r0, x0, axis=2)
    b = jnp.take(r0, x1, axis=2)
    c = jnp.take(r1, x0, axis=2)
    e = jnp.take(r1, x1, axis=2)
    top = a * (1 - wx) + b * wx
    bot = c * (1 - wx) + e * wx
    return top * (1 - wy) + bot * wy


# --------------------------------------------------------------------------
# RSU7 forward (NHWC internally; NCHW <-> NHWC only at the module boundary)
# --------------------------------------------------------------------------
def rsu7_forward(x_nchw, params, rebnconv):
    hx = jnp.transpose(x_nchw, (0, 2, 3, 1)).astype(jnp.float32)

    hxin = rebnconv(hx, params["in"], dirate=1)
    hx1 = rebnconv(hxin, params["1"], dirate=1)
    hx2 = rebnconv(_maxpool2x2_ceil(hx1), params["2"], dirate=1)
    hx3 = rebnconv(_maxpool2x2_ceil(hx2), params["3"], dirate=1)
    hx4 = rebnconv(_maxpool2x2_ceil(hx3), params["4"], dirate=1)
    hx5 = rebnconv(_maxpool2x2_ceil(hx4), params["5"], dirate=1)
    hx6 = rebnconv(_maxpool2x2_ceil(hx5), params["6"], dirate=1)
    hx7 = rebnconv(hx6, params["7"], dirate=2)

    hx6d = rebnconv(jnp.concatenate([hx7, hx6], axis=-1), params["6d"], dirate=1)
    hx5d = rebnconv(jnp.concatenate([_upsample_like(hx6d, hx5), hx5], axis=-1),
                    params["5d"], dirate=1)
    hx4d = rebnconv(jnp.concatenate([_upsample_like(hx5d, hx4), hx4], axis=-1),
                    params["4d"], dirate=1)
    hx3d = rebnconv(jnp.concatenate([_upsample_like(hx4d, hx3), hx3], axis=-1),
                    params["3d"], dirate=1)
    hx2d = rebnconv(jnp.concatenate([_upsample_like(hx3d, hx2), hx2], axis=-1),
                    params["2d"], dirate=1)
    hx1d = rebnconv(jnp.concatenate([_upsample_like(hx2d, hx1), hx1], axis=-1),
                    params["1d"], dirate=1)

    return jnp.transpose(hx1d + hxin, (0, 3, 1, 2))


def _make_params(key, in_ch, out_ch):
    kw, kb, kg, kbe = jax.random.split(key, 4)
    return {
        "w": jax.random.normal(kw, (out_ch, in_ch, 3, 3), jnp.float32) / np.sqrt(9.0 * in_ch),
        "b": 0.1 * jax.random.normal(kb, (out_ch,), jnp.float32),
        "gamma": 1.0 + 0.1 * jax.random.normal(kg, (out_ch,), jnp.float32),
        "beta": 0.1 * jax.random.normal(kbe, (out_ch,), jnp.float32),
    }


if __name__ == "__main__":
    key = jax.random.PRNGKey(0)
    in_ch, mid_ch, out_ch = 3, 12, 3       # RSU7 defaults
    N, H, W = 2, 16, 16

    keys = jax.random.split(key, 15)
    x = jax.random.normal(keys[0], (N, in_ch, H, W), jnp.float32)

    layer_io = {
        "in": (in_ch, out_ch), "1": (out_ch, mid_ch),
        "2": (mid_ch, mid_ch), "3": (mid_ch, mid_ch), "4": (mid_ch, mid_ch),
        "5": (mid_ch, mid_ch), "6": (mid_ch, mid_ch), "7": (mid_ch, mid_ch),
        "6d": (2 * mid_ch, mid_ch), "5d": (2 * mid_ch, mid_ch),
        "4d": (2 * mid_ch, mid_ch), "3d": (2 * mid_ch, mid_ch),
        "2d": (2 * mid_ch, mid_ch), "1d": (2 * mid_ch, out_ch),
    }
    params = {name: _make_params(k, ci, co)
              for (name, (ci, co)), k in zip(layer_io.items(), keys[1:])}

    rsu7_pallas = jax.jit(functools.partial(rsu7_forward, rebnconv=rebnconv_pallas))
    rsu7_ref = jax.jit(functools.partial(rsu7_forward, rebnconv=rebnconv_reference))

    out = jax.block_until_ready(rsu7_pallas(x, params))
    ref = jax.block_until_ready(rsu7_ref(x, params))

    np.testing.assert_allclose(np.asarray(out), np.asarray(ref), atol=2e-3, rtol=2e-3)
    print("KERNEL_OK")
</pallas_src>

<mosaic_0001>
module attributes {stable_mosaic.version = 11 : i64} {
  func.func @_conv_stats_kernel(%arg0: i32, %arg1: memref<512x128xbf16, #tpu.memory_space<vmem>>, %arg2: memref<128x128xbf16, #tpu.memory_space<vmem>>, %arg3: memref<1x128xf32, #tpu.memory_space<vmem>>, %arg4: memref<512x128xf32, #tpu.memory_space<vmem>>, %arg5: memref<8x128xf32, #tpu.memory_space<vmem>>, %arg6: memref<8x128xf32, #tpu.memory_space<vmem>>) attributes {dimension_semantics = [#tpu.dimension_semantics<parallel>], iteration_bounds = array<i64: 1>, scalar_prefetch = 0 : i64, scratch_operands = 0 : i64, tpu.core_type = #tpu.core_type<tc>, window_params = [{transform_indices = @transform_0, window_bounds = array<i64: 512, 128>}, {pipeline_mode = #tpu.pipeline_mode<synchronous>, transform_indices = @transform_1, window_bounds = array<i64: 128, 128>}, {pipeline_mode = #tpu.pipeline_mode<synchronous>, transform_indices = @transform_2, window_bounds = array<i64: 1, 128>}, {transform_indices = @transform_3, window_bounds = array<i64: 512, 128>}, {transform_indices = @transform_4, window_bounds = array<i64: 8, 128>}, {transform_indices = @transform_5, window_bounds = array<i64: 8, 128>}]} {
    %c0 = arith.constant 0 : index
    %c0_0 = arith.constant 0 : index
    %0 = vector.load %arg1[%c0, %c0_0] : memref<512x128xbf16, #tpu.memory_space<vmem>>, vector<512x128xbf16>
    %c0_1 = arith.constant 0 : index
    %c0_2 = arith.constant 0 : index
    %1 = vector.load %arg2[%c0_1, %c0_2] : memref<128x128xbf16, #tpu.memory_space<vmem>>, vector<128x128xbf16>
    %cst = arith.constant dense<0.000000e+00> : vector<512x128xf32>
    %2 = tpu.matmul %0, %1, %cst {dimension_numbers = #tpu.dot_dimension_numbers<[1], [0], [0], [1], [0, 0, 1, 1], [], []>} : vector<512x128xbf16>, vector<128x128xbf16>, vector<512x128xf32> -> vector<512x128xf32>
    %c0_3 = arith.constant 0 : index
    %c0_4 = arith.constant 0 : index
    %3 = vector.load %arg3[%c0_3, %c0_4] : memref<1x128xf32, #tpu.memory_space<vmem>>, vector<1x128xf32>
    %4 = vector.broadcast %3 : vector<1x128xf32> to vector<512x128xf32>
    %5 = arith.addf %2, %4 : vector<512x128xf32>
    %c0_5 = arith.constant 0 : index
    %c0_6 = arith.constant 0 : index
    %6 = vector.load %arg4[%c0_5, %c0_6] : memref<512x128xf32, #tpu.memory_space<vmem>>, vector<512x128xf32>
    tpu.vector_store %arg4[%c0_5, %c0_6], %5 {strides = array<i32>} : memref<512x128xf32, #tpu.memory_space<vmem>>, vector<512x128xf32>,
    %c512_i32 = arith.constant 512 : i32
    %7 = arith.muli %arg0, %c512_i32 : i32
    %8 = tpu.iota {dimensions = array<i32: 0>} : vector<512x1xi32>
    %9 = vector.broadcast %7 : i32 to vector<512x1xi32>
    %10 = arith.addi %9, %8 : vector<512x1xi32>
    %c512_i32_7 = arith.constant 512 : i32
    %11 = vector.broadcast %c512_i32_7 : i32 to vector<512x1xi32>
    %12 = arith.cmpi slt, %10, %11 : vector<512x1xi32>
    %13 = arith.extui %12 : vector<512x1xi1> to vector<512x1xi32>
    %14 = arith.sitofp %13 : vector<512x1xi32> to vector<512x1xf32>
    %15 = vector.broadcast %14 : vector<512x1xf32> to vector<512x128xf32>
    %16 = arith.mulf %5, %15 : vector<512x128xf32>
    %cst_8 = arith.constant dense<0.000000e+00> : vector<128xf32>
    %17 = vector.multi_reduction <add>, %16, %cst_8 [0] : vector<512x128xf32> to vector<128xf32>
    %18 = vector.shape_cast %17 : vector<128xf32> to vector<1x128xf32>
    %19 = arith.mulf %16, %5 : vector<512x128xf32>
    %cst_9 = arith.constant dense<0.000000e+00> : vector<128xf32>
    %20 = vector.multi_reduction <add>, %19, %cst_9 [0] : vector<512x128xf32> to vector<128xf32>
    %21 = vector.shape_cast %20 : vector<128xf32> to vector<1x128xf32>
    %22 = tpu.iota {dimensions = array<i32: 0>} : vector<8x128xi32>
    %c0_i32 = arith.constant 0 : i32
    %23 = vector.broadcast %c0_i32 : i32 to vector<8x128xi32>
    %24 = arith.cmpi eq, %22, %23 : vector<8x128xi32>
    %cst_10 = arith.constant 0.000000e+00 : f32
    %25 = vector.shape_cast %18 : vector<1x128xf32> to vector<1x128xf32>
    %26 = vector.broadcast %25 : vector<1x128xf32> to vector<8x128xf32>
    %27 = vector.broadcast %cst_10 : f32 to vector<8x128xf32>
    %28 = arith.select %24, %26, %27 : vector<8x128xi1>, vector<8x128xf32>
    %c0_11 = arith.constant 0 : index
    %c0_12 = arith.constant 0 : index
    %29 = vector.load %arg5[%c0_11, %c0_12] : memref<8x128xf32, #tpu.memory_space<vmem>>, vector<8x128xf32>
    tpu.vector_store %arg5[%c0_11, %c0_12], %28 {strides = array<i32>} : memref<8x128xf32, #tpu.memory_space<vmem>>, vector<8x128xf32>,
    %c0_i32_13 = arith.constant 0 : i32
    %30 = vector.broadcast %c0_i32_13 : i32 to vector<8x128xi32>
    %31 = arith.cmpi eq, %22, %30 : vector<8x128xi32>
    %cst_14 = arith.constant 0.000000e+00 : f32
    %32 = vector.shape_cast %21 : vector<1x128xf32> to vector<1x128xf32>
    %33 = vector.broadcast %32 : vector<1x128xf32> to vector<8x128xf32>
    %34 = vector.broadcast %cst_14 : f32 to vector<8x128xf32>
    %35 = arith.select %31, %33, %34 : vector<8x128xi1>, vector<8x128xf32>
    %c0_15 = arith.constant 0 : index
    %c0_16 = arith.constant 0 : index
    %36 = vector.load %arg6[%c0_15, %c0_16] : memref<8x128xf32, #tpu.memory_space<vmem>>, vector<8x128xf32>
    tpu.vector_store %arg6[%c0_15, %c0_16], %35 {strides = array<i32>} : memref<8x128xf32, #tpu.memory_space<vmem>>, vector<8x128xf32>,
    return
  }
  func.func @transform_0(%arg0: i32) -> (i32, i32) {
    %c0_i32 = arith.constant 0 : i32
    %c0_i32_0 = arith.constant 0 : i32
    return %arg0, %c0_i32 : i32, i32
  }
  func.func @transform_1(%arg0: i32) -> (i32, i32) {
    %c0_i32 = arith.constant 0 : i32
    %c0_i32_0 = arith.constant 0 : i32
    %c0_i32_1 = arith.constant 0 : i32
    return %c0_i32, %c0_i32_0 : i32, i32
  }
  func.func @transform_2(%arg0: i32) -> (i32, i32) {
    %c0_i32 = arith.constant 0 : i32
    %c0_i32_0 = arith.constant 0 : i32
    %c0_i32_1 = arith.constant 0 : i32
    return %c0_i32, %c0_i32_0 : i32, i32
  }
  func.func @transform_3(%arg0: i32) -> (i32, i32) {
    %c0_i32 = arith.constant 0 : i32
    %c0_i32_0 = arith.constant 0 : i32
    return %arg0, %c0_i32 : i32, i32
  }
  func.func @transform_4(%arg0: i32) -> (i32, i32) {
    %c0_i32 = arith.constant 0 : i32
    %c0_i32_0 = arith.constant 0 : i32
    return %arg0, %c0_i32 : i32, i32
  }
  func.func @transform_5(%arg0: i32) -> (i32, i32) {
    %c0_i32 = arith.constant 0 : i32
    %c0_i32_0 = arith.constant 0 : i32
    return %arg0, %c0_i32 : i32, i32
  }
}

module attributes {stable_mosaic.version = 11 : i64} {
  func.func @_bn_relu_kernel(%arg0: i32, %arg1: memref<512x128xf32, #tpu.memory_space<vmem>>, %arg2: memref<1x128xf32, #tpu.memory_space<vmem>>, %arg3: memref<1x128xf32, #tpu.memory_space<vmem>>, %arg4: memref<512x128xf32, #tpu.memory_space<vmem>>) attributes {dimension_semantics = [#tpu.dimension_semantics<parallel>], iteration_bounds = array<i64: 1>, scalar_prefetch = 0 : i64, scratch_operands = 0 : i64, tpu.core_type = #tpu.core_type<tc>, window_params = [{transform_indices = @transform_0, window_bounds = array<i64: 512, 128>}, {pipeline_mode = #tpu.pipeline_mode<synchronous>, transform_indices = @transform_1, window_bounds = array<i64: 1, 128>}, {pipeline_mode = #tpu.pipeline_mode<synchronous>, transform_indices = @transform_2, window_bounds = array<i64: 1, 128>}, {transform_indices = @transform_3, window_bounds = array<i64: 512, 128>}]} {
    %c0 = arith.constant 0 : index
    %c0_0 = arith.constant 0 : index
    %0 = vector.load %arg1[%c0, %c0_0] : memref<512x128xf32, #tpu.memory_space<vmem>>, vector<512x128xf32>
    %c0_1 = arith.constant 0 : index
    %c0_2 = arith.constant 0 : index
    %1 = vector.load %arg2[%c0_1, %c0_2] : memref<1x128xf32, #tpu.memory_space<vmem>>, vector<1x128xf32>
    %2 = vector.broadcast %1 : vector<1x128xf32> to vector<512x128xf32>
    %3 = arith.mulf %0, %2 : vector<512x128xf32>
    %c0_3 = arith.constant 0 : index
    %c0_4 = arith.constant 0 : index
    %4 = vector.load %arg3[%c0_3, %c0_4] : memref<1x128xf32, #tpu.memory_space<vmem>>, vector<1x128xf32>
    %5 = vector.broadcast %4 : vector<1x128xf32> to vector<512x128xf32>
    %6 = arith.addf %3, %5 : vector<512x128xf32>
    %cst = arith.constant 0.000000e+00 : f32
    %7 = vector.broadcast %cst : f32 to vector<512x128xf32>
    %8 = arith.maximumf %6, %7 : vector<512x128xf32>
    %c0_5 = arith.constant 0 : index
    %c0_6 = arith.constant 0 : index
    %9 = vector.load %arg4[%c0_5, %c0_6] : memref<512x128xf32, #tpu.memory_space<vmem>>, vector<512x128xf32>
    tpu.vector_store %arg4[%c0_5, %c0_6], %8 {strides = array<i32>} : memref<512x128xf32, #tpu.memory_space<vmem>>, vector<512x128xf32>,
    return
  }
  func.func @transform_0(%arg0: i32) -> (i32, i32) {
    %c0_i32 = arith.constant 0 : i32
    %c0_i32_0 = arith.constant 0 : i32
    return %arg0, %c0_i32 : i32, i32
  }
  func.func @transform_1(%arg0: i32) -> (i32, i32) {
    %c0_i32 = arith.constant 0 : i32
    %c0_i32_0 = arith.constant 0 : i32
    %c0_i32_1 = arith.constant 0 : i32
    return %c0_i32, %c0_i32_0 : i32, i32
  }
  func.func @transform_2(%arg0: i32) -> (i32, i32) {
    %c0_i32 = arith.constant 0 : i32
    %c0_i32_0 = arith.constant 0 : i32
    %c0_i32_1 = arith.constant 0 : i32
    return %c0_i32, %c0_i32_0 : i32, i32
  }
  func.func @transform_3(%arg0: i32) -> (i32, i32) {
    %c0_i32 = arith.constant 0 : i32
    %c0_i32_0 = arith.constant 0 : i32
    return %arg0, %c0_i32 : i32, i32
  }
}

module attributes {stable_mosaic.version = 11 : i64} {
  func.func @_conv_stats_kernel(%arg0: i32, %arg1: memref<128x128xbf16, #tpu.memory_space<vmem>>, %arg2: memref<128x128xbf16, #tpu.memory_space<vmem>>, %arg3: memref<1x128xf32, #tpu.memory_space<vmem>>, %arg4: memref<128x128xf32, #tpu.memory_space<vmem>>, %arg5: memref<8x128xf32, #tpu.memory_space<vmem>>, %arg6: memref<8x128xf32, #tpu.memory_space<vmem>>) attributes {dimension_semantics = [#tpu.dimension_semantics<parallel>], iteration_bounds = array<i64: 1>, scalar_prefetch = 0 : i64, scratch_operands = 0 : i64, tpu.core_type = #tpu.core_type<tc>, window_params = [{transform_indices = @transform_0, window_bounds = array<i64: 128, 128>}, {pipeline_mode = #tpu.pipeline_mode<synchronous>, transform_indices = @transform_1, window_bounds = array<i64: 128, 128>}, {pipeline_mode = #tpu.pipeline_mode<synchronous>, transform_indices = @transform_2, window_bounds = array<i64: 1, 128>}, {transform_indices = @transform_3, window_bounds = array<i64: 128, 128>}, {transform_indices = @transform_4, window_bounds = array<i64: 8, 128>}, {transform_indices = @transform_5, window_bounds = array<i64: 8, 128>}]} {
    %c0 = arith.constant 0 : index
    %c0_0 = arith.constant 0 : index
    %0 = vector.load %arg1[%c0, %c0_0] : memref<128x128xbf16, #tpu.memory_space<vmem>>, vector<128x128xbf16>
    %c0_1 = arith.constant 0 : index
    %c0_2 = arith.constant 0 : index
    %1 = vector.load %arg2[%c0_1, %c0_2] : memref<128x128xbf16, #tpu.memory_space<vmem>>, vector<128x128xbf16>
    %cst = arith.constant dense<0.000000e+00> : vector<128x128xf32>
    %2 = tpu.matmul %0, %1, %cst {dimension_numbers = #tpu.dot_dimension_numbers<[1], [0], [0], [1], [0, 0, 1, 1], [], []>} : vector<128x128xbf16>, vector<128x128xbf16>, vector<128x128xf32> -> vector<128x128xf32>
    %c0_3 = arith.constant 0 : index
    %c0_4 = arith.constant 0 : index
    %3 = vector.load %arg3[%c0_3, %c0_4] : memref<1x128xf32, #tpu.memory_space<vmem>>, vector<1x128xf32>
    %4 = vector.broadcast %3 : vector<1x128xf32> to vector<128x128xf32>
    %5 = arith.addf %2, %4 : vector<128x128xf32>
    %c0_5 = arith.constant 0 : index
    %c0_6 = arith.constant 0 : index
    %6 = vector.load %arg4[%c0_5, %c0_6] : memref<128x128xf32, #tpu.memory_space<vmem>>, vector<128x128xf32>
    tpu.vector_store %arg4[%c0_5, %c0_6], %5 {strides = array<i32>} : memref<128x128xf32, #tpu.memory_space<vmem>>, vector<128x128xf32>,
    %c128_i32 = arith.constant 128 : i32
    %7 = arith.muli %arg0, %c128_i32 : i32
    %8 = tpu.iota {dimensions = array<i32: 0>} : vector<128x1xi32>
    %9 = vector.broadcast %7 : i32 to vector<128x1xi32>
    %10 = arith.addi %9, %8 : vector<128x1xi32>
    %c128_i32_7 = arith.constant 128 : i32
    %11 = vector.broadcast %c128_i32_7 : i32 to vector<128x1xi32>
    %12 = arith.cmpi slt, %10, %11 : vector<128x1xi32>
    %13 = arith.extui %12 : vector<128x1xi1> to vector<128x1xi32>
    %14 = arith.sitofp %13 : vector<128x1xi32> to vector<128x1xf32>
    %15 = vector.broadcast %14 : vector<128x1xf32> to vector<128x128xf32>
    %16 = arith.mulf %5, %15 : vector<128x128xf32>
    %cst_8 = arith.constant dense<0.000000e+00> : vector<128xf32>
    %17 = vector.multi_reduction <add>, %16, %cst_8 [0] : vector<128x128xf32> to vector<128xf32>
    %18 = vector.shape_cast %17 : vector<128xf32> to vector<1x128xf32>
    %19 = arith.mulf %16, %5 : vector<128x128xf32>
    %cst_9 = arith.constant dense<0.000000e+00> : vector<128xf32>
    %20 = vector.multi_reduction <add>, %19, %cst_9 [0] : vector<128x128xf32> to vector<128xf32>
    %21 = vector.shape_cast %20 : vector<128xf32> to vector<1x128xf32>
    %22 = tpu.iota {dimensions = array<i32: 0>} : vector<8x128xi32>
    %c0_i32 = arith.constant 0 : i32
    %23 = vector.broadcast %c0_i32 : i32 to vector<8x128xi32>
    %24 = arith.cmpi eq, %22, %23 : vector<8x128xi32>
    %cst_10 = arith.constant 0.000000e+00 : f32
    %25 = vector.shape_cast %18 : vector<1x128xf32> to vector<1x128xf32>
    %26 = vector.broadcast %25 : vector<1x128xf32> to vector<8x128xf32>
    %27 = vector.broadcast %cst_10 : f32 to vector<8x128xf32>
    %28 = arith.select %24, %26, %27 : vector<8x128xi1>, vector<8x128xf32>
    %c0_11 = arith.constant 0 : index
    %c0_12 = arith.constant 0 : index
    %29 = vector.load %arg5[%c0_11, %c0_12] : memref<8x128xf32, #tpu.memory_space<vmem>>, vector<8x128xf32>
    tpu.vector_store %arg5[%c0_11, %c0_12], %28 {strides = array<i32>} : memref<8x128xf32, #tpu.memory_space<vmem>>, vector<8x128xf32>,
    %c0_i32_13 = arith.constant 0 : i32
    %30 = vector.broadcast %c0_i32_13 : i32 to vector<8x128xi32>
    %31 = arith.cmpi eq, %22, %30 : vector<8x128xi32>
    %cst_14 = arith.constant 0.000000e+00 : f32
    %32 = vector.shape_cast %21 : vector<1x128xf32> to vector<1x128xf32>
    %33 = vector.broadcast %32 : vector<1x128xf32> to vector<8x128xf32>
    %34 = vector.broadcast %cst_14 : f32 to vector<8x128xf32>
    %35 = arith.select %31, %33, %34 : vector<8x128xi1>, vector<8x128xf32>
    %c0_15 = arith.constant 0 : index
    %c0_16 = arith.constant 0 : index
    %36 = vector.load %arg6[%c0_15, %c0_16] : memref<8x128xf32, #tpu.memory_space<vmem>>, vector<8x128xf32>
    tpu.vector_store %arg6[%c0_15, %c0_16], %35 {strides = array<i32>} : memref<8x128xf32, #tpu.memory_space<vmem>>, vector<8x128xf32>,
    return
  }
  func.func @transform_0(%arg0: i32) -> (i32, i32) {
    %c0_i32 = arith.constant 0 : i32
    %c0_i32_0 = arith.constant 0 : i32
    return %arg0, %c0_i32 : i32, i32
  }
  func.func @transform_1(%arg0: i32) -> (i32, i32) {
    %c0_i32 = arith.constant 0 : i32
    %c0_i32_0 = arith.constant 0 : i32
    %c0_i32_1 = arith.constant 0 : i32
    return %c0_i32, %c0_i32_0 : i32, i32
  }
  func.func @transform_2(%arg0: i32) -> (i32, i32) {
    %c0_i32 = arith.constant 0 : i32
    %c0_i32_0 = arith.constant 0 : i32
    %c0_i32_1 = arith.constant 0 : i32
    return %c0_i32, %c0_i32_0 : i32, i32
  }
  func.func @transform_3(%arg0: i32) -> (i32, i32) {
    %c0_i32 = arith.constant 0 : i32
    %c0_i32_0 = arith.constant 0 : i32
    return %arg0, %c0_i32 : i32, i32
  }
  func.func @transform_4(%arg0: i32) -> (i32, i32) {
    %c0_i32 = arith.constant 0 : i32
    %c0_i32_0 = arith.constant 0 : i32
    return %arg0, %c0_i32 : i32, i32
  }
  func.func @transform_5(%arg0: i32) -> (i32, i32) {
    %c0_i32 = arith.constant 0 : i32
    %c0_i32_0 = arith.constant 0 : i32
    return %arg0, %c0_i32 : i32, i32
  }
}

module attributes {stable_mosaic.version = 11 : i64} {
  func.func @_bn_relu_kernel(%arg0: i32, %arg1: memref<128x128xf32, #tpu.memory_space<vmem>>, %arg2: memref<1x128xf32, #tpu.memory_space<vmem>>, %arg3: memref<1x128xf32, #tpu.memory_space<vmem>>, %arg4: memref<128x128xf32, #tpu.memory_space<vmem>>) attributes {dimension_semantics = [#tpu.dimension_semantics<parallel>], iteration_bounds = array<i64: 1>, scalar_prefetch = 0 : i64, scratch_operands = 0 : i64, tpu.core_type = #tpu.core_type<tc>, window_params = [{transform_indices = @transform_0, window_bounds = array<i64: 128, 128>}, {pipeline_mode = #tpu.pipeline_mode<synchronous>, transform_indices = @transform_1, window_bounds = array<i64: 1, 128>}, {pipeline_mode = #tpu.pipeline_mode<synchronous>, transform_indices = @transform_2, window_bounds = array<i64: 1, 128>}, {transform_indices = @transform_3, window_bounds = array<i64: 128, 128>}]} {
    %c0 = arith.constant 0 : index
    %c0_0 = arith.constant 0 : index
    %0 = vector.load %arg1[%c0, %c0_0] : memref<128x128xf32, #tpu.memory_space<vmem>>, vector<128x128xf32>
    %c0_1 = arith.constant 0 : index
    %c0_2 = arith.constant 0 : index
    %1 = vector.load %arg2[%c0_1, %c0_2] : memref<1x128xf32, #tpu.memory_space<vmem>>, vector<1x128xf32>
    %2 = vector.broadcast %1 : vector<1x128xf32> to vector<128x128xf32>
    %3 = arith.mulf %0, %2 : vector<128x128xf32>
    %c0_3 = arith.constant 0 : index
    %c0_4 = arith.constant 0 : index
    %4 = vector.load %arg3[%c0_3, %c0_4] : memref<1x128xf32, #tpu.memory_space<vmem>>, vector<1x128xf32>
    %5 = vector.broadcast %4 : vector<1x128xf32> to vector<128x128xf32>
    %6 = arith.addf %3, %5 : vector<128x128xf32>
    %cst = arith.constant 0.000000e+00 : f32
    %7 = vector.broadcast %cst : f32 to vector<128x128xf32>
    %8 = arith.maximumf %6, %7 : vector<128x128xf32>
    %c0_5 = arith.constant 0 : index
    %c0_6 = arith.constant 0 : index
    %9 = vector.load %arg4[%c0_5, %c0_6] : memref<128x128xf32, #tpu.memory_space<vmem>>, vector<128x128xf32>
    tpu.vector_store %arg4[%c0_5, %c0_6], %8 {strides = array<i32>} : memref<128x128xf32, #tpu.memory_space<vmem>>, vector<128x128xf32>,
    return
  }
  func.func @transform_0(%arg0: i32) -> (i32, i32) {
    %c0_i32 = arith.constant 0 : i32
    %c0_i32_0 = arith.constant 0 : i32
    return %arg0, %c0_i32 : i32, i32
  }
  func.func @transform_1(%arg0: i32) -> (i32, i32) {
    %c0_i32 = arith.constant 0 : i32
    %c0_i32_0 = arith.constant 0 : i32
    %c0_i32_1 = arith.constant 0 : i32
    return %c0_i32, %c0_i32_0 : i32, i32
  }
  func.func @transform_2(%arg0: i32) -> (i32, i32) {
    %c0_i32 = arith.constant 0 : i32
    %c0_i32_0 = arith.constant 0 : i32
    %c0_i32_1 = arith.constant 0 : i32
    return %c0_i32, %c0_i32_0 : i32, i32
  }
  func.func @transform_3(%arg0: i32) -> (i32, i32) {
    %c0_i32 = arith.constant 0 : i32
    %c0_i32_0 = arith.constant 0 : i32
    return %arg0, %c0_i32 : i32, i32
  }
}

module attributes {stable_mosaic.version = 11 : i64} {
  func.func @_bn_relu_kernel(%arg0: i32, %arg1: memref<32x128xf32, #tpu.memory_space<vmem>>, %arg2: memref<1x128xf32, #tpu.memory_space<vmem>>, %arg3: memref<1x128xf32, #tpu.memory_space<vmem>>, %arg4: memref<32x128xf32, #tpu.memory_space<vmem>>) attributes {dimension_semantics = [#tpu.dimension_semantics<parallel>], iteration_bounds = array<i64: 1>, scalar_prefetch = 0 : i64, scratch_operands = 0 : i64, tpu.core_type = #tpu.core_type<tc>, window_params = [{transform_indices = @transform_0, window_bounds = array<i64: 32, 128>}, {pipeline_mode = #tpu.pipeline_mode<synchronous>, transform_indices = @transform_1, window_bounds = array<i64: 1, 128>}, {pipeline_mode = #tpu.pipeline_mode<synchronous>, transform_indices = @transform_2, window_bounds = array<i64: 1, 128>}, {transform_indices = @transform_3, window_bounds = array<i64: 32, 128>}]} {
    %c0 = arith.constant 0 : index
    %c0_0 = arith.constant 0 : index
    %0 = vector.load %arg1[%c0, %c0_0] : memref<32x128xf32, #tpu.memory_space<vmem>>, vector<32x128xf32>
    %c0_1 = arith.constant 0 : index
    %c0_2 = arith.constant 0 : index
    %1 = vector.load %arg2[%c0_1, %c0_2] : memref<1x128xf32, #tpu.memory_space<vmem>>, vector<1x128xf32>
    %2 = vector.broadcast %1 : vector<1x128xf32> to vector<32x128xf32>
    %3 = arith.mulf %0, %2 : vector<32x128xf32>
    %c0_3 = arith.constant 0 : index
    %c0_4 = arith.constant 0 : index
    %4 = vector.load %arg3[%c0_3, %c0_4] : memref<1x128xf32, #tpu.memory_space<vmem>>, vector<1x128xf32>
    %5 = vector.broadcast %4 : vector<1x128xf32> to vector<32x128xf32>
    %6 = arith.addf %3, %5 : vector<32x128xf32>
    %cst = arith.constant 0.000000e+00 : f32
    %7 = vector.broadcast %cst : f32 to vector<32x128xf32>
    %8 = arith.maximumf %6, %7 : vector<32x128xf32>
    %c0_5 = arith.constant 0 : index
    %c0_6 = arith.constant 0 : index
    %9 = vector.load %arg4[%c0_5, %c0_6] : memref<32x128xf32, #tpu.memory_space<vmem>>, vector<32x128xf32>
    tpu.vector_store %arg4[%c0_5, %c0_6], %8 {strides = array<i32>} : memref<32x128xf32, #tpu.memory_space<vmem>>, vector<32x128xf32>,
    return
  }
  func.func @transform_0(%arg0: i32) -> (i32, i32) {
    %c0_i32 = arith.constant 0 : i32
    %c0_i32_0 = arith.constant 0 : i32
    return %arg0, %c0_i32 : i32, i32
  }
  func.func @transform_1(%arg0: i32) -> (i32, i32) {
    %c0_i32 = arith.constant 0 : i32
    %c0_i32_0 = arith.constant 0 : i32
    %c0_i32_1 = arith.constant 0 : i32
    return %c0_i32, %c0_i32_0 : i32, i32
  }
  func.func @transform_2(%arg0: i32) -> (i32, i32) {
    %c0_i32 = arith.constant 0 : i32
    %c0_i32_0 = arith.constant 0 : i32
    %c0_i32_1 = arith.constant 0 : i32
    return %c0_i32, %c0_i32_0 : i32, i32
  }
  func.func @transform_3(%arg0: i32) -> (i32, i32) {
    %c0_i32 = arith.constant 0 : i32
    %c0_i32_0 = arith.constant 0 : i32
    return %arg0, %c0_i32 : i32, i32
  }
}

module attributes {stable_mosaic.version = 11 : i64} {
  func.func @_conv_stats_kernel(%arg0: i32, %arg1: memref<32x128xbf16, #tpu.memory_space<vmem>>, %arg2: memref<128x128xbf16, #tpu.memory_space<vmem>>, %arg3: memref<1x128xf32, #tpu.memory_space<vmem>>, %arg4: memref<32x128xf32, #tpu.memory_space<vmem>>, %arg5: memref<8x128xf32, #tpu.memory_space<vmem>>, %arg6: memref<8x128xf32, #tpu.memory_space<vmem>>) attributes {dimension_semantics = [#tpu.dimension_semantics<parallel>], iteration_bounds = array<i64: 1>, scalar_prefetch = 0 : i64, scratch_operands = 0 : i64, tpu.core_type = #tpu.core_type<tc>, window_params = [{transform_indices = @transform_0, window_bounds = array<i64: 32, 128>}, {pipeline_mode = #tpu.pipeline_mode<synchronous>, transform_indices = @transform_1, window_bounds = array<i64: 128, 128>}, {pipeline_mode = #tpu.pipeline_mode<synchronous>, transform_indices = @transform_2, window_bounds = array<i64: 1, 128>}, {transform_indices = @transform_3, window_bounds = array<i64: 32, 128>}, {transform_indices = @transform_4, window_bounds = array<i64: 8, 128>}, {transform_indices = @transform_5, window_bounds = array<i64: 8, 128>}]} {
    %c0 = arith.constant 0 : index
    %c0_0 = arith.constant 0 : index
    %0 = vector.load %arg1[%c0, %c0_0] : memref<32x128xbf16, #tpu.memory_space<vmem>>, vector<32x128xbf16>
    %c0_1 = arith.constant 0 : index
    %c0_2 = arith.constant 0 : index
    %1 = vector.load %arg2[%c0_1, %c0_2] : memref<128x128xbf16, #tpu.memory_space<vmem>>, vector<128x128xbf16>
    %cst = arith.constant dense<0.000000e+00> : vector<32x128xf32>
    %2 = tpu.matmul %0, %1, %cst {dimension_numbers = #tpu.dot_dimension_numbers<[1], [0], [0], [1], [0, 0, 1, 1], [], []>} : vector<32x128xbf16>, vector<128x128xbf16>, vector<32x128xf32> -> vector<32x128xf32>
    %c0_3 = arith.constant 0 : index
    %c0_4 = arith.constant 0 : index
    %3 = vector.load %arg3[%c0_3, %c0_4] : memref<1x128xf32, #tpu.memory_space<vmem>>, vector<1x128xf32>
    %4 = vector.broadcast %3 : vector<1x128xf32> to vector<32x128xf32>
    %5 = arith.addf %2, %4 : vector<32x128xf32>
    %c0_5 = arith.constant 0 : index
    %c0_6 = arith.constant 0 : index
    %6 = vector.load %arg4[%c0_5, %c0_6] : memref<32x128xf32, #tpu.memory_space<vmem>>, vector<32x128xf32>
    tpu.vector_store %arg4[%c0_5, %c0_6], %5 {strides = array<i32>} : memref<32x128xf32, #tpu.memory_space<vmem>>, vector<32x128xf32>,
    %c32_i32 = arith.constant 32 : i32
    %7 = arith.muli %arg0, %c32_i32 : i32
    %8 = tpu.iota {dimensions = array<i32: 0>} : vector<32x1xi32>
    %9 = vector.broadcast %7 : i32 to vector<32x1xi32>
    %10 = arith.addi %9, %8 : vector<32x1xi32>
    %c32_i32_7 = arith.constant 32 : i32
    %11 = vector.broadcast %c32_i32_7 : i32 to vector<32x1xi32>
    %12 = arith.cmpi slt, %10, %11 : vector<32x1xi32>
    %13 = arith.extui %12 : vector<32x1xi1> to vector<32x1xi32>
    %14 = arith.sitofp %13 : vector<32x1xi32> to vector<32x1xf32>
    %15 = vector.broadcast %14 : vector<32x1xf32> to vector<32x128xf32>
    %16 = arith.mulf %5, %15 : vector<32x128xf32>
    %cst_8 = arith.constant dense<0.000000e+00> : vector<128xf32>
    %17 = vector.multi_reduction <add>, %16, %cst_8 [0] : vector<32x128xf32> to vector<128xf32>
    %18 = vector.shape_cast %17 : vector<128xf32> to vector<1x128xf32>
    %19 = arith.mulf %16, %5 : vector<32x128xf32>
    %cst_9 = arith.constant dense<0.000000e+00> : vector<128xf32>
    %20 = vector.multi_reduction <add>, %19, %cst_9 [0] : vector<32x128xf32> to vector<128xf32>
    %21 = vector.shape_cast %20 : vector<128xf32> to vector<1x128xf32>
    %22 = tpu.iota {dimensions = array<i32: 0>} : vector<8x128xi32>
    %c0_i32 = arith.constant 0 : i32
    %23 = vector.broadcast %c0_i32 : i32 to vector<8x128xi32>
    %24 = arith.cmpi eq, %22, %23 : vector<8x128xi32>
    %cst_10 = arith.constant 0.000000e+00 : f32
    %25 = vector.shape_cast %18 : vector<1x128xf32> to vector<1x128xf32>
    %26 = vector.broadcast %25 : vector<1x128xf32> to vector<8x128xf32>
    %27 = vector.broadcast %cst_10 : f32 to vector<8x128xf32>
    %28 = arith.select %24, %26, %27 : vector<8x128xi1>, vector<8x128xf32>
    %c0_11 = arith.constant 0 : index
    %c0_12 = arith.constant 0 : index
    %29 = vector.load %arg5[%c0_11, %c0_12] : memref<8x128xf32, #tpu.memory_space<vmem>>, vector<8x128xf32>
    tpu.vector_store %arg5[%c0_11, %c0_12], %28 {strides = array<i32>} : memref<8x128xf32, #tpu.memory_space<vmem>>, vector<8x128xf32>,
    %c0_i32_13 = arith.constant 0 : i32
    %30 = vector.broadcast %c0_i32_13 : i32 to vector<8x128xi32>
    %31 = arith.cmpi eq, %22, %30 : vector<8x128xi32>
    %cst_14 = arith.constant 0.000000e+00 : f32
    %32 = vector.shape_cast %21 : vector<1x128xf32> to vector<1x128xf32>
    %33 = vector.broadcast %32 : vector<1x128xf32> to vector<8x128xf32>
    %34 = vector.broadcast %cst_14 : f32 to vector<8x128xf32>
    %35 = arith.select %31, %33, %34 : vector<8x128xi1>, vector<8x128xf32>
    %c0_15 = arith.constant 0 : index
    %c0_16 = arith.constant 0 : index
    %36 = vector.load %arg6[%c0_15, %c0_16] : memref<8x128xf32, #tpu.memory_space<vmem>>, vector<8x128xf32>
    tpu.vector_store %arg6[%c0_15, %c0_16], %35 {strides = array<i32>} : memref<8x128xf32, #tpu.memory_space<vmem>>, vector<8x128xf32>,
    return
  }
  func.func @transform_0(%arg0: i32) -> (i32, i32) {
    %c0_i32 = arith.constant 0 : i32
    %c0_i32_0 = arith.constant 0 : i32
    return %arg0, %c0_i32 : i32, i32
  }
  func.func @transform_1(%arg0: i32) -> (i32, i32) {
    %c0_i32 = arith.constant 0 : i32
    %c0_i32_0 = arith.constant 0 : i32
    %c0_i32_1 = arith.constant 0 : i32
    return %c0_i32, %c0_i32_0 : i32, i32
  }
  func.func @transform_2(%arg0: i32) -> (i32, i32) {
    %c0_i32 = arith.constant 0 : i32
    %c0_i32_0 = arith.constant 0 : i32
    %c0_i32_1 = arith.constant 0 : i32
    return %c0_i32, %c0_i32_0 : i32, i32
  }
  func.func @transform_3(%arg0: i32) -> (i32, i32) {
    %c0_i32 = arith.constant 0 : i32
    %c0_i32_0 = arith.constant 0 : i32
    return %arg0, %c0_i32 : i32, i32
  }
  func.func @transform_4(%arg0: i32) -> (i32, i32) {
    %c0_i32 = arith.constant 0 : i32
    %c0_i32_0 = arith.constant 0 : i32
    return %arg0, %c0_i32 : i32, i32
  }
  func.func @transform_5(%arg0: i32) -> (i32, i32) {
    %c0_i32 = arith.constant 0 : i32
    %c0_i32_0 = arith.constant 0 : i32
    return %arg0, %c0_i32 : i32, i32
  }
}

module attributes {stable_mosaic.version = 11 : i64} {
  func.func @_conv_stats_kernel(%arg0: i32, %arg1: memref<8x128xbf16, #tpu.memory_space<vmem>>, %arg2: memref<128x128xbf16, #tpu.memory_space<vmem>>, %arg3: memref<1x128xf32, #tpu.memory_space<vmem>>, %arg4: memref<8x128xf32, #tpu.memory_space<vmem>>, %arg5: memref<8x128xf32, #tpu.memory_space<vmem>>, %arg6: memref<8x128xf32, #tpu.memory_space<vmem>>) attributes {dimension_semantics = [#tpu.dimension_semantics<parallel>], iteration_bounds = array<i64: 1>, scalar_prefetch = 0 : i64, scratch_operands = 0 : i64, tpu.core_type = #tpu.core_type<tc>, window_params = [{transform_indices = @transform_0, window_bounds = array<i64: 8, 128>}, {pipeline_mode = #tpu.pipeline_mode<synchronous>, transform_indices = @transform_1, window_bounds = array<i64: 128, 128>}, {pipeline_mode = #tpu.pipeline_mode<synchronous>, transform_indices = @transform_2, window_bounds = array<i64: 1, 128>}, {transform_indices = @transform_3, window_bounds = array<i64: 8, 128>}, {transform_indices = @transform_4, window_bounds = array<i64: 8, 128>}, {transform_indices = @transform_5, window_bounds = array<i64: 8, 128>}]} {
    %c0 = arith.constant 0 : index
    %c0_0 = arith.constant 0 : index
    %0 = vector.load %arg1[%c0, %c0_0] : memref<8x128xbf16, #tpu.memory_space<vmem>>, vector<8x128xbf16>
    %c0_1 = arith.constant 0 : index
    %c0_2 = arith.constant 0 : index
    %1 = vector.load %arg2[%c0_1, %c0_2] : memref<128x128xbf16, #tpu.memory_space<vmem>>, vector<128x128xbf16>
    %cst = arith.constant dense<0.000000e+00> : vector<8x128xf32>
    %2 = tpu.matmul %0, %1, %cst {dimension_numbers = #tpu.dot_dimension_numbers<[1], [0], [0], [1], [0, 0, 1, 1], [], []>} : vector<8x128xbf16>, vector<128x128xbf16>, vector<8x128xf32> -> vector<8x128xf32>
    %c0_3 = arith.constant 0 : index
    %c0_4 = arith.constant 0 : index
    %3 = vector.load %arg3[%c0_3, %c0_4] : memref<1x128xf32, #tpu.memory_space<vmem>>, vector<1x128xf32>
    %4 = vector.broadcast %3 : vector<1x128xf32> to vector<8x128xf32>
    %5 = arith.addf %2, %4 : vector<8x128xf32>
    %c0_5 = arith.constant 0 : index
    %c0_6 = arith.constant 0 : index
    %6 = vector.load %arg4[%c0_5, %c0_6] : memref<8x128xf32, #tpu.memory_space<vmem>>, vector<8x128xf32>
    tpu.vector_store %arg4[%c0_5, %c0_6], %5 {strides = array<i32>} : memref<8x128xf32, #tpu.memory_space<vmem>>, vector<8x128xf32>,
    %c8_i32 = arith.constant 8 : i32
    %7 = arith.muli %arg0, %c8_i32 : i32
    %8 = tpu.iota {dimensions = array<i32: 0>} : vector<8x1xi32>
    %9 = vector.broadcast %7 : i32 to vector<8x1xi32>
    %10 = arith.addi %9, %8 : vector<8x1xi32>
    %c8_i32_7 = arith.constant 8 : i32
    %11 = vector.broadcast %c8_i32_7 : i32 to vector<8x1xi32>
    %12 = arith.cmpi slt, %10, %11 : vector<8x1xi32>
    %13 = arith.extui %12 : vector<8x1xi1> to vector<8x1xi32>
    %14 = arith.sitofp %13 : vector<8x1xi32> to vector<8x1xf32>
    %15 = vector.broadcast %14 : vector<8x1xf32> to vector<8x128xf32>
    %16 = arith.mulf %5, %15 : vector<8x128xf32>
    %cst_8 = arith.constant dense<0.000000e+00> : vector<128xf32>
    %17 = vector.multi_reduction <add>, %16, %cst_8 [0] : vector<8x128xf32> to vector<128xf32>
    %18 = vector.shape_cast %17 : vector<128xf32> to vector<1x128xf32>
    %19 = arith.mulf %16, %5 : vector<8x128xf32>
    %cst_9 = arith.constant dense<0.000000e+00> : vector<128xf32>
    %20 = vector.multi_reduction <add>, %19, %cst_9 [0] : vector<8x128xf32> to vector<128xf32>
    %21 = vector.shape_cast %20 : vector<128xf32> to vector<1x128xf32>
    %22 = tpu.iota {dimensions = array<i32: 0>} : vector<8x128xi32>
    %c0_i32 = arith.constant 0 : i32
    %23 = vector.broadcast %c0_i32 : i32 to vector<8x128xi32>
    %24 = arith.cmpi eq, %22, %23 : vector<8x128xi32>
    %cst_10 = arith.constant 0.000000e+00 : f32
    %25 = vector.shape_cast %18 : vector<1x128xf32> to vector<1x128xf32>
    %26 = vector.broadcast %25 : vector<1x128xf32> to vector<8x128xf32>
    %27 = vector.broadcast %cst_10 : f32 to vector<8x128xf32>
    %28 = arith.select %24, %26, %27 : vector<8x128xi1>, vector<8x128xf32>
    %c0_11 = arith.constant 0 : index
    %c0_12 = arith.constant 0 : index
    %29 = vector.load %arg5[%c0_11, %c0_12] : memref<8x128xf32, #tpu.memory_space<vmem>>, vector<8x128xf32>
    tpu.vector_store %arg5[%c0_11, %c0_12], %28 {strides = array<i32>} : memref<8x128xf32, #tpu.memory_space<vmem>>, vector<8x128xf32>,
    %c0_i32_13 = arith.constant 0 : i32
    %30 = vector.broadcast %c0_i32_13 : i32 to vector<8x128xi32>
    %31 = arith.cmpi eq, %22, %30 : vector<8x128xi32>
    %cst_14 = arith.constant 0.000000e+00 : f32
    %32 = vector.shape_cast %21 : vector<1x128xf32> to vector<1x128xf32>
    %33 = vector.broadcast %32 : vector<1x128xf32> to vector<8x128xf32>
    %34 = vector.broadcast %cst_14 : f32 to vector<8x128xf32>
    %35 = arith.select %31, %33, %34 : vector<8x128xi1>, vector<8x128xf32>
    %c0_15 = arith.constant 0 : index
    %c0_16 = arith.constant 0 : index
    %36 = vector.load %arg6[%c0_15, %c0_16] : memref<8x128xf32, #tpu.memory_space<vmem>>, vector<8x128xf32>
    tpu.vector_store %arg6[%c0_15, %c0_16], %35 {strides = array<i32>} : memref<8x128xf32, #tpu.memory_space<vmem>>, vector<8x128xf32>,
    return
  }
  func.func @transform_0(%arg0: i32) -> (i32, i32) {
    %c0_i32 = arith.constant 0 : i32
    %c0_i32_0 = arith.constant 0 : i32
    return %arg0, %c0_i32 : i32, i32
  }
  func.func @transform_1(%arg0: i32) -> (i32, i32) {
    %c0_i32 = arith.constant 0 : i32
    %c0_i32_0 = arith.constant 0 : i32
    %c0_i32_1 = arith.constant 0 : i32
    return %c0_i32, %c0_i32_0 : i32, i32
  }
  func.func @transform_2(%arg0: i32) -> (i32, i32) {
    %c0_i32 = arith.constant 0 : i32
    %c0_i32_0 = arith.constant 0 : i32
    %c0_i32_1 = arith.constant 0 : i32
    return %c0_i32, %c0_i32_0 : i32, i32
  }
  func.func @transform_3(%arg0: i32) -> (i32, i32) {
    %c0_i32 = arith.constant 0 : i32
    %c0_i32_0 = arith.constant 0 : i32
    return %arg0, %c0_i32 : i32, i32
  }
  func.func @transform_4(%arg0: i32) -> (i32, i32) {
    %c0_i32 = arith.constant 0 : i32
    %c0_i32_0 = arith.constant 0 : i32
    return %arg0, %c0_i32 : i32, i32
  }
  func.func @transform_5(%arg0: i32) -> (i32, i32) {
    %c0_i32 = arith.constant 0 : i32
    %c0_i32_0 = arith.constant 0 : i32
    return %arg0, %c0_i32 : i32, i32
  }
}

module attributes {stable_mosaic.version = 11 : i64} {
  func.func @_bn_relu_kernel(%arg0: i32, %arg1: memref<8x128xf32, #tpu.memory_space<vmem>>, %arg2: memref<1x128xf32, #tpu.memory_space<vmem>>, %arg3: memref<1x128xf32, #tpu.memory_space<vmem>>, %arg4: memref<8x128xf32, #tpu.memory_space<vmem>>) attributes {dimension_semantics = [#tpu.dimension_semantics<parallel>], iteration_bounds = array<i64: 1>, scalar_prefetch = 0 : i64, scratch_operands = 0 : i64, tpu.core_type = #tpu.core_type<tc>, window_params = [{transform_indices = @transform_0, window_bounds = array<i64: 8, 128>}, {pipeline_mode = #tpu.pipeline_mode<synchronous>, transform_indices = @transform_1, window_bounds = array<i64: 1, 128>}, {pipeline_mode = #tpu.pipeline_mode<synchronous>, transform_indices = @transform_2, window_bounds = array<i64: 1, 128>}, {transform_indices = @transform_3, window_bounds = array<i64: 8, 128>}]} {
    %c0 = arith.constant 0 : index
    %c0_0 = arith.constant 0 : index
    %0 = vector.load %arg1[%c0, %c0_0] : memref<8x128xf32, #tpu.memory_space<vmem>>, vector<8x128xf32>
    %c0_1 = arith.constant 0 : index
    %c0_2 = arith.constant 0 : index
    %1 = vector.load %arg2[%c0_1, %c0_2] : memref<1x128xf32, #tpu.memory_space<vmem>>, vector<1x128xf32>
    %2 = vector.broadcast %1 : vector<1x128xf32> to vector<8x128xf32>
    %3 = arith.mulf %0, %2 : vector<8x128xf32>
    %c0_3 = arith.constant 0 : index
    %c0_4 = arith.constant 0 : index
    %4 = vector.load %arg3[%c0_3, %c0_4] : memref<1x128xf32, #tpu.memory_space<vmem>>, vector<1x128xf32>
    %5 = vector.broadcast %4 : vector<1x128xf32> to vector<8x128xf32>
    %6 = arith.addf %3, %5 : vector<8x128xf32>
    %cst = arith.constant 0.000000e+00 : f32
    %7 = vector.broadcast %cst : f32 to vector<8x128xf32>
    %8 = arith.maximumf %6, %7 : vector<8x128xf32>
    %c0_5 = arith.constant 0 : index
    %c0_6 = arith.constant 0 : index
    %9 = vector.load %arg4[%c0_5, %c0_6] : memref<8x128xf32, #tpu.memory_space<vmem>>, vector<8x128xf32>
    tpu.vector_store %arg4[%c0_5, %c0_6], %8 {strides = array<i32>} : memref<8x128xf32, #tpu.memory_space<vmem>>, vector<8x128xf32>,
    return
  }
  func.func @transform_0(%arg0: i32) -> (i32, i32) {
    %c0_i32 = arith.constant 0 : i32
    %c0_i32_0 = arith.constant 0 : i32
    return %arg0, %c0_i32 : i32, i32
  }
  func.func @transform_1(%arg0: i32) -> (i32, i32) {
    %c0_i32 = arith.constant 0 : i32
    %c0_i32_0 = arith.constant 0 : i32
    %c0_i32_1 = arith.constant 0 : i32
    return %c0_i32, %c0_i32_0 : i32, i32
  }
  func.func @transform_2(%arg0: i32) -> (i32, i32) {
    %c0_i32 = arith.constant 0 : i32
    %c0_i32_0 = arith.constant 0 : i32
    %c0_i32_1 = arith.constant 0 : i32
    return %c0_i32, %c0_i32_0 : i32, i32
  }
  func.func @transform_3(%arg0: i32) -> (i32, i32) {
    %c0_i32 = arith.constant 0 : i32
    %c0_i32_0 = arith.constant 0 : i32
    return %arg0, %c0_i32 : i32, i32
  }
}

module attributes {stable_mosaic.version = 11 : i64} {
  func.func @_conv_stats_kernel(%arg0: i32, %arg1: memref<8x128xbf16, #tpu.memory_space<vmem>>, %arg2: memref<128x128xbf16, #tpu.memory_space<vmem>>, %arg3: memref<1x128xf32, #tpu.memory_space<vmem>>, %arg4: memref<8x128xf32, #tpu.memory_space<vmem>>, %arg5: memref<8x128xf32, #tpu.memory_space<vmem>>, %arg6: memref<8x128xf32, #tpu.memory_space<vmem>>) attributes {dimension_semantics = [#tpu.dimension_semantics<parallel>], iteration_bounds = array<i64: 1>, scalar_prefetch = 0 : i64, scratch_operands = 0 : i64, tpu.core_type = #tpu.core_type<tc>, window_params = [{transform_indices = @transform_0, window_bounds = array<i64: 8, 128>}, {pipeline_mode = #tpu.pipeline_mode<synchronous>, transform_indices = @transform_1, window_bounds = array<i64: 128, 128>}, {pipeline_mode = #tpu.pipeline_mode<synchronous>, transform_indices = @transform_2, window_bounds = array<i64: 1, 128>}, {transform_indices = @transform_3, window_bounds = array<i64: 8, 128>}, {transform_indices = @transform_4, window_bounds = array<i64: 8, 128>}, {transform_indices = @transform_5, window_bounds = array<i64: 8, 128>}]} {
    %c0 = arith.constant 0 : index
    %c0_0 = arith.constant 0 : index
    %0 = vector.load %arg1[%c0, %c0_0] : memref<8x128xbf16, #tpu.memory_space<vmem>>, vector<8x128xbf16>
    %c0_1 = arith.constant 0 : index
    %c0_2 = arith.constant 0 : index
    %1 = vector.load %arg2[%c0_1, %c0_2] : memref<128x128xbf16, #tpu.memory_space<vmem>>, vector<128x128xbf16>
    %cst = arith.constant dense<0.000000e+00> : vector<8x128xf32>
    %2 = tpu.matmul %0, %1, %cst {dimension_numbers = #tpu.dot_dimension_numbers<[1], [0], [0], [1], [0, 0, 1, 1], [], []>} : vector<8x128xbf16>, vector<128x128xbf16>, vector<8x128xf32> -> vector<8x128xf32>
    %c0_3 = arith.constant 0 : index
    %c0_4 = arith.constant 0 : index
    %3 = vector.load %arg3[%c0_3, %c0_4] : memref<1x128xf32, #tpu.memory_space<vmem>>, vector<1x128xf32>
    %4 = vector.broadcast %3 : vector<1x128xf32> to vector<8x128xf32>
    %5 = arith.addf %2, %4 : vector<8x128xf32>
    %c0_5 = arith.constant 0 : index
    %c0_6 = arith.constant 0 : index
    %6 = vector.load %arg4[%c0_5, %c0_6] : memref<8x128xf32, #tpu.memory_space<vmem>>, vector<8x128xf32>
    tpu.vector_store %arg4[%c0_5, %c0_6], %5 {strides = array<i32>} : memref<8x128xf32, #tpu.memory_space<vmem>>, vector<8x128xf32>,
    %c8_i32 = arith.constant 8 : i32
    %7 = arith.muli %arg0, %c8_i32 : i32
    %8 = tpu.iota {dimensions = array<i32: 0>} : vector<8x1xi32>
    %9 = vector.broadcast %7 : i32 to vector<8x1xi32>
    %10 = arith.addi %9, %8 : vector<8x1xi32>
    %c2_i32 = arith.constant 2 : i32
    %11 = vector.broadcast %c2_i32 : i32 to vector<8x1xi32>
    %12 = arith.cmpi slt, %10, %11 : vector<8x1xi32>
    %13 = arith.extui %12 : vector<8x1xi1> to vector<8x1xi32>
    %14 = arith.sitofp %13 : vector<8x1xi32> to vector<8x1xf32>
    %15 = vector.broadcast %14 : vector<8x1xf32> to vector<8x128xf32>
    %16 = arith.mulf %5, %15 : vector<8x128xf32>
    %cst_7 = arith.constant dense<0.000000e+00> : vector<128xf32>
    %17 = vector.multi_reduction <add>, %16, %cst_7 [0] : vector<8x128xf32> to vector<128xf32>
    %18 = vector.shape_cast %17 : vector<128xf32> to vector<1x128xf32>
    %19 = arith.mulf %16, %5 : vector<8x128xf32>
    %cst_8 = arith.constant dense<0.000000e+00> : vector<128xf32>
    %20 = vector.multi_reduction <add>, %19, %cst_8 [0] : vector<8x128xf32> to vector<128xf32>
    %21 = vector.shape_cast %20 : vector<128xf32> to vector<1x128xf32>
    %22 = tpu.iota {dimensions = array<i32: 0>} : vector<8x128xi32>
    %c0_i32 = arith.constant 0 : i32
    %23 = vector.broadcast %c0_i32 : i32 to vector<8x128xi32>
    %24 = arith.cmpi eq, %22, %23 : vector<8x128xi32>
    %cst_9 = arith.constant 0.000000e+00 : f32
    %25 = vector.shape_cast %18 : vector<1x128xf32> to vector<1x128xf32>
    %26 = vector.broadcast %25 : vector<1x128xf32> to vector<8x128xf32>
    %27 = vector.broadcast %cst_9 : f32 to vector<8x128xf32>
    %28 = arith.select %24, %26, %27 : vector<8x128xi1>, vector<8x128xf32>
    %c0_10 = arith.constant 0 : index
    %c0_11 = arith.constant 0 : index
    %29 = vector.load %arg5[%c0_10, %c0_11] : memref<8x128xf32, #tpu.memory_space<vmem>>, vector<8x128xf32>
    tpu.vector_store %arg5[%c0_10, %c0_11], %28 {strides = array<i32>} : memref<8x128xf32, #tpu.memory_space<vmem>>, vector<8x128xf32>,
    %c0_i32_12 = arith.constant 0 : i32
    %30 = vector.broadcast %c0_i32_12 : i32 to vector<8x128xi32>
    %31 = arith.cmpi eq, %22, %30 : vector<8x128xi32>
    %cst_13 = arith.constant 0.000000e+00 : f32
    %32 = vector.shape_cast %21 : vector<1x128xf32> to vector<1x128xf32>
    %33 = vector.broadcast %32 : vector<1x128xf32> to vector<8x128xf32>
    %34 = vector.broadcast %cst_13 : f32 to vector<8x128xf32>
    %35 = arith.select %31, %33, %34 : vector<8x128xi1>, vector<8x128xf32>
    %c0_14 = arith.constant 0 : index
    %c0_15 = arith.constant 0 : index
    %36 = vector.load %arg6[%c0_14, %c0_15] : memref<8x128xf32, #tpu.memory_space<vmem>>, vector<8x128xf32>
    tpu.vector_store %arg6[%c0_14, %c0_15], %35 {strides = array<i32>} : memref<8x128xf32, #tpu.memory_space<vmem>>, vector<8x128xf32>,
    return
  }
  func.func @transform_0(%arg0: i32) -> (i32, i32) {
    %c0_i32 = arith.constant 0 : i32
    %c0_i32_0 = arith.constant 0 : i32
    return %arg0, %c0_i32 : i32, i32
  }
  func.func @transform_1(%arg0: i32) -> (i32, i32) {
    %c0_i32 = arith.constant 0 : i32
    %c0_i32_0 = arith.constant 0 : i32
    %c0_i32_1 = arith.constant 0 : i32
    return %c0_i32, %c0_i32_0 : i32, i32
  }
  func.func @transform_2(%arg0: i32) -> (i32, i32) {
    %c0_i32 = arith.constant 0 : i32
    %c0_i32_0 = arith.constant 0 : i32
    %c0_i32_1 = arith.constant 0 : i32
    return %c0_i32, %c0_i32_0 : i32, i32
  }
  func.func @transform_3(%arg0: i32) -> (i32, i32) {
    %c0_i32 = arith.constant 0 : i32
    %c0_i32_0 = arith.constant 0 : i32
    return %arg0, %c0_i32 : i32, i32
  }
  func.func @transform_4(%arg0: i32) -> (i32, i32) {
    %c0_i32 = arith.constant 0 : i32
    %c0_i32_0 = arith.constant 0 : i32
    return %arg0, %c0_i32 : i32, i32
  }
  func.func @transform_5(%arg0: i32) -> (i32, i32) {
    %c0_i32 = arith.constant 0 : i32
    %c0_i32_0 = arith.constant 0 : i32
    return %arg0, %c0_i32 : i32, i32
  }
}

module attributes {stable_mosaic.version = 11 : i64} {
  func.func @_conv_stats_kernel(%arg0: i32, %arg1: memref<8x256xbf16, #tpu.memory_space<vmem>>, %arg2: memref<256x128xbf16, #tpu.memory_space<vmem>>, %arg3: memref<1x128xf32, #tpu.memory_space<vmem>>, %arg4: memref<8x128xf32, #tpu.memory_space<vmem>>, %arg5: memref<8x128xf32, #tpu.memory_space<vmem>>, %arg6: memref<8x128xf32, #tpu.memory_space<vmem>>) attributes {dimension_semantics = [#tpu.dimension_semantics<parallel>], iteration_bounds = array<i64: 1>, scalar_prefetch = 0 : i64, scratch_operands = 0 : i64, tpu.core_type = #tpu.core_type<tc>, window_params = [{transform_indices = @transform_0, window_bounds = array<i64: 8, 256>}, {pipeline_mode = #tpu.pipeline_mode<synchronous>, transform_indices = @transform_1, window_bounds = array<i64: 256, 128>}, {pipeline_mode = #tpu.pipeline_mode<synchronous>, transform_indices = @transform_2, window_bounds = array<i64: 1, 128>}, {transform_indices = @transform_3, window_bounds = array<i64: 8, 128>}, {transform_indices = @transform_4, window_bounds = array<i64: 8, 128>}, {transform_indices = @transform_5, window_bounds = array<i64: 8, 128>}]} {
    %c0 = arith.constant 0 : index
    %c0_0 = arith.constant 0 : index
    %0 = vector.load %arg1[%c0, %c0_0] : memref<8x256xbf16, #tpu.memory_space<vmem>>, vector<8x256xbf16>
    %c0_1 = arith.constant 0 : index
    %c0_2 = arith.constant 0 : index
    %1 = vector.load %arg2[%c0_1, %c0_2] : memref<256x128xbf16, #tpu.memory_space<vmem>>, vector<256x128xbf16>
    %cst = arith.constant dense<0.000000e+00> : vector<8x128xf32>
    %2 = tpu.matmul %0, %1, %cst {dimension_numbers = #tpu.dot_dimension_numbers<[1], [0], [0], [1], [0, 0, 1, 1], [], []>} : vector<8x256xbf16>, vector<256x128xbf16>, vector<8x128xf32> -> vector<8x128xf32>
    %c0_3 = arith.constant 0 : index
    %c0_4 = arith.constant 0 : index
    %3 = vector.load %arg3[%c0_3, %c0_4] : memref<1x128xf32, #tpu.memory_space<vmem>>, vector<1x128xf32>
    %4 = vector.broadcast %3 : vector<1x128xf32> to vector<8x128xf32>
    %5 = arith.addf %2, %4 : vector<8x128xf32>
    %c0_5 = arith.constant 0 : index
    %c0_6 = arith.constant 0 : index
    %6 = vector.load %arg4[%c0_5, %c0_6] : memref<8x128xf32, #tpu.memory_space<vmem>>, vector<8x128xf32>
    tpu.vector_store %arg4[%c0_5, %c0_6], %5 {strides = array<i32>} : memref<8x128xf32, #tpu.memory_space<vmem>>, vector<8x128xf32>,
    %c8_i32 = arith.constant 8 : i32
    %7 = arith.muli %arg0, %c8_i32 : i32
    %8 = tpu.iota {dimensions = array<i32: 0>} : vector<8x1xi32>
    %9 = vector.broadcast %7 : i32 to vector<8x1xi32>
    %10 = arith.addi %9, %8 : vector<8x1xi32>
    %c2_i32 = arith.constant 2 : i32
    %11 = vector.broadcast %c2_i32 : i32 to vector<8x1xi32>
    %12 = arith.cmpi slt, %10, %11 : vector<8x1xi32>
    %13 = arith.extui %12 : vector<8x1xi1> to vector<8x1xi32>
    %14 = arith.sitofp %13 : vector<8x1xi32> to vector<8x1xf32>
    %15 = vector.broadcast %14 : vector<8x1xf32> to vector<8x128xf32>
    %16 = arith.mulf %5, %15 : vector<8x128xf32>
    %cst_7 = arith.constant dense<0.000000e+00> : vector<128xf32>
    %17 = vector.multi_reduction <add>, %16, %cst_7 [0] : vector<8x128xf32> to vector<128xf32>
    %18 = vector.shape_cast %17 : vector<128xf32> to vector<1x128xf32>
    %19 = arith.mulf %16, %5 : vector<8x128xf32>
    %cst_8 = arith.constant dense<0.000000e+00> : vector<128xf32>
    %20 = vector.multi_reduction <add>, %19, %cst_8 [0] : vector<8x128xf32> to vector<128xf32>
    %21 = vector.shape_cast %20 : vector<128xf32> to vector<1x128xf32>
    %22 = tpu.iota {dimensions = array<i32: 0>} : vector<8x128xi32>
    %c0_i32 = arith.constant 0 : i32
    %23 = vector.broadcast %c0_i32 : i32 to vector<8x128xi32>
    %24 = arith.cmpi eq, %22, %23 : vector<8x128xi32>
    %cst_9 = arith.constant 0.000000e+00 : f32
    %25 = vector.shape_cast %18 : vector<1x128xf32> to vector<1x128xf32>
    %26 = vector.broadcast %25 : vector<1x128xf32> to vector<8x128xf32>
    %27 = vector.broadcast %cst_9 : f32 to vector<8x128xf32>
    %28 = arith.select %24, %26, %27 : vector<8x128xi1>, vector<8x128xf32>
    %c0_10 = arith.constant 0 : index
    %c0_11 = arith.constant 0 : index
    %29 = vector.load %arg5[%c0_10, %c0_11] : memref<8x128xf32, #tpu.memory_space<vmem>>, vector<8x128xf32>
    tpu.vector_store %arg5[%c0_10, %c0_11], %28 {strides = array<i32>} : memref<8x128xf32, #tpu.memory_space<vmem>>, vector<8x128xf32>,
    %c0_i32_12 = arith.constant 0 : i32
    %30 = vector.broadcast %c0_i32_12 : i32 to vector<8x128xi32>
    %31 = arith.cmpi eq, %22, %30 : vector<8x128xi32>
    %cst_13 = arith.constant 0.000000e+00 : f32
    %32 = vector.shape_cast %21 : vector<1x128xf32> to vector<1x128xf32>
    %33 = vector.broadcast %32 : vector<1x128xf32> to vector<8x128xf32>
    %34 = vector.broadcast %cst_13 : f32 to vector<8x128xf32>
    %35 = arith.select %31, %33, %34 : vector<8x128xi1>, vector<8x128xf32>
    %c0_14 = arith.constant 0 : index
    %c0_15 = arith.constant 0 : index
    %36 = vector.load %arg6[%c0_14, %c0_15] : memref<8x128xf32, #tpu.memory_space<vmem>>, vector<8x128xf32>
    tpu.vector_store %arg6[%c0_14, %c0_15], %35 {strides = array<i32>} : memref<8x128xf32, #tpu.memory_space<vmem>>, vector<8x128xf32>,
    return
  }
  func.func @transform_0(%arg0: i32) -> (i32, i32) {
    %c0_i32 = arith.constant 0 : i32
    %c0_i32_0 = arith.constant 0 : i32
    return %arg0, %c0_i32 : i32, i32
  }
  func.func @transform_1(%arg0: i32) -> (i32, i32) {
    %c0_i32 = arith.constant 0 : i32
    %c0_i32_0 = arith.constant 0 : i32
    %c0_i32_1 = arith.constant 0 : i32
    return %c0_i32, %c0_i32_0 : i32, i32
  }
  func.func @transform_2(%arg0: i32) -> (i32, i32) {
    %c0_i32 = arith.constant 0 : i32
    %c0_i32_0 = arith.constant 0 : i32
    %c0_i32_1 = arith.constant 0 : i32
    return %c0_i32, %c0_i32_0 : i32, i32
  }
  func.func @transform_3(%arg0: i32) -> (i32, i32) {
    %c0_i32 = arith.constant 0 : i32
    %c0_i32_0 = arith.constant 0 : i32
    return %arg0, %c0_i32 : i32, i32
  }
  func.func @transform_4(%arg0: i32) -> (i32, i32) {
    %c0_i32 = arith.constant 0 : i32
    %c0_i32_0 = arith.constant 0 : i32
    return %arg0, %c0_i32 : i32, i32
  }
  func.func @transform_5(%arg0: i32) -> (i32, i32) {
    %c0_i32 = arith.constant 0 : i32
    %c0_i32_0 = arith.constant 0 : i32
    return %arg0, %c0_i32 : i32, i32
  }
}

module attributes {stable_mosaic.version = 11 : i64} {
  func.func @_conv_stats_kernel(%arg0: i32, %arg1: memref<8x256xbf16, #tpu.memory_space<vmem>>, %arg2: memref<256x128xbf16, #tpu.memory_space<vmem>>, %arg3: memref<1x128xf32, #tpu.memory_space<vmem>>, %arg4: memref<8x128xf32, #tpu.memory_space<vmem>>, %arg5: memref<8x128xf32, #tpu.memory_space<vmem>>, %arg6: memref<8x128xf32, #tpu.memory_space<vmem>>) attributes {dimension_semantics = [#tpu.dimension_semantics<parallel>], iteration_bounds = array<i64: 1>, scalar_prefetch = 0 : i64, scratch_operands = 0 : i64, tpu.core_type = #tpu.core_type<tc>, window_params = [{transform_indices = @transform_0, window_bounds = array<i64: 8, 256>}, {pipeline_mode = #tpu.pipeline_mode<synchronous>, transform_indices = @transform_1, window_bounds = array<i64: 256, 128>}, {pipeline_mode = #tpu.pipeline_mode<synchronous>, transform_indices = @transform_2, window_bounds = array<i64: 1, 128>}, {transform_indices = @transform_3, window_bounds = array<i64: 8, 128>}, {transform_indices = @transform_4, window_bounds = array<i64: 8, 128>}, {transform_indices = @transform_5, window_bounds = array<i64: 8, 128>}]} {
    %c0 = arith.constant 0 : index
    %c0_0 = arith.constant 0 : index
    %0 = vector.load %arg1[%c0, %c0_0] : memref<8x256xbf16, #tpu.memory_space<vmem>>, vector<8x256xbf16>
    %c0_1 = arith.constant 0 : index
    %c0_2 = arith.constant 0 : index
    %1 = vector.load %arg2[%c0_1, %c0_2] : memref<256x128xbf16, #tpu.memory_space<vmem>>, vector<256x128xbf16>
    %cst = arith.constant dense<0.000000e+00> : vector<8x128xf32>
    %2 = tpu.matmul %0, %1, %cst {dimension_numbers = #tpu.dot_dimension_numbers<[1], [0], [0], [1], [0, 0, 1, 1], [], []>} : vector<8x256xbf16>, vector<256x128xbf16>, vector<8x128xf32> -> vector<8x128xf32>
    %c0_3 = arith.constant 0 : index
    %c0_4 = arith.constant 0 : index
    %3 = vector.load %arg3[%c0_3, %c0_4] : memref<1x128xf32, #tpu.memory_space<vmem>>, vector<1x128xf32>
    %4 = vector.broadcast %3 : vector<1x128xf32> to vector<8x128xf32>
    %5 = arith.addf %2, %4 : vector<8x128xf32>
    %c0_5 = arith.constant 0 : index
    %c0_6 = arith.constant 0 : index
    %6 = vector.load %arg4[%c0_5, %c0_6] : memref<8x128xf32, #tpu.memory_space<vmem>>, vector<8x128xf32>
    tpu.vector_store %arg4[%c0_5, %c0_6], %5 {strides = array<i32>} : memref<8x128xf32, #tpu.memory_space<vmem>>, vector<8x128xf32>,
    %c8_i32 = arith.constant 8 : i32
    %7 = arith.muli %arg0, %c8_i32 : i32
    %8 = tpu.iota {dimensions = array<i32: 0>} : vector<8x1xi32>
    %9 = vector.broadcast %7 : i32 to vector<8x1xi32>
    %10 = arith.addi %9, %8 : vector<8x1xi32>
    %c8_i32_7 = arith.constant 8 : i32
    %11 = vector.broadcast %c8_i32_7 : i32 to vector<8x1xi32>
    %12 = arith.cmpi slt, %10, %11 : vector<8x1xi32>
    %13 = arith.extui %12 : vector<8x1xi1> to vector<8x1xi32>
    %14 = arith.sitofp %13 : vector<8x1xi32> to vector<8x1xf32>
    %15 = vector.broadcast %14 : vector<8x1xf32> to vector<8x128xf32>
    %16 = arith.mulf %5, %15 : vector<8x128xf32>
    %cst_8 = arith.constant dense<0.000000e+00> : vector<128xf32>
    %17 = vector.multi_reduction <add>, %16, %cst_8 [0] : vector<8x128xf32> to vector<128xf32>
    %18 = vector.shape_cast %17 : vector<128xf32> to vector<1x128xf32>
    %19 = arith.mulf %16, %5 : vector<8x128xf32>
    %cst_9 = arith.constant dense<0.000000e+00> : vector<128xf32>
    %20 = vector.multi_reduction <add>, %19, %cst_9 [0] : vector<8x128xf32> to vector<128xf32>
    %21 = vector.shape_cast %20 : vector<128xf32> to vector<1x128xf32>
    %22 = tpu.iota {dimensions = array<i32: 0>} : vector<8x128xi32>
    %c0_i32 = arith.constant 0 : i32
    %23 = vector.broadcast %c0_i32 : i32 to vector<8x128xi32>
    %24 = arith.cmpi eq, %22, %23 : vector<8x128xi32>
    %cst_10 = arith.constant 0.000000e+00 : f32
    %25 = vector.shape_cast %18 : vector<1x128xf32> to vector<1x128xf32>
    %26 = vector.broadcast %25 : vector<1x128xf32> to vector<8x128xf32>
    %27 = vector.broadcast %cst_10 : f32 to vector<8x128xf32>
    %28 = arith.select %24, %26, %27 : vector<8x128xi1>, vector<8x128xf32>
    %c0_11 = arith.constant 0 : index
    %c0_12 = arith.constant 0 : index
    %29 = vector.load %arg5[%c0_11, %c0_12] : memref<8x128xf32, #tpu.memory_space<vmem>>, vector<8x128xf32>
    tpu.vector_store %arg5[%c0_11, %c0_12], %28 {strides = array<i32>} : memref<8x128xf32, #tpu.memory_space<vmem>>, vector<8x128xf32>,
    %c0_i32_13 = arith.constant 0 : i32
    %30 = vector.broadcast %c0_i32_13 : i32 to vector<8x128xi32>
    %31 = arith.cmpi eq, %22, %30 : vector<8x128xi32>
    %cst_14 = arith.constant 0.000000e+00 : f32
    %32 = vector.shape_cast %21 : vector<1x128xf32> to vector<1x128xf32>
    %33 = vector.broadcast %32 : vector<1x128xf32> to vector<8x128xf32>
    %34 = vector.broadcast %cst_14 : f32 to vector<8x128xf32>
    %35 = arith.select %31, %33, %34 : vector<8x128xi1>, vector<8x128xf32>
    %c0_15 = arith.constant 0 : index
    %c0_16 = arith.constant 0 : index
    %36 = vector.load %arg6[%c0_15, %c0_16] : memref<8x128xf32, #tpu.memory_space<vmem>>, vector<8x128xf32>
    tpu.vector_store %arg6[%c0_15, %c0_16], %35 {strides = array<i32>} : memref<8x128xf32, #tpu.memory_space<vmem>>, vector<8x128xf32>,
    return
  }
  func.func @transform_0(%arg0: i32) -> (i32, i32) {
    %c0_i32 = arith.constant 0 : i32
    %c0_i32_0 = arith.constant 0 : i32
    return %arg0, %c0_i32 : i32, i32
  }
  func.func @transform_1(%arg0: i32) -> (i32, i32) {
    %c0_i32 = arith.constant 0 : i32
    %c0_i32_0 = arith.constant 0 : i32
    %c0_i32_1 = arith.constant 0 : i32
    return %c0_i32, %c0_i32_0 : i32, i32
  }
  func.func @transform_2(%arg0: i32) -> (i32, i32) {
    %c0_i32 = arith.constant 0 : i32
    %c0_i32_0 = arith.constant 0 : i32
    %c0_i32_1 = arith.constant 0 : i32
    return %c0_i32, %c0_i32_0 : i32, i32
  }
  func.func @transform_3(%arg0: i32) -> (i32, i32) {
    %c0_i32 = arith.constant 0 : i32
    %c0_i32_0 = arith.constant 0 : i32
    return %arg0, %c0_i32 : i32, i32
  }
  func.func @transform_4(%arg0: i32) -> (i32, i32) {
    %c0_i32 = arith.constant 0 : i32
    %c0_i32_0 = arith.constant 0 : i32
    return %arg0, %c0_i32 : i32, i32
  }
  func.func @transform_5(%arg0: i32) -> (i32, i32) {
    %c0_i32 = arith.constant 0 : i32
    %c0_i32_0 = arith.constant 0 : i32
    return %arg0, %c0_i32 : i32, i32
  }
}

module attributes {stable_mosaic.version = 11 : i64} {
  func.func @_conv_stats_kernel(%arg0: i32, %arg1: memref<32x256xbf16, #tpu.memory_space<vmem>>, %arg2: memref<256x128xbf16, #tpu.memory_space<vmem>>, %arg3: memref<1x128xf32, #tpu.memory_space<vmem>>, %arg4: memref<32x128xf32, #tpu.memory_space<vmem>>, %arg5: memref<8x128xf32, #tpu.memory_space<vmem>>, %arg6: memref<8x128xf32, #tpu.memory_space<vmem>>) attributes {dimension_semantics = [#tpu.dimension_semantics<parallel>], iteration_bounds = array<i64: 1>, scalar_prefetch = 0 : i64, scratch_operands = 0 : i64, tpu.core_type = #tpu.core_type<tc>, window_params = [{transform_indices = @transform_0, window_bounds = array<i64: 32, 256>}, {pipeline_mode = #tpu.pipeline_mode<synchronous>, transform_indices = @transform_1, window_bounds = array<i64: 256, 128>}, {pipeline_mode = #tpu.pipeline_mode<synchronous>, transform_indices = @transform_2, window_bounds = array<i64: 1, 128>}, {transform_indices = @transform_3, window_bounds = array<i64: 32, 128>}, {transform_indices = @transform_4, window_bounds = array<i64: 8, 128>}, {transform_indices = @transform_5, window_bounds = array<i64: 8, 128>}]} {
    %c0 = arith.constant 0 : index
    %c0_0 = arith.constant 0 : index
    %0 = vector.load %arg1[%c0, %c0_0] : memref<32x256xbf16, #tpu.memory_space<vmem>>, vector<32x256xbf16>
    %c0_1 = arith.constant 0 : index
    %c0_2 = arith.constant 0 : index
    %1 = vector.load %arg2[%c0_1, %c0_2] : memref<256x128xbf16, #tpu.memory_space<vmem>>, vector<256x128xbf16>
    %cst = arith.constant dense<0.000000e+00> : vector<32x128xf32>
    %2 = tpu.matmul %0, %1, %cst {dimension_numbers = #tpu.dot_dimension_numbers<[1], [0], [0], [1], [0, 0, 1, 1], [], []>} : vector<32x256xbf16>, vector<256x128xbf16>, vector<32x128xf32> -> vector<32x128xf32>
    %c0_3 = arith.constant 0 : index
    %c0_4 = arith.constant 0 : index
    %3 = vector.load %arg3[%c0_3, %c0_4] : memref<1x128xf32, #tpu.memory_space<vmem>>, vector<1x128xf32>
    %4 = vector.broadcast %3 : vector<1x128xf32> to vector<32x128xf32>
    %5 = arith.addf %2, %4 : vector<32x128xf32>
    %c0_5 = arith.constant 0 : index
    %c0_6 = arith.constant 0 : index
    %6 = vector.load %arg4[%c0_5, %c0_6] : memref<32x128xf32, #tpu.memory_space<vmem>>, vector<32x128xf32>
    tpu.vector_store %arg4[%c0_5, %c0_6], %5 {strides = array<i32>} : memref<32x128xf32, #tpu.memory_space<vmem>>, vector<32x128xf32>,
    %c32_i32 = arith.constant 32 : i32
    %7 = arith.muli %arg0, %c32_i32 : i32
    %8 = tpu.iota {dimensions = array<i32: 0>} : vector<32x1xi32>
    %9 = vector.broadcast %7 : i32 to vector<32x1xi32>
    %10 = arith.addi %9, %8 : vector<32x1xi32>
    %c32_i32_7 = arith.constant 32 : i32
    %11 = vector.broadcast %c32_i32_7 : i32 to vector<32x1xi32>
    %12 = arith.cmpi slt, %10, %11 : vector<32x1xi32>
    %13 = arith.extui %12 : vector<32x1xi1> to vector<32x1xi32>
    %14 = arith.sitofp %13 : vector<32x1xi32> to vector<32x1xf32>
    %15 = vector.broadcast %14 : vector<32x1xf32> to vector<32x128xf32>
    %16 = arith.mulf %5, %15 : vector<32x128xf32>
    %cst_8 = arith.constant dense<0.000000e+00> : vector<128xf32>
    %17 = vector.multi_reduction <add>, %16, %cst_8 [0] : vector<32x128xf32> to vector<128xf32>
    %18 = vector.shape_cast %17 : vector<128xf32> to vector<1x128xf32>
    %19 = arith.mulf %16, %5 : vector<32x128xf32>
    %cst_9 = arith.constant dense<0.000000e+00> : vector<128xf32>
    %20 = vector.multi_reduction <add>, %19, %cst_9 [0] : vector<32x128xf32> to vector<128xf32>
    %21 = vector.shape_cast %20 : vector<128xf32> to vector<1x128xf32>
    %22 = tpu.iota {dimensions = array<i32: 0>} : vector<8x128xi32>
    %c0_i32 = arith.constant 0 : i32
    %23 = vector.broadcast %c0_i32 : i32 to vector<8x128xi32>
    %24 = arith.cmpi eq, %22, %23 : vector<8x128xi32>
    %cst_10 = arith.constant 0.000000e+00 : f32
    %25 = vector.shape_cast %18 : vector<1x128xf32> to vector<1x128xf32>
    %26 = vector.broadcast %25 : vector<1x128xf32> to vector<8x128xf32>
    %27 = vector.broadcast %cst_10 : f32 to vector<8x128xf32>
    %28 = arith.select %24, %26, %27 : vector<8x128xi1>, vector<8x128xf32>
    %c0_11 = arith.constant 0 : index
    %c0_12 = arith.constant 0 : index
    %29 = vector.load %arg5[%c0_11, %c0_12] : memref<8x128xf32, #tpu.memory_space<vmem>>, vector<8x128xf32>
    tpu.vector_store %arg5[%c0_11, %c0_12], %28 {strides = array<i32>} : memref<8x128xf32, #tpu.memory_space<vmem>>, vector<8x128xf32>,
    %c0_i32_13 = arith.constant 0 : i32
    %30 = vector.broadcast %c0_i32_13 : i32 to vector<8x128xi32>
    %31 = arith.cmpi eq, %22, %30 : vector<8x128xi32>
    %cst_14 = arith.constant 0.000000e+00 : f32
    %32 = vector.shape_cast %21 : vector<1x128xf32> to vector<1x128xf32>
    %33 = vector.broadcast %32 : vector<1x128xf32> to vector<8x128xf32>
    %34 = vector.broadcast %cst_14 : f32 to vector<8x128xf32>
    %35 = arith.select %31, %33, %34 : vector<8x128xi1>, vector<8x128xf32>
    %c0_15 = arith.constant 0 : index
    %c0_16 = arith.constant 0 : index
    %36 = vector.load %arg6[%c0_15, %c0_16] : memref<8x128xf32, #tpu.memory_space<vmem>>, vector<8x128xf32>
    tpu.vector_store %arg6[%c0_15, %c0_16], %35 {strides = array<i32>} : memref<8x128xf32, #tpu.memory_space<vmem>>, vector<8x128xf32>,
    return
  }
  func.func @transform_0(%arg0: i32) -> (i32, i32) {
    %c0_i32 = arith.constant 0 : i32
    %c0_i32_0 = arith.constant 0 : i32
    return %arg0, %c0_i32 : i32, i32
  }
  func.func @transform_1(%arg0: i32) -> (i32, i32) {
    %c0_i32 = arith.constant 0 : i32
    %c0_i32_0 = arith.constant 0 : i32
    %c0_i32_1 = arith.constant 0 : i32
    return %c0_i32, %c0_i32_0 : i32, i32
  }
  func.func @transform_2(%arg0: i32) -> (i32, i32) {
    %c0_i32 = arith.constant 0 : i32
    %c0_i32_0 = arith.constant 0 : i32
    %c0_i32_1 = arith.constant 0 : i32
    return %c0_i32, %c0_i32_0 : i32, i32
  }
  func.func @transform_3(%arg0: i32) -> (i32, i32) {
    %c0_i32 = arith.constant 0 : i32
    %c0_i32_0 = arith.constant 0 : i32
    return %arg0, %c0_i32 : i32, i32
  }
  func.func @transform_4(%arg0: i32) -> (i32, i32) {
    %c0_i32 = arith.constant 0 : i32
    %c0_i32_0 = arith.constant 0 : i32
    return %arg0, %c0_i32 : i32, i32
  }
  func.func @transform_5(%arg0: i32) -> (i32, i32) {
    %c0_i32 = arith.constant 0 : i32
    %c0_i32_0 = arith.constant 0 : i32
    return %arg0, %c0_i32 : i32, i32
  }
}

module attributes {stable_mosaic.version = 11 : i64} {
  func.func @_conv_stats_kernel(%arg0: i32, %arg1: memref<128x256xbf16, #tpu.memory_space<vmem>>, %arg2: memref<256x128xbf16, #tpu.memory_space<vmem>>, %arg3: memref<1x128xf32, #tpu.memory_space<vmem>>, %arg4: memref<128x128xf32, #tpu.memory_space<vmem>>, %arg5: memref<8x128xf32, #tpu.memory_space<vmem>>, %arg6: memref<8x128xf32, #tpu.memory_space<vmem>>) attributes {dimension_semantics = [#tpu.dimension_semantics<parallel>], iteration_bounds = array<i64: 1>, scalar_prefetch = 0 : i64, scratch_operands = 0 : i64, tpu.core_type = #tpu.core_type<tc>, window_params = [{transform_indices = @transform_0, window_bounds = array<i64: 128, 256>}, {pipeline_mode = #tpu.pipeline_mode<synchronous>, transform_indices = @transform_1, window_bounds = array<i64: 256, 128>}, {pipeline_mode = #tpu.pipeline_mode<synchronous>, transform_indices = @transform_2, window_bounds = array<i64: 1, 128>}, {transform_indices = @transform_3, window_bounds = array<i64: 128, 128>}, {transform_indices = @transform_4, window_bounds = array<i64: 8, 128>}, {transform_indices = @transform_5, window_bounds = array<i64: 8, 128>}]} {
    %c0 = arith.constant 0 : index
    %c0_0 = arith.constant 0 : index
    %0 = vector.load %arg1[%c0, %c0_0] : memref<128x256xbf16, #tpu.memory_space<vmem>>, vector<128x256xbf16>
    %c0_1 = arith.constant 0 : index
    %c0_2 = arith.constant 0 : index
    %1 = vector.load %arg2[%c0_1, %c0_2] : memref<256x128xbf16, #tpu.memory_space<vmem>>, vector<256x128xbf16>
    %cst = arith.constant dense<0.000000e+00> : vector<128x128xf32>
    %2 = tpu.matmul %0, %1, %cst {dimension_numbers = #tpu.dot_dimension_numbers<[1], [0], [0], [1], [0, 0, 1, 1], [], []>} : vector<128x256xbf16>, vector<256x128xbf16>, vector<128x128xf32> -> vector<128x128xf32>
    %c0_3 = arith.constant 0 : index
    %c0_4 = arith.constant 0 : index
    %3 = vector.load %arg3[%c0_3, %c0_4] : memref<1x128xf32, #tpu.memory_space<vmem>>, vector<1x128xf32>
    %4 = vector.broadcast %3 : vector<1x128xf32> to vector<128x128xf32>
    %5 = arith.addf %2, %4 : vector<128x128xf32>
    %c0_5 = arith.constant 0 : index
    %c0_6 = arith.constant 0 : index
    %6 = vector.load %arg4[%c0_5, %c0_6] : memref<128x128xf32, #tpu.memory_space<vmem>>, vector<128x128xf32>
    tpu.vector_store %arg4[%c0_5, %c0_6], %5 {strides = array<i32>} : memref<128x128xf32, #tpu.memory_space<vmem>>, vector<128x128xf32>,
    %c128_i32 = arith.constant 128 : i32
    %7 = arith.muli %arg0, %c128_i32 : i32
    %8 = tpu.iota {dimensions = array<i32: 0>} : vector<128x1xi32>
    %9 = vector.broadcast %7 : i32 to vector<128x1xi32>
    %10 = arith.addi %9, %8 : vector<128x1xi32>
    %c128_i32_7 = arith.constant 128 : i32
    %11 = vector.broadcast %c128_i32_7 : i32 to vector<128x1xi32>
    %12 = arith.cmpi slt, %10, %11 : vector<128x1xi32>
    %13 = arith.extui %12 : vector<128x1xi1> to vector<128x1xi32>
    %14 = arith.sitofp %13 : vector<128x1xi32> to vector<128x1xf32>
    %15 = vector.broadcast %14 : vector<128x1xf32> to vector<128x128xf32>
    %16 = arith.mulf %5, %15 : vector<128x128xf32>
    %cst_8 = arith.constant dense<0.000000e+00> : vector<128xf32>
    %17 = vector.multi_reduction <add>, %16, %cst_8 [0] : vector<128x128xf32> to vector<128xf32>
    %18 = vector.shape_cast %17 : vector<128xf32> to vector<1x128xf32>
    %19 = arith.mulf %16, %5 : vector<128x128xf32>
    %cst_9 = arith.constant dense<0.000000e+00> : vector<128xf32>
    %20 = vector.multi_reduction <add>, %19, %cst_9 [0] : vector<128x128xf32> to vector<128xf32>
    %21 = vector.shape_cast %20 : vector<128xf32> to vector<1x128xf32>
    %22 = tpu.iota {dimensions = array<i32: 0>} : vector<8x128xi32>
    %c0_i32 = arith.constant 0 : i32
    %23 = vector.broadcast %c0_i32 : i32 to vector<8x128xi32>
    %24 = arith.cmpi eq, %22, %23 : vector<8x128xi32>
    %cst_10 = arith.constant 0.000000e+00 : f32
    %25 = vector.shape_cast %18 : vector<1x128xf32> to vector<1x128xf32>
    %26 = vector.broadcast %25 : vector<1x128xf32> to vector<8x128xf32>
    %27 = vector.broadcast %cst_10 : f32 to vector<8x128xf32>
    %28 = arith.select %24, %26, %27 : vector<8x128xi1>, vector<8x128xf32>
    %c0_11 = arith.constant 0 : index
    %c0_12 = arith.constant 0 : index
    %29 = vector.load %arg5[%c0_11, %c0_12] : memref<8x128xf32, #tpu.memory_space<vmem>>, vector<8x128xf32>
    tpu.vector_store %arg5[%c0_11, %c0_12], %28 {strides = array<i32>} : memref<8x128xf32, #tpu.memory_space<vmem>>, vector<8x128xf32>,
    %c0_i32_13 = arith.constant 0 : i32
    %30 = vector.broadcast %c0_i32_13 : i32 to vector<8x128xi32>
    %31 = arith.cmpi eq, %22, %30 : vector<8x128xi32>
    %cst_14 = arith.constant 0.000000e+00 : f32
    %32 = vector.shape_cast %21 : vector<1x128xf32> to vector<1x128xf32>
    %33 = vector.broadcast %32 : vector<1x128xf32> to vector<8x128xf32>
    %34 = vector.broadcast %cst_14 : f32 to vector<8x128xf32>
    %35 = arith.select %31, %33, %34 : vector<8x128xi1>, vector<8x128xf32>
    %c0_15 = arith.constant 0 : index
    %c0_16 = arith.constant 0 : index
    %36 = vector.load %arg6[%c0_15, %c0_16] : memref<8x128xf32, #tpu.memory_space<vmem>>, vector<8x128xf32>
    tpu.vector_store %arg6[%c0_15, %c0_16], %35 {strides = array<i32>} : memref<8x128xf32, #tpu.memory_space<vmem>>, vector<8x128xf32>,
    return
  }
  func.func @transform_0(%arg0: i32) -> (i32, i32) {
    %c0_i32 = arith.constant 0 : i32
    %c0_i32_0 = arith.constant 0 : i32
    return %arg0, %c0_i32 : i32, i32
  }
  func.func @transform_1(%arg0: i32) -> (i32, i32) {
    %c0_i32 = arith.constant 0 : i32
    %c0_i32_0 = arith.constant 0 : i32
    %c0_i32_1 = arith.constant 0 : i32
    return %c0_i32, %c0_i32_0 : i32, i32
  }
  func.func @transform_2(%arg0: i32) -> (i32, i32) {
    %c0_i32 = arith.constant 0 : i32
    %c0_i32_0 = arith.constant 0 : i32
    %c0_i32_1 = arith.constant 0 : i32
    return %c0_i32, %c0_i32_0 : i32, i32
  }
  func.func @transform_3(%arg0: i32) -> (i32, i32) {
    %c0_i32 = arith.constant 0 : i32
    %c0_i32_0 = arith.constant 0 : i32
    return %arg0, %c0_i32 : i32, i32
  }
  func.func @transform_4(%arg0: i32) -> (i32, i32) {
    %c0_i32 = arith.constant 0 : i32
    %c0_i32_0 = arith.constant 0 : i32
    return %arg0, %c0_i32 : i32, i32
  }
  func.func @transform_5(%arg0: i32) -> (i32, i32) {
    %c0_i32 = arith.constant 0 : i32
    %c0_i32_0 = arith.constant 0 : i32
    return %arg0, %c0_i32 : i32, i32
  }
}

module attributes {stable_mosaic.version = 11 : i64} {
  func.func @_conv_stats_kernel(%arg0: i32, %arg1: memref<512x256xbf16, #tpu.memory_space<vmem>>, %arg2: memref<256x128xbf16, #tpu.memory_space<vmem>>, %arg3: memref<1x128xf32, #tpu.memory_space<vmem>>, %arg4: memref<512x128xf32, #tpu.memory_space<vmem>>, %arg5: memref<8x128xf32, #tpu.memory_space<vmem>>, %arg6: memref<8x128xf32, #tpu.memory_space<vmem>>) attributes {dimension_semantics = [#tpu.dimension_semantics<parallel>], iteration_bounds = array<i64: 1>, scalar_prefetch = 0 : i64, scratch_operands = 0 : i64, tpu.core_type = #tpu.core_type<tc>, window_params = [{transform_indices = @transform_0, window_bounds = array<i64: 512, 256>}, {pipeline_mode = #tpu.pipeline_mode<synchronous>, transform_indices = @transform_1, window_bounds = array<i64: 256, 128>}, {pipeline_mode = #tpu.pipeline_mode<synchronous>, transform_indices = @transform_2, window_bounds = array<i64: 1, 128>}, {transform_indices = @transform_3, window_bounds = array<i64: 512, 128>}, {transform_indices = @transform_4, window_bounds = array<i64: 8, 128>}, {transform_indices = @transform_5, window_bounds = array<i64: 8, 128>}]} {
    %c0 = arith.constant 0 : index
    %c0_0 = arith.constant 0 : index
    %0 = vector.load %arg1[%c0, %c0_0] : memref<512x256xbf16, #tpu.memory_space<vmem>>, vector<512x256xbf16>
    %c0_1 = arith.constant 0 : index
    %c0_2 = arith.constant 0 : index
    %1 = vector.load %arg2[%c0_1, %c0_2] : memref<256x128xbf16, #tpu.memory_space<vmem>>, vector<256x128xbf16>
    %cst = arith.constant dense<0.000000e+00> : vector<512x128xf32>
    %2 = tpu.matmul %0, %1, %cst {dimension_numbers = #tpu.dot_dimension_numbers<[1], [0], [0], [1], [0, 0, 1, 1], [], []>} : vector<512x256xbf16>, vector<256x128xbf16>, vector<512x128xf32> -> vector<512x128xf32>
    %c0_3 = arith.constant 0 : index
    %c0_4 = arith.constant 0 : index
    %3 = vector.load %arg3[%c0_3, %c0_4] : memref<1x128xf32, #tpu.memory_space<vmem>>, vector<1x128xf32>
    %4 = vector.broadcast %3 : vector<1x128xf32> to vector<512x128xf32>
    %5 = arith.addf %2, %4 : vector<512x128xf32>
    %c0_5 = arith.constant 0 : index
    %c0_6 = arith.constant 0 : index
    %6 = vector.load %arg4[%c0_5, %c0_6] : memref<512x128xf32, #tpu.memory_space<vmem>>, vector<512x128xf32>
    tpu.vector_store %arg4[%c0_5, %c0_6], %5 {strides = array<i32>} : memref<512x128xf32, #tpu.memory_space<vmem>>, vector<512x128xf32>,
    %c512_i32 = arith.constant 512 : i32
    %7 = arith.muli %arg0, %c512_i32 : i32
    %8 = tpu.iota {dimensions = array<i32: 0>} : vector<512x1xi32>
    %9 = vector.broadcast %7 : i32 to vector<512x1xi32>
    %10 = arith.addi %9, %8 : vector<512x1xi32>
    %c512_i32_7 = arith.constant 512 : i32
    %11 = vector.broadcast %c512_i32_7 : i32 to vector<512x1xi32>
    %12 = arith.cmpi slt, %10, %11 : vector<512x1xi32>
    %13 = arith.extui %12 : vector<512x1xi1> to vector<512x1xi32>
    %14 = arith.sitofp %13 : vector<512x1xi32> to vector<512x1xf32>
    %15 = vector.broadcast %14 : vector<512x1xf32> to vector<512x128xf32>
    %16 = arith.mulf %5, %15 : vector<512x128xf32>
    %cst_8 = arith.constant dense<0.000000e+00> : vector<128xf32>
    %17 = vector.multi_reduction <add>, %16, %cst_8 [0] : vector<512x128xf32> to vector<128xf32>
    %18 = vector.shape_cast %17 : vector<128xf32> to vector<1x128xf32>
    %19 = arith.mulf %16, %5 : vector<512x128xf32>
    %cst_9 = arith.constant dense<0.000000e+00> : vector<128xf32>
    %20 = vector.multi_reduction <add>, %19, %cst_9 [0] : vector<512x128xf32> to vector<128xf32>
    %21 = vector.shape_cast %20 : vector<128xf32> to vector<1x128xf32>
    %22 = tpu.iota {dimensions = array<i32: 0>} : vector<8x128xi32>
    %c0_i32 = arith.constant 0 : i32
    %23 = vector.broadcast %c0_i32 : i32 to vector<8x128xi32>
    %24 = arith.cmpi eq, %22, %23 : vector<8x128xi32>
    %cst_10 = arith.constant 0.000000e+00 : f32
    %25 = vector.shape_cast %18 : vector<1x128xf32> to vector<1x128xf32>
    %26 = vector.broadcast %25 : vector<1x128xf32> to vector<8x128xf32>
    %27 = vector.broadcast %cst_10 : f32 to vector<8x128xf32>
    %28 = arith.select %24, %26, %27 : vector<8x128xi1>, vector<8x128xf32>
    %c0_11 = arith.constant 0 : index
    %c0_12 = arith.constant 0 : index
    %29 = vector.load %arg5[%c0_11, %c0_12] : memref<8x128xf32, #tpu.memory_space<vmem>>, vector<8x128xf32>
    tpu.vector_store %arg5[%c0_11, %c0_12], %28 {strides = array<i32>} : memref<8x128xf32, #tpu.memory_space<vmem>>, vector<8x128xf32>,
    %c0_i32_13 = arith.constant 0 : i32
    %30 = vector.broadcast %c0_i32_13 : i32 to vector<8x128xi32>
    %31 = arith.cmpi eq, %22, %30 : vector<8x128xi32>
    %cst_14 = arith.constant 0.000000e+00 : f32
    %32 = vector.shape_cast %21 : vector<1x128xf32> to vector<1x128xf32>
    %33 = vector.broadcast %32 : vector<1x128xf32> to vector<8x128xf32>
    %34 = vector.broadcast %cst_14 : f32 to vector<8x128xf32>
    %35 = arith.select %31, %33, %34 : vector<8x128xi1>, vector<8x128xf32>
    %c0_15 = arith.constant 0 : index
    %c0_16 = arith.constant 0 : index
    %36 = vector.load %arg6[%c0_15, %c0_16] : memref<8x128xf32, #tpu.memory_space<vmem>>, vector<8x128xf32>
    tpu.vector_store %arg6[%c0_15, %c0_16], %35 {strides = array<i32>} : memref<8x128xf32, #tpu.memory_space<vmem>>, vector<8x128xf32>,
    return
  }
  func.func @transform_0(%arg0: i32) -> (i32, i32) {
    %c0_i32 = arith.constant 0 : i32
    %c0_i32_0 = arith.constant 0 : i32
    return %arg0, %c0_i32 : i32, i32
  }
  func.func @transform_1(%arg0: i32) -> (i32, i32) {
    %c0_i32 = arith.constant 0 : i32
    %c0_i32_0 = arith.constant 0 : i32
    %c0_i32_1 = arith.constant 0 : i32
    return %c0_i32, %c0_i32_0 : i32, i32
  }
  func.func @transform_2(%arg0: i32) -> (i32, i32) {
    %c0_i32 = arith.constant 0 : i32
    %c0_i32_0 = arith.constant 0 : i32
    %c0_i32_1 = arith.constant 0 : i32
    return %c0_i32, %c0_i32_0 : i32, i32
  }
  func.func @transform_3(%arg0: i32) -> (i32, i32) {
    %c0_i32 = arith.constant 0 : i32
    %c0_i32_0 = arith.constant 0 : i32
    return %arg0, %c0_i32 : i32, i32
  }
  func.func @transform_4(%arg0: i32) -> (i32, i32) {
    %c0_i32 = arith.constant 0 : i32
    %c0_i32_0 = arith.constant 0 : i32
    return %arg0, %c0_i32 : i32, i32
  }
  func.func @transform_5(%arg0: i32) -> (i32, i32) {
    %c0_i32 = arith.constant 0 : i32
    %c0_i32_0 = arith.constant 0 : i32
    return %arg0, %c0_i32 : i32, i32
  }
}

</mosaic_0001>

<bundles_post_ra>
// kernel: rsu7_forward.29
= control target key start
LH: loop header
LB: loop body
LE: loop exit
PB: predicated region body
PF: predicated region fallthrough
CT: control target
= control target key end

     0   :  { %s896_s0 = inlined_call_operand.vmem [shape: f32[512,128], index: 0, kind: input, shape index: {}, may-alias: {0,3}]   ;;  %s897_s1 = inlined_call_operand.vmem [shape: f32[1,128], index: 1, kind: input, shape index: {}]   ;;  %s898_s2 = inlined_call_operand.vmem [shape: f32[1,128], index: 2, kind: input, shape index: {}]   ;;  %s899_s3 = inlined_call_operand.vmem [shape: f32[512,128], index: 3, kind: output, shape index: {}, may-alias: {0,3}]  }
   0x1   :  { %v14_v0 = vld [vmem:[%s896_s0] sm:$0xff]  ;;  %v15_v4 = vld [vmem:[%s896_s0 + $0x8] sm:$0xff]  ;;  %v16_v5 = vld [vmem:[%s896_s0 + $0x10] sm:$0xff] }
   0x2   :  { %v380_v1 = vld [vmem:[%s897_s1] ss:$0 sm:$0xff]  ;;  %v17_v6 = vld [vmem:[%s896_s0 + $0x18] sm:$0xff]  ;;  %v19_v11 = vld [vmem:[%s896_s0 + $0x28] sm:$0xff] }
   0x3   :  { %v385_v2 = vld [vmem:[%s898_s2] ss:$0 sm:$0xff]  ;;  %v85_v3 = vmul.f32 %v380_v1, %v14_v0  ;;  %v86_v7 = vmul.f32 %v380_v1, %v15_v4  ;;  %v87_v8 = vmul.f32 %v380_v1, %v16_v5  ;;  %v88_v9 = vmul.f32 %v380_v1, %v17_v6  ;;  %v20_v12 = vld [vmem:[%s896_s0 + $0x30] sm:$0xff]  ;;  %v21_v17 = vld [vmem:[%s896_s0 + $0x38] sm:$0xff] }
   0x4   :  { %v18_v10 = vld [vmem:[%s896_s0 + $0x20] sm:$0xff]  ;;  %v90_v15 = vmul.f32 %v380_v1, %v19_v11  ;;  %v91_v16 = vmul.f32 %v380_v1, %v20_v12  ;;  %v92_v21 = vmul.f32 %v380_v1, %v21_v17  ;;  %v23_v27 = vld [vmem:[%s896_s0 + $0x48] sm:$0xff]  ;;  %v24_v28 = vld [vmem:[%s896_s0 + $0x50] sm:$0xff] }
   0x5   :  { %v156_v13 = vadd.f32 %v385_v2, %v85_v3  ;;  %v89_v14 = vmul.f32 %v380_v1, %v18_v10  ;;  %v157_v18 = vadd.f32 %v385_v2, %v86_v7  ;;  %v158_v19 = vadd.f32 %v385_v2, %v87_v8  ;;  %v22_v22 = vld [vmem:[%s896_s0 + $0x40] sm:$0xff]  ;;  %v25_v29 = vld [vmem:[%s896_s0 + $0x58] sm:$0xff]  ;;  %v27_v35 = vld [vmem:[%s896_s0 + $0x68] sm:$0xff] }
   0x6   :  { %v159_v20 = vadd.f32 %v385_v2, %v88_v9  ;;  %v161_v25 = vadd.f32 %v385_v2, %v90_v15  ;;  %v162_v26 = vadd.f32 %v385_v2, %v91_v16  ;;  %v163_v33 = vadd.f32 %v385_v2, %v92_v21  ;;  %v26_v34 = vld [vmem:[%s896_s0 + $0x60] sm:$0xff]  ;;  %v28_v36 = vld [vmem:[%s896_s0 + $0x70] sm:$0xff] }
   0x7   :  { %v220_v23 = vmax.f32 %v156_v13, 0.0  ;;  %v160_v24 = vadd.f32 %v385_v2, %v89_v14  ;;  %v221_v30 = vmax.f32 %v157_v18, 0.0  ;;  %v222_v31 = vmax.f32 %v158_v19, 0.0 }
   0x8   :  { %v223_v32 = vmax.f32 %v159_v20, 0.0  ;;  %v225_v38 = vmax.f32 %v161_v25, 0.0  ;;  %v226_v39 = vmax.f32 %v162_v26, 0.0  ;;  %v93_v40 = vmul.f32 %v380_v1, %v22_v22 }
   0x9   :  { %284 = vst [vmem:[%s899_s3] sm:$0xff] %v220_v23  ;;  %v224_v37 = vmax.f32 %v160_v24, 0.0  ;;  %v227_v42 = vmax.f32 %v163_v33, 0.0  ;;  %v94_v43 = vmul.f32 %v380_v1, %v23_v27  ;;  %v95_v44 = vmul.f32 %v380_v1, %v24_v28 }
   0xa   :  { %v96_v45 = vmul.f32 %v380_v1, %v25_v29  ;;  %v164_v46 = vadd.f32 %v385_v2, %v93_v40  ;;  %v97_v47 = vmul.f32 %v380_v1, %v26_v34  ;;  %v98_v48 = vmul.f32 %v380_v1, %v27_v35 }
   0xb   :  { %v99_v49 = vmul.f32 %v380_v1, %v28_v36  ;;  %v165_v50 = vadd.f32 %v385_v2, %v94_v43  ;;  %v166_v51 = vadd.f32 %v385_v2, %v95_v44 }
   0xc   :  { %v167_v52 = vadd.f32 %v385_v2, %v96_v45  ;;  %v228_v55 = vmax.f32 %v164_v46, 0.0  ;;  %v168_v56 = vadd.f32 %v385_v2, %v97_v47  ;;  %v169_v57 = vadd.f32 %v385_v2, %v98_v48 }
   0xd   :  { %v170_v58 = vadd.f32 %v385_v2, %v99_v49  ;;  %v229_v62 = vmax.f32 %v165_v50, 0.0  ;;  %v230_v63 = vmax.f32 %v166_v51, 0.0 }
   0xe   :  { %v231_v0 = vmax.f32 %v167_v52, 0.0  ;;  %v232_v7 = vmax.f32 %v168_v56, 0.0  ;;  %v233_v8 = vmax.f32 %v169_v57, 0.0 }
   0xf   :  { %v234_v9 = vmax.f32 %v170_v58, 0.0 }
  0x10   :  { %v29_v41 = vld [vmem:[%s896_s0 + $0x78] sm:$0xff] }
  0x11   :  { %285 = vst [vmem:[%s899_s3 + $0x8] sm:$0xff] %v221_v30  ;;  %286 = vst [vmem:[%s899_s3 + $0x10] sm:$0xff] %v222_v31  ;;  %v100_v53 = vmul.f32 %v380_v1, %v29_v41 }
  0x12   :  { %287 = vst [vmem:[%s899_s3 + $0x18] sm:$0xff] %v223_v32  ;;  %288 = vst [vmem:[%s899_s3 + $0x20] sm:$0xff] %v224_v37 }
  0x13   :  { %289 = vst [vmem:[%s899_s3 + $0x28] sm:$0xff] %v225_v38  ;;  %290 = vst [vmem:[%s899_s3 + $0x30] sm:$0xff] %v226_v39  ;;  %v171_v3 = vadd.f32 %v385_v2, %v100_v53 }
  0x14   :  { %291 = vst [vmem:[%s899_s3 + $0x38] sm:$0xff] %v227_v42 }
  0x15   :  { %v235_v12 = vmax.f32 %v171_v3, 0.0 }
  0x1b   :  { %v30_v54 = vld [vmem:[%s896_s0 + $0x80] sm:$0xff]  ;;  %v31_v59 = vld [vmem:[%s896_s0 + $0x88] sm:$0xff]  ;;  %v32_v60 = vld [vmem:[%s896_s0 + $0x90] sm:$0xff] }
  0x1c   :  { %v33_v61 = vld [vmem:[%s896_s0 + $0x98] sm:$0xff]  ;;  %v34_v4 = vld [vmem:[%s896_s0 + $0xa0] sm:$0xff]  ;;  %v35_v5 = vld [vmem:[%s896_s0 + $0xa8] sm:$0xff]  ;;  %v101_v10 = vmul.f32 %v380_v1, %v30_v54  ;;  %v102_v13 = vmul.f32 %v380_v1, %v31_v59  ;;  %v103_v14 = vmul.f32 %v380_v1, %v32_v60 }
  0x1d   :  { %v36_v6 = vld [vmem:[%s896_s0 + $0xb0] sm:$0xff]  ;;  %v104_v15 = vmul.f32 %v380_v1, %v33_v61  ;;  %v105_v17 = vmul.f32 %v380_v1, %v34_v4  ;;  %v106_v18 = vmul.f32 %v380_v1, %v35_v5 }
  0x1e   :  { %292 = vst [vmem:[%s899_s3 + $0x40] sm:$0xff] %v228_v55  ;;  %v172_v16 = vadd.f32 %v385_v2, %v101_v10  ;;  %v107_v19 = vmul.f32 %v380_v1, %v36_v6  ;;  %v173_v20 = vadd.f32 %v385_v2, %v102_v13  ;;  %v174_v21 = vadd.f32 %v385_v2, %v103_v14 }
  0x1f   :  { %v175_v22 = vadd.f32 %v385_v2, %v104_v15  ;;  %v176_v26 = vadd.f32 %v385_v2, %v105_v17  ;;  %v177_v27 = vadd.f32 %v385_v2, %v106_v18 }
  0x20   :  { %v236_v25 = vmax.f32 %v172_v16, 0.0  ;;  %v178_v28 = vadd.f32 %v385_v2, %v107_v19  ;;  %v237_v32 = vmax.f32 %v173_v20, 0.0  ;;  %v238_v33 = vmax.f32 %v174_v21, 0.0 }
  0x21   :  { %v239_v34 = vmax.f32 %v175_v22, 0.0  ;;  %v240_v39 = vmax.f32 %v176_v26, 0.0  ;;  %v241_v40 = vmax.f32 %v177_v27, 0.0 }
  0x22   :  { %v242_v41 = vmax.f32 %v178_v28, 0.0 }
  0x25   :  { %v37_v11 = vld [vmem:[%s896_s0 + $0xb8] sm:$0xff] }
  0x26   :  { %293 = vst [vmem:[%s899_s3 + $0x48] sm:$0xff] %v229_v62  ;;  %294 = vst [vmem:[%s899_s3 + $0x50] sm:$0xff] %v230_v63  ;;  %v108_v23 = vmul.f32 %v380_v1, %v37_v11 }
  0x27   :  { %295 = vst [vmem:[%s899_s3 + $0x58] sm:$0xff] %v231_v0  ;;  %296 = vst [vmem:[%s899_s3 + $0x60] sm:$0xff] %v232_v7 }
  0x28   :  { %297 = vst [vmem:[%s899_s3 + $0x68] sm:$0xff] %v233_v8  ;;  %298 = vst [vmem:[%s899_s3 + $0x70] sm:$0xff] %v234_v9  ;;  %v179_v35 = vadd.f32 %v385_v2, %v108_v23 }
  0x29   :  { %299 = vst [vmem:[%s899_s3 + $0x78] sm:$0xff] %v235_v12 }
  0x2a   :  { %v243_v44 = vmax.f32 %v179_v35, 0.0 }
  0x30   :  { %v38_v24 = vld [vmem:[%s896_s0 + $0xc0] sm:$0xff]  ;;  %v39_v29 = vld [vmem:[%s896_s0 + $0xc8] sm:$0xff]  ;;  %v40_v30 = vld [vmem:[%s896_s0 + $0xd0] sm:$0xff] }
  0x31   :  { %v41_v31 = vld [vmem:[%s896_s0 + $0xd8] sm:$0xff]  ;;  %v42_v36 = vld [vmem:[%s896_s0 + $0xe0] sm:$0xff]  ;;  %v43_v37 = vld [vmem:[%s896_s0 + $0xe8] sm:$0xff]  ;;  %v109_v42 = vmul.f32 %v380_v1, %v38_v24  ;;  %v110_v45 = vmul.f32 %v380_v1, %v39_v29  ;;  %v111_v46 = vmul.f32 %v380_v1, %v40_v30 }
  0x32   :  { %v44_v38 = vld [vmem:[%s896_s0 + $0xf0] sm:$0xff]  ;;  %v112_v47 = vmul.f32 %v380_v1, %v41_v31  ;;  %v113_v49 = vmul.f32 %v380_v1, %v42_v36  ;;  %v114_v50 = vmul.f32 %v380_v1, %v43_v37 }
  0x33   :  { %300 = vst [vmem:[%s899_s3 + $0x80] sm:$0xff] %v236_v25  ;;  %v180_v48 = vadd.f32 %v385_v2, %v109_v42  ;;  %v115_v51 = vmul.f32 %v380_v1, %v44_v38  ;;  %v181_v52 = vadd.f32 %v385_v2, %v110_v45  ;;  %v182_v53 = vadd.f32 %v385_v2, %v111_v46 }
  0x34   :  { %v183_v54 = vadd.f32 %v385_v2, %v112_v47  ;;  %v184_v58 = vadd.f32 %v385_v2, %v113_v49  ;;  %v185_v59 = vadd.f32 %v385_v2, %v114_v50 }
  0x35   :  { %v244_v57 = vmax.f32 %v180_v48, 0.0  ;;  %v186_v60 = vadd.f32 %v385_v2, %v115_v51  ;;  %v245_v0 = vmax.f32 %v181_v52, 0.0  ;;  %v246_v3 = vmax.f32 %v182_v53, 0.0 }
  0x36   :  { %v247_v4 = vmax.f32 %v183_v54, 0.0  ;;  %v248_v9 = vmax.f32 %v184_v58, 0.0  ;;  %v249_v10 = vmax.f32 %v185_v59, 0.0 }
  0x37   :  { %v250_v11 = vmax.f32 %v186_v60, 0.0 }
  0x3a   :  { %v45_v43 = vld [vmem:[%s896_s0 + $0xf8] sm:$0xff] }
  0x3b   :  { %301 = vst [vmem:[%s899_s3 + $0x88] sm:$0xff] %v237_v32  ;;  %302 = vst [vmem:[%s899_s3 + $0x90] sm:$0xff] %v238_v33  ;;  %v116_v55 = vmul.f32 %v380_v1, %v45_v43 }
  0x3c   :  { %303 = vst [vmem:[%s899_s3 + $0x98] sm:$0xff] %v239_v34  ;;  %304 = vst [vmem:[%s899_s3 + $0xa0] sm:$0xff] %v240_v39 }
  0x3d   :  { %305 = vst [vmem:[%s899_s3 + $0xa8] sm:$0xff] %v241_v40  ;;  %306 = vst [vmem:[%s899_s3 + $0xb0] sm:$0xff] %v242_v41  ;;  %v187_v5 = vadd.f32 %v385_v2, %v116_v55 }
  0x3e   :  { %307 = vst [vmem:[%s899_s3 + $0xb8] sm:$0xff] %v243_v44 }
  0x3f   :  { %v251_v14 = vmax.f32 %v187_v5, 0.0 }
  0x45   :  { %v46_v56 = vld [vmem:[%s896_s0 + $0x100] sm:$0xff]  ;;  %v47_v61 = vld [vmem:[%s896_s0 + $0x108] sm:$0xff]  ;;  %v48_v62 = vld [vmem:[%s896_s0 + $0x110] sm:$0xff] }
  0x46   :  { %v49_v63 = vld [vmem:[%s896_s0 + $0x118] sm:$0xff]  ;;  %v50_v6 = vld [vmem:[%s896_s0 + $0x120] sm:$0xff]  ;;  %v51_v7 = vld [vmem:[%s896_s0 + $0x128] sm:$0xff]  ;;  %v117_v12 = vmul.f32 %v380_v1, %v46_v56  ;;  %v118_v15 = vmul.f32 %v380_v1, %v47_v61  ;;  %v119_v16 = vmul.f32 %v380_v1, %v48_v62 }
  0x47   :  { %v52_v8 = vld [vmem:[%s896_s0 + $0x130] sm:$0xff]  ;;  %v120_v17 = vmul.f32 %v380_v1, %v49_v63  ;;  %v121_v19 = vmul.f32 %v380_v1, %v50_v6  ;;  %v122_v20 = vmul.f32 %v380_v1, %v51_v7 }
  0x48   :  { %308 = vst [vmem:[%s899_s3 + $0xc0] sm:$0xff] %v244_v57  ;;  %v188_v18 = vadd.f32 %v385_v2, %v117_v12  ;;  %v123_v21 = vmul.f32 %v380_v1, %v52_v8  ;;  %v189_v22 = vadd.f32 %v385_v2, %v118_v15  ;;  %v190_v23 = vadd.f32 %v385_v2, %v119_v16 }
  0x49   :  { %v191_v24 = vadd.f32 %v385_v2, %v120_v17  ;;  %v192_v28 = vadd.f32 %v385_v2, %v121_v19  ;;  %v193_v29 = vadd.f32 %v385_v2, %v122_v20 }
  0x4a   :  { %v252_v27 = vmax.f32 %v188_v18, 0.0  ;;  %v194_v30 = vadd.f32 %v385_v2, %v123_v21  ;;  %v253_v34 = vmax.f32 %v189_v22, 0.0  ;;  %v254_v35 = vmax.f32 %v190_v23, 0.0 }
  0x4b   :  { %v255_v36 = vmax.f32 %v191_v24, 0.0  ;;  %v256_v41 = vmax.f32 %v192_v28, 0.0  ;;  %v257_v42 = vmax.f32 %v193_v29, 0.0 }
  0x4c   :  { %v258_v43 = vmax.f32 %v194_v30, 0.0 }
  0x4f   :  { %v53_v13 = vld [vmem:[%s896_s0 + $0x138] sm:$0xff] }
  0x50   :  { %309 = vst [vmem:[%s899_s3 + $0xc8] sm:$0xff] %v245_v0  ;;  %310 = vst [vmem:[%s899_s3 + $0xd0] sm:$0xff] %v246_v3  ;;  %v124_v25 = vmul.f32 %v380_v1, %v53_v13 }
  0x51   :  { %311 = vst [vmem:[%s899_s3 + $0xd8] sm:$0xff] %v247_v4  ;;  %312 = vst [vmem:[%s899_s3 + $0xe0] sm:$0xff] %v248_v9 }
  0x52   :  { %313 = vst [vmem:[%s899_s3 + $0xe8] sm:$0xff] %v249_v10  ;;  %314 = vst [vmem:[%s899_s3 + $0xf0] sm:$0xff] %v250_v11  ;;  %v195_v37 = vadd.f32 %v385_v2, %v124_v25 }
  0x53   :  { %315 = vst [vmem:[%s899_s3 + $0xf8] sm:$0xff] %v251_v14 }
  0x54   :  { %v259_v46 = vmax.f32 %v195_v37, 0.0 }
  0x5a   :  { %v54_v26 = vld [vmem:[%s896_s0 + $0x140] sm:$0xff]  ;;  %v55_v31 = vld [vmem:[%s896_s0 + $0x148] sm:$0xff]  ;;  %v56_v32 = vld [vmem:[%s896_s0 + $0x150] sm:$0xff] }
  0x5b   :  { %v57_v33 = vld [vmem:[%s896_s0 + $0x158] sm:$0xff]  ;;  %v58_v38 = vld [vmem:[%s896_s0 + $0x160] sm:$0xff]  ;;  %v59_v39 = vld [vmem:[%s896_s0 + $0x168] sm:$0xff]  ;;  %v125_v44 = vmul.f32 %v380_v1, %v54_v26  ;;  %v126_v47 = vmul.f32 %v380_v1, %v55_v31  ;;  %v127_v48 = vmul.f32 %v380_v1, %v56_v32 }
  0x5c   :  { %v60_v40 = vld [vmem:[%s896_s0 + $0x170] sm:$0xff]  ;;  %v128_v49 = vmul.f32 %v380_v1, %v57_v33  ;;  %v129_v51 = vmul.f32 %v380_v1, %v58_v38  ;;  %v130_v52 = vmul.f32 %v380_v1, %v59_v39 }
  0x5d   :  { %316 = vst [vmem:[%s899_s3 + $0x100] sm:$0xff] %v252_v27  ;;  %v196_v50 = vadd.f32 %v385_v2, %v125_v44  ;;  %v131_v53 = vmul.f32 %v380_v1, %v60_v40  ;;  %v197_v54 = vadd.f32 %v385_v2, %v126_v47  ;;  %v198_v55 = vadd.f32 %v385_v2, %v127_v48 }
  0x5e   :  { %v199_v56 = vadd.f32 %v385_v2, %v128_v49  ;;  %v200_v60 = vadd.f32 %v385_v2, %v129_v51  ;;  %v201_v61 = vadd.f32 %v385_v2, %v130_v52 }
  0x5f   :  { %v260_v59 = vmax.f32 %v196_v50, 0.0  ;;  %v202_v62 = vadd.f32 %v385_v2, %v131_v53  ;;  %v261_v4 = vmax.f32 %v197_v54, 0.0  ;;  %v262_v5 = vmax.f32 %v198_v55, 0.0 }
  0x60   :  { %v263_v6 = vmax.f32 %v199_v56, 0.0  ;;  %v264_v11 = vmax.f32 %v200_v60, 0.0  ;;  %v265_v12 = vmax.f32 %v201_v61, 0.0 }
  0x61   :  { %v266_v13 = vmax.f32 %v202_v62, 0.0 }
  0x64   :  { %v61_v45 = vld [vmem:[%s896_s0 + $0x178] sm:$0xff] }
  0x65   :  { %317 = vst [vmem:[%s899_s3 + $0x108] sm:$0xff] %v253_v34  ;;  %318 = vst [vmem:[%s899_s3 + $0x110] sm:$0xff] %v254_v35  ;;  %v132_v57 = vmul.f32 %v380_v1, %v61_v45 }
  0x66   :  { %319 = vst [vmem:[%s899_s3 + $0x118] sm:$0xff] %v255_v36  ;;  %320 = vst [vmem:[%s899_s3 + $0x120] sm:$0xff] %v256_v41 }
  0x67   :  { %321 = vst [vmem:[%s899_s3 + $0x128] sm:$0xff] %v257_v42  ;;  %322 = vst [vmem:[%s899_s3 + $0x130] sm:$0xff] %v258_v43  ;;  %v203_v7 = vadd.f32 %v385_v2, %v132_v57 }
  0x68   :  { %323 = vst [vmem:[%s899_s3 + $0x138] sm:$0xff] %v259_v46 }
  0x69   :  { %v267_v16 = vmax.f32 %v203_v7, 0.0 }
  0x6f   :  { %v62_v58 = vld [vmem:[%s896_s0 + $0x180] sm:$0xff]  ;;  %v63_v63 = vld [vmem:[%s896_s0 + $0x188] sm:$0xff]  ;;  %v64_v0 = vld [vmem:[%s896_s0 + $0x190] sm:$0xff] }
  0x70   :  { %v65_v3 = vld [vmem:[%s896_s0 + $0x198] sm:$0xff]  ;;  %v66_v8 = vld [vmem:[%s896_s0 + $0x1a0] sm:$0xff]  ;;  %v67_v9 = vld [vmem:[%s896_s0 + $0x1a8] sm:$0xff]  ;;  %v133_v14 = vmul.f32 %v380_v1, %v62_v58  ;;  %v134_v17 = vmul.f32 %v380_v1, %v63_v63  ;;  %v135_v18 = vmul.f32 %v380_v1, %v64_v0 }
  0x71   :  { %v68_v10 = vld [vmem:[%s896_s0 + $0x1b0] sm:$0xff]  ;;  %v136_v19 = vmul.f32 %v380_v1, %v65_v3  ;;  %v137_v21 = vmul.f32 %v380_v1, %v66_v8  ;;  %v138_v22 = vmul.f32 %v380_v1, %v67_v9 }
  0x72   :  { %324 = vst [vmem:[%s899_s3 + $0x140] sm:$0xff] %v260_v59  ;;  %v204_v20 = vadd.f32 %v385_v2, %v133_v14  ;;  %v139_v23 = vmul.f32 %v380_v1, %v68_v10  ;;  %v205_v24 = vadd.f32 %v385_v2, %v134_v17  ;;  %v206_v25 = vadd.f32 %v385_v2, %v135_v18 }
  0x73   :  { %v207_v26 = vadd.f32 %v385_v2, %v136_v19  ;;  %v208_v30 = vadd.f32 %v385_v2, %v137_v21  ;;  %v209_v31 = vadd.f32 %v385_v2, %v138_v22 }
  0x74   :  { %v268_v29 = vmax.f32 %v204_v20, 0.0  ;;  %v210_v32 = vadd.f32 %v385_v2, %v139_v23  ;;  %v269_v36 = vmax.f32 %v205_v24, 0.0  ;;  %v270_v37 = vmax.f32 %v206_v25, 0.0 }
  0x75   :  { %v271_v38 = vmax.f32 %v207_v26, 0.0  ;;  %v272_v43 = vmax.f32 %v208_v30, 0.0  ;;  %v273_v44 = vmax.f32 %v209_v31, 0.0 }
  0x76   :  { %v274_v45 = vmax.f32 %v210_v32, 0.0 }
  0x79   :  { %v69_v15 = vld [vmem:[%s896_s0 + $0x1b8] sm:$0xff] }
  0x7a   :  { %325 = vst [vmem:[%s899_s3 + $0x148] sm:$0xff] %v261_v4  ;;  %326 = vst [vmem:[%s899_s3 + $0x150] sm:$0xff] %v262_v5  ;;  %v140_v27 = vmul.f32 %v380_v1, %v69_v15 }
  0x7b   :  { %327 = vst [vmem:[%s899_s3 + $0x158] sm:$0xff] %v263_v6  ;;  %328 = vst [vmem:[%s899_s3 + $0x160] sm:$0xff] %v264_v11 }
  0x7c   :  { %329 = vst [vmem:[%s899_s3 + $0x168] sm:$0xff] %v265_v12  ;;  %330 = vst [vmem:[%s899_s3 + $0x170] sm:$0xff] %v266_v13  ;;  %v211_v39 = vadd.f32 %v385_v2, %v140_v27 }
  0x7d   :  { %331 = vst [vmem:[%s899_s3 + $0x178] sm:$0xff] %v267_v16 }
  0x7e   :  { %v275_v48 = vmax.f32 %v211_v39, 0.0 }
  0x84   :  { %v70_v28 = vld [vmem:[%s896_s0 + $0x1c0] sm:$0xff]  ;;  %v71_v33 = vld [vmem:[%s896_s0 + $0x1c8] sm:$0xff]  ;;  %v72_v34 = vld [vmem:[%s896_s0 + $0x1d0] sm:$0xff] }
  0x85   :  { %v73_v35 = vld [vmem:[%s896_s0 + $0x1d8] sm:$0xff]  ;;  %v74_v40 = vld [vmem:[%s896_s0 + $0x1e0] sm:$0xff]  ;;  %v75_v41 = vld [vmem:[%s896_s0 + $0x1e8] sm:$0xff]  ;;  %v141_v46 = vmul.f32 %v380_v1, %v70_v28  ;;  %v142_v49 = vmul.f32 %v380_v1, %v71_v33  ;;  %v143_v50 = vmul.f32 %v380_v1, %v72_v34 }
  0x86   :  { %v76_v42 = vld [vmem:[%s896_s0 + $0x1f0] sm:$0xff]  ;;  %v144_v51 = vmul.f32 %v380_v1, %v73_v35  ;;  %v145_v53 = vmul.f32 %v380_v1, %v74_v40  ;;  %v146_v54 = vmul.f32 %v380_v1, %v75_v41 }
  0x87   :  { %332 = vst [vmem:[%s899_s3 + $0x180] sm:$0xff] %v268_v29  ;;  %v212_v52 = vadd.f32 %v385_v2, %v141_v46  ;;  %v147_v55 = vmul.f32 %v380_v1, %v76_v42  ;;  %v213_v56 = vadd.f32 %v385_v2, %v142_v49  ;;  %v214_v57 = vadd.f32 %v385_v2, %v143_v50 }
  0x88   :  { %v215_v58 = vadd.f32 %v385_v2, %v144_v51  ;;  %v216_v61 = vadd.f32 %v385_v2, %v145_v53  ;;  %v217_v62 = vadd.f32 %v385_v2, %v146_v54 }
  0x89   :  { %v276_v60 = vmax.f32 %v212_v52, 0.0  ;;  %v218_v63 = vadd.f32 %v385_v2, %v147_v55  ;;  %v277_v0 = vmax.f32 %v213_v56, 0.0  ;;  %v278_v3 = vmax.f32 %v214_v57, 0.0 }
  0x8a   :  { %v279_v4 = vmax.f32 %v215_v58, 0.0  ;;  %v280_v6 = vmax.f32 %v216_v61, 0.0  ;;  %v281_v7 = vmax.f32 %v217_v62, 0.0 }
  0x8b   :  { %v282_v8 = vmax.f32 %v218_v63, 0.0 }
  0x8e   :  { %v77_v47 = vld [vmem:[%s896_s0 + $0x1f8] sm:$0xff] }
  0x8f   :  { %333 = vst [vmem:[%s899_s3 + $0x188] sm:$0xff] %v269_v36  ;;  %334 = vst [vmem:[%s899_s3 + $0x190] sm:$0xff] %v270_v37  ;;  %v148_v59 = vmul.f32 %v380_v1, %v77_v47 }
  0x90   :  { %335 = vst [vmem:[%s899_s3 + $0x198] sm:$0xff] %v271_v38  ;;  %336 = vst [vmem:[%s899_s3 + $0x1a0] sm:$0xff] %v272_v43 }
  0x91   :  { %337 = vst [vmem:[%s899_s3 + $0x1a8] sm:$0xff] %v273_v44  ;;  %338 = vst [vmem:[%s899_s3 + $0x1b0] sm:$0xff] %v274_v45  ;;  %v219_v5 = vadd.f32 %v385_v2, %v148_v59 }
  0x92   :  { %339 = vst [vmem:[%s899_s3 + $0x1b8] sm:$0xff] %v275_v48  ;;  %340 = vst [vmem:[%s899_s3 + $0x1c0] sm:$0xff] %v276_v60 }
  0x93   :  { %341 = vst [vmem:[%s899_s3 + $0x1c8] sm:$0xff] %v277_v0  ;;  %342 = vst [vmem:[%s899_s3 + $0x1d0] sm:$0xff] %v278_v3  ;;  %v283_v1 = vmax.f32 %v219_v5, 0.0 }
  0x94   :  { %343 = vst [vmem:[%s899_s3 + $0x1d8] sm:$0xff] %v279_v4  ;;  %344 = vst [vmem:[%s899_s3 + $0x1e0] sm:$0xff] %v280_v6 }
  0x95   :  { %345 = vst [vmem:[%s899_s3 + $0x1e8] sm:$0xff] %v281_v7  ;;  %346 = vst [vmem:[%s899_s3 + $0x1f0] sm:$0xff] %v282_v8 }
  0x96   :  { %347 = vst [vmem:[%s899_s3 + $0x1f8] sm:$0xff] %v283_v1 }

// kernel: rsu7_forward.28
= control target key start
LH: loop header
LB: loop body
LE: loop exit
PB: predicated region body
PF: predicated region fallthrough
CT: control target
= control target key end

     0   :  { %s2130_s1 = inlined_call_operand.vmem [shape: bf16[128,128], index: 1, kind: input, shape index: {}]   ;;  %s2131_s0 = inlined_call_operand.vmem [shape: bf16[512,128], index: 0, kind: input, shape index: {}]   ;;  %s2132_s2 = inlined_call_operand.vmem [shape: f32[1,128], index: 2, kind: input, shape index: {}]   ;;  %s2133_s3 = inlined_call_operand.vmem [shape: f32[512,128], index: 3, kind: output, shape index: {0}]   ;;  %s2134_s4 = inlined_call_operand.vmem [shape: f32[8,128], index: 4, kind: output, shape index: {1}]   ;;  %s2135_s5 = inlined_call_operand.vmem [shape: f32[8,128], index: 5, kind: output, shape index: {2}]  }
   0x1   :  { %v1481_v0 = vld [vmem:[%s2130_s1 + $0x38] sm:$0xff]   ;;  %v1482_v1 = vld [vmem:[%s2130_s1 + $0x30] sm:$0xff]   ;;  %v1483_v2 = vld [vmem:[%s2130_s1 + $0x28] sm:$0xff]  }
   0x2   :  { %1385 = vmatprep.subr.bf16.mxu0 %v1481_v0  ;;  %1465 = vmatprep.subr.bf16.mxu1 %v1481_v0  ;;  %v1484_v3 = vld [vmem:[%s2130_s1 + $0x20] sm:$0xff]   ;;  %v1485_v5 = vld [vmem:[%s2130_s1 + $0x18] sm:$0xff]   ;;  %v1486_v6 = vld [vmem:[%s2130_s1 + $0x10] sm:$0xff]  }
   0x3   :  { %1386 = vmatpush3.bf16.msra.mxu0 %v1481_v0  ;;  %1473 = vmatpush3.bf16.msra.mxu1 %v1481_v0  ;;  %v1489_v4 = vld [vmem:[%s2131_s0] sm:$0xff]   ;;  %v1487_v7 = vld [vmem:[%s2130_s1 + $0x8] sm:$0xff]   ;;  %v1491_v11 = vld [vmem:[%s2131_s0 + $0x10] sm:$0xff]  }
   0x4   :  { %1387 = vmatprep.subr.bf16.mxu0 %v1482_v1  ;;  %1466 = vmatprep.subr.bf16.mxu1 %v1482_v1  ;;  %v1488_v8 = vld [vmem:[%s2130_s1] sm:$0xff]   ;;  %v1490_v10 = vld [vmem:[%s2131_s0 + $0x8] sm:$0xff]   ;;  %v1507_v13 = vld [vmem:[%s2131_s0 + $0x90] sm:$0xff]  }
   0x5   :  { %1401 = vmatprep.mubr.bf16.mxu0 %v1489_v4  ;;  %v1505_v9 = vld [vmem:[%s2131_s0 + $0x80] sm:$0xff]   ;;  %v1506_v12 = vld [vmem:[%s2131_s0 + $0x88] sm:$0xff]   ;;  %v1492_v14 = vld [vmem:[%s2131_s0 + $0x18] sm:$0xff]  }
   0x6   :  { %1433 = vmatprep.mubr.bf16.mxu1 %v1505_v9  ;;  %v1493_v15 = vld [vmem:[%s2131_s0 + $0x20] sm:$0xff]   ;;  %v1508_v16 = vld [vmem:[%s2131_s0 + $0x98] sm:$0xff]   ;;  %v1494_v18 = vld [vmem:[%s2131_s0 + $0x28] sm:$0xff]  }
   0x7   :  { %1388 = vmatpush3.bf16.msra.mxu0 %v1482_v1  ;;  %1474 = vmatpush3.bf16.msra.mxu1 %v1482_v1  ;;  %v1509_v17 = vld [vmem:[%s2131_s0 + $0xa0] sm:$0xff]   ;;  %v1510_v19 = vld [vmem:[%s2131_s0 + $0xa8] sm:$0xff]   ;;  %v1495_v20 = vld [vmem:[%s2131_s0 + $0x30] sm:$0xff]  }
   0x8   :  { %1389 = vmatprep.subr.bf16.mxu0 %v1483_v2  ;;  %1467 = vmatprep.subr.bf16.mxu1 %v1483_v2  ;;  %v1511_v21 = vld [vmem:[%s2131_s0 + $0xb0] sm:$0xff]   ;;  %v1496_v22 = vld [vmem:[%s2131_s0 + $0x38] sm:$0xff]   ;;  %v1497_v24 = vld [vmem:[%s2131_s0 + $0x40] sm:$0xff]  }
   0x9   :  { %v1512_v23 = vld [vmem:[%s2131_s0 + $0xb8] sm:$0xff]   ;;  %v1513_v25 = vld [vmem:[%s2131_s0 + $0xc0] sm:$0xff]   ;;  %v1498_v26 = vld [vmem:[%s2131_s0 + $0x48] sm:$0xff]  }
   0xa   :  { %v1514_v27 = vld [vmem:[%s2131_s0 + $0xc8] sm:$0xff]   ;;  %v1499_v28 = vld [vmem:[%s2131_s0 + $0x50] sm:$0xff]   ;;  %v1500_v30 = vld [vmem:[%s2131_s0 + $0x58] sm:$0xff]  }
   0xb   :  { %1390 = vmatpush3.bf16.msra.mxu0 %v1483_v2  ;;  %1475 = vmatpush3.bf16.msra.mxu1 %v1483_v2  ;;  %v1515_v29 = vld [vmem:[%s2131_s0 + $0xd0] sm:$0xff]   ;;  %v1516_v31 = vld [vmem:[%s2131_s0 + $0xd8] sm:$0xff]   ;;  %v1501_v32 = vld [vmem:[%s2131_s0 + $0x60] sm:$0xff]  }
   0xc   :  { %1391 = vmatprep.subr.bf16.mxu0 %v1484_v3  ;;  %1468 = vmatprep.subr.bf16.mxu1 %v1484_v3  ;;  %v1517_v33 = vld [vmem:[%s2131_s0 + $0xe0] sm:$0xff]   ;;  %v1502_v34 = vld [vmem:[%s2131_s0 + $0x68] sm:$0xff]   ;;  %v1503_v36 = vld [vmem:[%s2131_s0 + $0x70] sm:$0xff]  }
   0xd   :  { %v1518_v35 = vld [vmem:[%s2131_s0 + $0xe8] sm:$0xff]   ;;  %v1519_v37 = vld [vmem:[%s2131_s0 + $0xf0] sm:$0xff]   ;;  %v1504_v38 = vld [vmem:[%s2131_s0 + $0x78] sm:$0xff]  }
   0xe   :  { %v1520_v39 = vld [vmem:[%s2131_s0 + $0xf8] sm:$0xff]   ;;  %v1674_v40 = vld [vmem:[%s2132_s2] ss:$0 sm:$0xff] }
   0xf   :  { %1392 = vmatpush3.bf16.msra.mxu0 %v1484_v3  ;;  %1476 = vmatpush3.bf16.msra.mxu1 %v1484_v3 }
  0x10   :  { %1393 = vmatprep.subr.bf16.mxu0 %v1485_v5  ;;  %1469 = vmatprep.subr.bf16.mxu1 %v1485_v5 }
  0x13   :  { %1394 = vmatpush3.bf16.msra.mxu0 %v1485_v5  ;;  %1477 = vmatpush3.bf16.msra.mxu1 %v1485_v5 }
  0x14   :  { %1395 = vmatprep.subr.bf16.mxu0 %v1486_v6  ;;  %1470 = vmatprep.subr.bf16.mxu1 %v1486_v6 }
  0x17   :  { %1396 = vmatpush3.bf16.msra.mxu0 %v1486_v6  ;;  %1478 = vmatpush3.bf16.msra.mxu1 %v1486_v6 }
  0x18   :  { %1397 = vmatprep.subr.bf16.mxu0 %v1487_v7  ;;  %1471 = vmatprep.subr.bf16.mxu1 %v1487_v7 }
  0x1b   :  { %1398 = vmatpush3.bf16.msra.mxu0 %v1487_v7  ;;  %1479 = vmatpush3.bf16.msra.mxu1 %v1487_v7 }
  0x1c   :  { %1399 = vmatprep.subr.bf16.mxu0 %v1488_v8  ;;  %1472 = vmatprep.subr.bf16.mxu1 %v1488_v8 }
  0x1f   :  { %1400 = vmatpush3.bf16.msra.mxu0 %v1488_v8  ;;  %1480 = vmatpush3.bf16.msra.mxu1 %v1488_v8 }
  0x22   :  { %1402 = vmatmul.mubr.bf16.vlgmr.msra.gmra.mxu0 %v1490_v10  ;;  %1434 = vmatmul.mubr.bf16.vlgmr.msra.gmra.mxu1 %v1506_v12 }
  0x23   :  { %1405 = vmatprep.mubr.bf16.mxu0 %v1491_v11  ;;  %1437 = vmatprep.mubr.bf16.mxu1 %v1507_v13 }
  0x2a   :  { %1406 = vmatmul.mubr.bf16.gmra.mxu0 %v1492_v14  ;;  %1438 = vmatmul.mubr.bf16.gmra.mxu1 %v1508_v16 }
  0x2b   :  { %1409 = vmatprep.mubr.bf16.mxu0 %v1493_v15  ;;  %1441 = vmatprep.mubr.bf16.mxu1 %v1509_v17 }
  0x32   :  { %1410 = vmatmul.mubr.bf16.gmra.mxu0 %v1494_v18  ;;  %1442 = vmatmul.mubr.bf16.gmra.mxu1 %v1510_v19 }
  0x33   :  { %1413 = vmatprep.mubr.bf16.mxu0 %v1495_v20  ;;  %1445 = vmatprep.mubr.bf16.mxu1 %v1511_v21 }
  0x3a   :  { %1414 = vmatmul.mubr.bf16.gmra.mxu0 %v1496_v22  ;;  %1446 = vmatmul.mubr.bf16.gmra.mxu1 %v1512_v23 }
  0x3b   :  { %1417 = vmatprep.mubr.bf16.mxu0 %v1497_v24  ;;  %1449 = vmatprep.mubr.bf16.mxu1 %v1513_v25 }
  0x42   :  { %1418 = vmatmul.mubr.bf16.gmra.mxu0 %v1498_v26  ;;  %1450 = vmatmul.mubr.bf16.gmra.mxu1 %v1514_v27 }
  0x43   :  { %1421 = vmatprep.mubr.bf16.mxu0 %v1499_v28  ;;  %1453 = vmatprep.mubr.bf16.mxu1 %v1515_v29 }
  0x4a   :  { %1422 = vmatmul.mubr.bf16.gmra.mxu0 %v1500_v30  ;;  %1454 = vmatmul.mubr.bf16.gmra.mxu1 %v1516_v31 }
  0x4b   :  { %1425 = vmatprep.mubr.bf16.mxu0 %v1501_v32  ;;  %1457 = vmatprep.mubr.bf16.mxu1 %v1517_v33 }
  0x52   :  { %1426 = vmatmul.mubr.bf16.gmra.mxu0 %v1502_v34  ;;  %1458 = vmatmul.mubr.bf16.gmra.mxu1 %v1518_v35 }
  0x53   :  { %1429 = vmatprep.mubr.bf16.mxu0 %v1503_v36  ;;  %1461 = vmatprep.mubr.bf16.mxu1 %v1519_v37 }
  0x5a   :  { %1430 = vmatmul.mubr.bf16.gmra.mxu0 %v1504_v38  ;;  %1462 = vmatmul.mubr.bf16.gmra.mxu1 %v1520_v39 }
  0xe2   :  { %v1403_v41 = vpop.f32.mrf.mxu0  ;;  %v1435_v42 = vpop.f32.mrf.mxu1 }
  0xe3   :  { %v388_v43 = vadd.f32 %v1403_v41, %v1674_v40  ;;  %v1678_v44 = vadd.f32 %v1435_v42, %v1674_v40 }
  0xe4   :  { %v379_v45 = vpop.f32.mrf.mxu0  ;;  %v507_v46 = vpop.f32.mrf.mxu1 }
  0xe5   :  { %636 = vst [vmem:[%s2133_s3 + $0x10] sm:$0xff] %v388_v43  ;;  %v380_v47 = vadd.f32 %v1674_v40, %v379_v45  ;;  %668 = vst [vmem:[%s2133_s3 + $0x110] sm:$0xff] %v1678_v44  ;;  %v1689_v48 = vadd.f32 %v1674_v40, %v507_v46  ;;  %v1156_v2 = vmul.f32 %v388_v43, %v388_v43 }
  0xe6   :  { %v1404_v49 = vpop.f32.mrf.mxu0  ;;  %v1436_v50 = vpop.f32.mrf.mxu1 }
  0xe7   :  { %634 = vst [vmem:[%s2133_s3] sm:$0xff] %v380_v47  ;;  %v391_v51 = vadd.f32 %v1404_v49, %v1674_v40  ;;  %666 = vst [vmem:[%s2133_s3 + $0x100] sm:$0xff] %v1689_v48  ;;  %v1700_v52 = vadd.f32 %v1436_v50, %v1674_v40  ;;  %v1154_v59 = vmul.f32 %v380_v47, %v380_v47 }
  0xe8   :  { %v382_v53 = vpop.f32.mrf.mxu0  ;;  %v510_v54 = vpop.f32.mrf.mxu1 }
  0xe9   :  { %637 = vst [vmem:[%s2133_s3 + $0x18] sm:$0xff] %v391_v51  ;;  %v383_v55 = vadd.f32 %v1674_v40, %v382_v53  ;;  %669 = vst [vmem:[%s2133_s3 + $0x118] sm:$0xff] %v1700_v52  ;;  %v1711_v56 = vadd.f32 %v1674_v40, %v510_v54  ;;  %v1157_v9 = vmul.f32 %v391_v51, %v391_v51 }
  0xea   :  { %v1407_v57 = vpop.f32.mrf.mxu0  ;;  %v1439_v58 = vpop.f32.mrf.mxu1 }
  0xeb   :  { %635 = vst [vmem:[%s2133_s3 + $0x8] sm:$0xff] %v383_v55  ;;  %v1085_v60 = vadd.f32 %v383_v55, %v380_v47  ;;  %v1155_v61 = vmul.f32 %v383_v55, %v383_v55  ;;  %v404_v62 = vadd.f32 %v1407_v57, %v1674_v40  ;;  %667 = vst [vmem:[%s2133_s3 + $0x108] sm:$0xff] %v1711_v56 }
  0xec   :  { %v395_v63 = vpop.f32.mrf.mxu0  ;;  %v1722_v0 = vadd.f32 %v1439_v58, %v1674_v40  ;;  %v523_v1 = vpop.f32.mrf.mxu1 }
  0xed   :  { %v1086_v3 = vadd.f32 %v1085_v60, %v388_v43  ;;  %v1218_v4 = vadd.f32 %v1155_v61, %v1154_v59  ;;  %640 = vst [vmem:[%s2133_s3 + $0x30] sm:$0xff] %v404_v62  ;;  %v396_v5 = vadd.f32 %v1674_v40, %v395_v63  ;;  %v1733_v7 = vadd.f32 %v1674_v40, %v523_v1 }
  0xee   :  { %v1408_v6 = vpop.f32.mrf.mxu0  ;;  %672 = vst [vmem:[%s2133_s3 + $0x130] sm:$0xff] %v1722_v0  ;;  %v1440_v8 = vpop.f32.mrf.mxu1  ;;  %v1160_v30 = vmul.f32 %v404_v62, %v404_v62 }
  0xef   :  { %v1219_v10 = vadd.f32 %v1218_v4, %v1156_v2  ;;  %638 = vst [vmem:[%s2133_s3 + $0x20] sm:$0xff] %v396_v5  ;;  %v1087_v11 = vadd.f32 %v1086_v3, %v391_v51  ;;  %v407_v12 = vadd.f32 %v1408_v6, %v1674_v40  ;;  %670 = vst [vmem:[%s2133_s3 + $0x120] sm:$0xff] %v1733_v7 }
  0xf0   :  { %v398_v13 = vpop.f32.mrf.mxu0  ;;  %v1744_v14 = vadd.f32 %v1440_v8, %v1674_v40  ;;  %v526_v15 = vpop.f32.mrf.mxu1  ;;  %v1158_v17 = vmul.f32 %v396_v5, %v396_v5 }
  0xf1   :  { %v1088_v16 = vadd.f32 %v1087_v11, %v396_v5  ;;  %v1220_v18 = vadd.f32 %v1219_v10, %v1157_v9  ;;  %641 = vst [vmem:[%s2133_s3 + $0x38] sm:$0xff] %v407_v12  ;;  %v399_v19 = vadd.f32 %v1674_v40, %v398_v13  ;;  %v1755_v21 = vadd.f32 %v1674_v40, %v526_v15 }
  0xf2   :  { %v1411_v20 = vpop.f32.mrf.mxu0  ;;  %673 = vst [vmem:[%s2133_s3 + $0x138] sm:$0xff] %v1744_v14  ;;  %v1443_v22 = vpop.f32.mrf.mxu1  ;;  %v1161_v37 = vmul.f32 %v407_v12, %v407_v12 }
  0xf3   :  { %v1221_v23 = vadd.f32 %v1220_v18, %v1158_v17  ;;  %639 = vst [vmem:[%s2133_s3 + $0x28] sm:$0xff] %v399_v19  ;;  %v1089_v24 = vadd.f32 %v1088_v16, %v399_v19  ;;  %v1159_v25 = vmul.f32 %v399_v19, %v399_v19  ;;  %v420_v26 = vadd.f32 %v1411_v20, %v1674_v40 }
  0xf4   :  { %v411_v27 = vpop.f32.mrf.mxu0  ;;  %671 = vst [vmem:[%s2133_s3 + $0x128] sm:$0xff] %v1755_v21  ;;  %v1766_v28 = vadd.f32 %v1443_v22, %v1674_v40  ;;  %v539_v29 = vpop.f32.mrf.mxu1 }
  0xf5   :  { %v1090_v31 = vadd.f32 %v1089_v24, %v404_v62  ;;  %v1222_v32 = vadd.f32 %v1221_v23, %v1159_v25  ;;  %644 = vst [vmem:[%s2133_s3 + $0x50] sm:$0xff] %v420_v26  ;;  %v412_v33 = vadd.f32 %v1674_v40, %v411_v27  ;;  %v1777_v35 = vadd.f32 %v1674_v40, %v539_v29 }
  0xf6   :  { %v1412_v34 = vpop.f32.mrf.mxu0  ;;  %676 = vst [vmem:[%s2133_s3 + $0x150] sm:$0xff] %v1766_v28  ;;  %v1444_v36 = vpop.f32.mrf.mxu1  ;;  %v1164_v63 = vmul.f32 %v420_v26, %v420_v26 }
  0xf7   :  { %v1223_v38 = vadd.f32 %v1222_v32, %v1160_v30  ;;  %642 = vst [vmem:[%s2133_s3 + $0x40] sm:$0xff] %v412_v33  ;;  %v1091_v39 = vadd.f32 %v1090_v31, %v407_v12  ;;  %v423_v41 = vadd.f32 %v1412_v34, %v1674_v40  ;;  %674 = vst [vmem:[%s2133_s3 + $0x140] sm:$0xff] %v1777_v35 }
  0xf8   :  { %v414_v42 = vpop.f32.mrf.mxu0  ;;  %v1788_v43 = vadd.f32 %v1444_v36, %v1674_v40  ;;  %v542_v45 = vpop.f32.mrf.mxu1  ;;  %v1162_v47 = vmul.f32 %v412_v33, %v412_v33 }
  0xf9   :  { %v1092_v46 = vadd.f32 %v1091_v39, %v412_v33  ;;  %v1224_v49 = vadd.f32 %v1223_v38, %v1161_v37  ;;  %645 = vst [vmem:[%s2133_s3 + $0x58] sm:$0xff] %v423_v41  ;;  %v415_v50 = vadd.f32 %v1674_v40, %v414_v42  ;;  %v1799_v53 = vadd.f32 %v1674_v40, %v542_v45 }
  0xfa   :  { %v1415_v51 = vpop.f32.mrf.mxu0  ;;  %677 = vst [vmem:[%s2133_s3 + $0x158] sm:$0xff] %v1788_v43  ;;  %v1447_v54 = vpop.f32.mrf.mxu1  ;;  %v1165_v8 = vmul.f32 %v423_v41, %v423_v41 }
  0xfb   :  { %v1225_v55 = vadd.f32 %v1224_v49, %v1162_v47  ;;  %643 = vst [vmem:[%s2133_s3 + $0x48] sm:$0xff] %v415_v50  ;;  %v1093_v57 = vadd.f32 %v1092_v46, %v415_v50  ;;  %v1163_v58 = vmul.f32 %v415_v50, %v415_v50  ;;  %v436_v59 = vadd.f32 %v1415_v51, %v1674_v40 }
  0xfc   :  { %v427_v60 = vpop.f32.mrf.mxu0  ;;  %675 = vst [vmem:[%s2133_s3 + $0x148] sm:$0xff] %v1799_v53  ;;  %v1810_v61 = vadd.f32 %v1447_v54, %v1674_v40  ;;  %v555_v62 = vpop.f32.mrf.mxu1 }
  0xfd   :  { %v1094_v1 = vadd.f32 %v1093_v57, %v420_v26  ;;  %v1226_v2 = vadd.f32 %v1225_v55, %v1163_v58  ;;  %648 = vst [vmem:[%s2133_s3 + $0x70] sm:$0xff] %v436_v59  ;;  %v428_v3 = vadd.f32 %v1674_v40, %v427_v60  ;;  %v1821_v5 = vadd.f32 %v1674_v40, %v555_v62 }
  0xfe   :  { %v1416_v4 = vpop.f32.mrf.mxu0  ;;  %680 = vst [vmem:[%s2133_s3 + $0x170] sm:$0xff] %v1810_v61  ;;  %v1448_v6 = vpop.f32.mrf.mxu1  ;;  %v1168_v32 = vmul.f32 %v436_v59, %v436_v59 }
  0xff   :  { %v1227_v9 = vadd.f32 %v1226_v2, %v1164_v63  ;;  %646 = vst [vmem:[%s2133_s3 + $0x60] sm:$0xff] %v428_v3  ;;  %v1095_v10 = vadd.f32 %v1094_v1, %v423_v41  ;;  %v439_v11 = vadd.f32 %v1416_v4, %v1674_v40  ;;  %678 = vst [vmem:[%s2133_s3 + $0x160] sm:$0xff] %v1821_v5 }
 0x100   :  { %v430_v12 = vpop.f32.mrf.mxu0  ;;  %v1832_v13 = vadd.f32 %v1448_v6, %v1674_v40  ;;  %v558_v15 = vpop.f32.mrf.mxu1  ;;  %v1166_v17 = vmul.f32 %v428_v3, %v428_v3 }
 0x101   :  { %v1096_v16 = vadd.f32 %v1095_v10, %v428_v3  ;;  %v1228_v18 = vadd.f32 %v1227_v9, %v1165_v8  ;;  %649 = vst [vmem:[%s2133_s3 + $0x78] sm:$0xff] %v439_v11  ;;  %v431_v19 = vadd.f32 %v1674_v40, %v430_v12  ;;  %v1843_v22 = vadd.f32 %v1674_v40, %v558_v15 }
 0x102   :  { %v1419_v20 = vpop.f32.mrf.mxu0  ;;  %681 = vst [vmem:[%s2133_s3 + $0x178] sm:$0xff] %v1832_v13  ;;  %v1451_v23 = vpop.f32.mrf.mxu1  ;;  %v1169_v41 = vmul.f32 %v439_v11, %v439_v11 }
 0x103   :  { %v1229_v24 = vadd.f32 %v1228_v18, %v1166_v17  ;;  %647 = vst [vmem:[%s2133_s3 + $0x68] sm:$0xff] %v431_v19  ;;  %v1097_v25 = vadd.f32 %v1096_v16, %v431_v19  ;;  %v1167_v26 = vmul.f32 %v431_v19, %v431_v19  ;;  %v452_v27 = vadd.f32 %v1419_v20, %v1674_v40 }
 0x104   :  { %v443_v29 = vpop.f32.mrf.mxu0  ;;  %679 = vst [vmem:[%s2133_s3 + $0x168] sm:$0xff] %v1843_v22  ;;  %v1854_v30 = vadd.f32 %v1451_v23, %v1674_v40  ;;  %v571_v31 = vpop.f32.mrf.mxu1 }
 0x105   :  { %v1098_v33 = vadd.f32 %v1097_v25, %v436_v59  ;;  %v1230_v34 = vadd.f32 %v1229_v24, %v1167_v26  ;;  %652 = vst [vmem:[%s2133_s3 + $0x90] sm:$0xff] %v452_v27  ;;  %v444_v36 = vadd.f32 %v1674_v40, %v443_v29  ;;  %v1865_v38 = vadd.f32 %v1674_v40, %v571_v31 }
 0x106   :  { %v1420_v37 = vpop.f32.mrf.mxu0  ;;  %684 = vst [vmem:[%s2133_s3 + $0x190] sm:$0xff] %v1854_v30  ;;  %v1452_v39 = vpop.f32.mrf.mxu1  ;;  %v1172_v8 = vmul.f32 %v452_v27, %v452_v27 }
 0x107   :  { %v1231_v42 = vadd.f32 %v1230_v34, %v1168_v32  ;;  %650 = vst [vmem:[%s2133_s3 + $0x80] sm:$0xff] %v444_v36  ;;  %v1099_v45 = vadd.f32 %v1098_v33, %v439_v11  ;;  %v455_v46 = vadd.f32 %v1420_v37, %v1674_v40  ;;  %682 = vst [vmem:[%s2133_s3 + $0x180] sm:$0xff] %v1865_v38 }
 0x108   :  { %v446_v47 = vpop.f32.mrf.mxu0  ;;  %v1876_v49 = vadd.f32 %v1452_v39, %v1674_v40  ;;  %v574_v50 = vpop.f32.mrf.mxu1  ;;  %v1170_v54 = vmul.f32 %v444_v36, %v444_v36 }
 0x109   :  { %v1100_v51 = vadd.f32 %v1099_v45, %v444_v36  ;;  %v1232_v55 = vadd.f32 %v1231_v42, %v1169_v41  ;;  %653 = vst [vmem:[%s2133_s3 + $0x98] sm:$0xff] %v455_v46  ;;  %v447_v57 = vadd.f32 %v1674_v40, %v446_v47  ;;  %v1887_v59 = vadd.f32 %v1674_v40, %v574_v50 }
 0x10a   :  { %v1423_v58 = vpop.f32.mrf.mxu0  ;;  %685 = vst [vmem:[%s2133_s3 + $0x198] sm:$0xff] %v1876_v49  ;;  %v1455_v60 = vpop.f32.mrf.mxu1  ;;  %v1173_v17 = vmul.f32 %v455_v46, %v455_v46 }
 0x10b   :  { %v1233_v62 = vadd.f32 %v1232_v55, %v1170_v54  ;;  %651 = vst [vmem:[%s2133_s3 + $0x88] sm:$0xff] %v447_v57  ;;  %v1101_v63 = vadd.f32 %v1100_v51, %v447_v57  ;;  %v1171_v1 = vmul.f32 %v447_v57, %v447_v57  ;;  %v468_v2 = vadd.f32 %v1423_v58, %v1674_v40 }
 0x10c   :  { %v459_v3 = vpop.f32.mrf.mxu0  ;;  %683 = vst [vmem:[%s2133_s3 + $0x188] sm:$0xff] %v1887_v59  ;;  %v1898_v4 = vadd.f32 %v1455_v60, %v1674_v40  ;;  %v587_v6 = vpop.f32.mrf.mxu1 }
 0x10d   :  { %v1102_v9 = vadd.f32 %v1101_v63, %v452_v27  ;;  %v1234_v10 = vadd.f32 %v1233_v62, %v1171_v1  ;;  %656 = vst [vmem:[%s2133_s3 + $0xb0] sm:$0xff] %v468_v2  ;;  %v460_v11 = vadd.f32 %v1674_v40, %v459_v3  ;;  %v1909_v15 = vadd.f32 %v1674_v40, %v587_v6 }
 0x10e   :  { %v1424_v12 = vpop.f32.mrf.mxu0  ;;  %688 = vst [vmem:[%s2133_s3 + $0x1b0] sm:$0xff] %v1898_v4  ;;  %v1456_v16 = vpop.f32.mrf.mxu1  ;;  %v1176_v47 = vmul.f32 %v468_v2, %v468_v2 }
 0x10f   :  { %v1235_v18 = vadd.f32 %v1234_v10, %v1172_v8  ;;  %654 = vst [vmem:[%s2133_s3 + $0xa0] sm:$0xff] %v460_v11  ;;  %v1103_v19 = vadd.f32 %v1102_v9, %v455_v46  ;;  %v471_v20 = vadd.f32 %v1424_v12, %v1674_v40  ;;  %686 = vst [vmem:[%s2133_s3 + $0x1a0] sm:$0xff] %v1909_v15 }
 0x110   :  { %v462_v23 = vpop.f32.mrf.mxu0  ;;  %v1920_v24 = vadd.f32 %v1456_v16, %v1674_v40  ;;  %v590_v25 = vpop.f32.mrf.mxu1  ;;  %v1174_v27 = vmul.f32 %v460_v11, %v460_v11 }
 0x111   :  { %v1104_v26 = vadd.f32 %v1103_v19, %v460_v11  ;;  %v1236_v29 = vadd.f32 %v1235_v18, %v1173_v17  ;;  %657 = vst [vmem:[%s2133_s3 + $0xb8] sm:$0xff] %v471_v20  ;;  %v463_v31 = vadd.f32 %v1674_v40, %v462_v23  ;;  %v1931_v33 = vadd.f32 %v1674_v40, %v590_v25 }
 0x112   :  { %v1427_v32 = vpop.f32.mrf.mxu0  ;;  %689 = vst [vmem:[%s2133_s3 + $0x1b8] sm:$0xff] %v1920_v24  ;;  %v1459_v34 = vpop.f32.mrf.mxu1  ;;  %v1177_v60 = vmul.f32 %v471_v20, %v471_v20 }
 0x113   :  { %v1237_v36 = vadd.f32 %v1236_v29, %v1174_v27  ;;  %655 = vst [vmem:[%s2133_s3 + $0xa8] sm:$0xff] %v463_v31  ;;  %v1105_v37 = vadd.f32 %v1104_v26, %v463_v31  ;;  %v1175_v39 = vmul.f32 %v463_v31, %v463_v31  ;;  %v484_v41 = vadd.f32 %v1427_v32, %v1674_v40 }
 0x114   :  { %v475_v42 = vpop.f32.mrf.mxu0  ;;  %687 = vst [vmem:[%s2133_s3 + $0x1a8] sm:$0xff] %v1931_v33  ;;  %v1942_v45 = vadd.f32 %v1459_v34, %v1674_v40  ;;  %v603_v46 = vpop.f32.mrf.mxu1 }
 0x115   :  { %v1106_v50 = vadd.f32 %v1105_v37, %v468_v2  ;;  %v1238_v51 = vadd.f32 %v1237_v36, %v1175_v39  ;;  %660 = vst [vmem:[%s2133_s3 + $0xd0] sm:$0xff] %v484_v41  ;;  %v476_v54 = vadd.f32 %v1674_v40, %v475_v42  ;;  %v1953_v57 = vadd.f32 %v1674_v40, %v603_v46 }
 0x116   :  { %v1428_v55 = vpop.f32.mrf.mxu0  ;;  %692 = vst [vmem:[%s2133_s3 + $0x1d0] sm:$0xff] %v1942_v45  ;;  %v1460_v58 = vpop.f32.mrf.mxu1  ;;  %v1180_v29 = vmul.f32 %v484_v41, %v484_v41 }
 0x117   :  { %v1239_v62 = vadd.f32 %v1238_v51, %v1176_v47  ;;  %658 = vst [vmem:[%s2133_s3 + $0xc0] sm:$0xff] %v476_v54  ;;  %v1107_v63 = vadd.f32 %v1106_v50, %v471_v20  ;;  %v487_v1 = vadd.f32 %v1428_v55, %v1674_v40  ;;  %690 = vst [vmem:[%s2133_s3 + $0x1c0] sm:$0xff] %v1953_v57 }
 0x118   :  { %v478_v2 = vpop.f32.mrf.mxu0  ;;  %v1964_v3 = vadd.f32 %v1460_v58, %v1674_v40  ;;  %v606_v6 = vpop.f32.mrf.mxu1  ;;  %v1178_v9 = vmul.f32 %v476_v54, %v476_v54 }
 0x119   :  { %v1108_v8 = vadd.f32 %v1107_v63, %v476_v54  ;;  %v1240_v10 = vadd.f32 %v1239_v62, %v1177_v60  ;;  %661 = vst [vmem:[%s2133_s3 + $0xd8] sm:$0xff] %v487_v1  ;;  %v479_v11 = vadd.f32 %v1674_v40, %v478_v2  ;;  %v1975_v16 = vadd.f32 %v1674_v40, %v606_v6 }
 0x11a   :  { %v1431_v12 = vpop.f32.mrf.mxu0  ;;  %693 = vst [vmem:[%s2133_s3 + $0x1d8] sm:$0xff] %v1964_v3  ;;  %v1463_v17 = vpop.f32.mrf.mxu1  ;;  %v1181_v42 = vmul.f32 %v487_v1, %v487_v1 }
 0x11b   :  { %v1241_v18 = vadd.f32 %v1240_v10, %v1178_v9  ;;  %659 = vst [vmem:[%s2133_s3 + $0xc8] sm:$0xff] %v479_v11  ;;  %v1109_v19 = vadd.f32 %v1108_v8, %v479_v11  ;;  %v1179_v20 = vmul.f32 %v479_v11, %v479_v11  ;;  %v500_v23 = vadd.f32 %v1431_v12, %v1674_v40 }
 0x11c   :  { %v491_v25 = vpop.f32.mrf.mxu0  ;;  %691 = vst [vmem:[%s2133_s3 + $0x1c8] sm:$0xff] %v1975_v16  ;;  %v1986_v26 = vadd.f32 %v1463_v17, %v1674_v40  ;;  %v619_v27 = vpop.f32.mrf.mxu1 }
 0x11d   :  { %v1110_v31 = vadd.f32 %v1109_v19, %v484_v41  ;;  %v1242_v32 = vadd.f32 %v1241_v18, %v1179_v20  ;;  %664 = vst [vmem:[%s2133_s3 + $0xf0] sm:$0xff] %v500_v23  ;;  %v492_v34 = vadd.f32 %v1674_v40, %v491_v25  ;;  %v1997_v37 = vadd.f32 %v1674_v40, %v619_v27 }
 0x11e   :  { %v1432_v36 = vpop.f32.mrf.mxu0  ;;  %696 = vst [vmem:[%s2133_s3 + $0x1f0] sm:$0xff] %v1986_v26  ;;  %v1464_v39 = vpop.f32.mrf.mxu1  ;;  %v1184_v8 = vmul.f32 %v500_v23, %v500_v23  ;;  %v1187_v25 = vmul.f32 %v1711_v56, %v1711_v56 }
 0x11f   :  { %v1243_v46 = vadd.f32 %v1242_v32, %v1180_v29  ;;  %662 = vst [vmem:[%s2133_s3 + $0xe0] sm:$0xff] %v492_v34  ;;  %v1111_v41 = vadd.f32 %v1110_v31, %v487_v1  ;;  %v503_v47 = vadd.f32 %v1432_v36, %v1674_v40  ;;  %694 = vst [vmem:[%s2133_s3 + $0x1e0] sm:$0xff] %v1997_v37 }
 0x120   :  { %v494_v50 = vpop.f32.mrf.mxu0  ;;  %v2008_v51 = vadd.f32 %v1464_v39, %v1674_v40  ;;  %v622_v54 = vpop.f32.mrf.mxu1  ;;  %v1182_v58 = vmul.f32 %v492_v34, %v492_v34  ;;  %v1188_v29 = vmul.f32 %v1678_v44, %v1678_v44  ;;  %v1189_v32 = vmul.f32 %v1700_v52, %v1700_v52 }
 0x121   :  { %v1112_v55 = vadd.f32 %v1111_v41, %v492_v34  ;;  %v1244_v60 = vadd.f32 %v1243_v46, %v1181_v42  ;;  %665 = vst [vmem:[%s2133_s3 + $0xf8] sm:$0xff] %v503_v47  ;;  %v495_v62 = vadd.f32 %v1674_v40, %v494_v50  ;;  %v2019_v63 = vadd.f32 %v1674_v40, %v622_v54 }
 0x122   :  { %697 = vst [vmem:[%s2133_s3 + $0x1f8] sm:$0xff] %v2008_v51  ;;  %v1185_v11 = vmul.f32 %v503_v47, %v503_v47  ;;  %v1186_v40 = vmul.f32 %v1689_v48, %v1689_v48  ;;  %v1190_v39 = vmul.f32 %v1733_v7, %v1733_v7  ;;  %v1191_v41 = vmul.f32 %v1755_v21, %v1755_v21 }
 0x123   :  { %v1245_v1 = vadd.f32 %v1244_v60, %v1182_v58  ;;  %663 = vst [vmem:[%s2133_s3 + $0xe8] sm:$0xff] %v495_v62  ;;  %v1113_v2 = vadd.f32 %v1112_v55, %v495_v62  ;;  %v1183_v6 = vmul.f32 %v495_v62, %v495_v62  ;;  %695 = vst [vmem:[%s2133_s3 + $0x1e8] sm:$0xff] %v2019_v63 }
 0x124   :  { %v1194_v58 = vmul.f32 %v1777_v35, %v1777_v35 }
 0x125   :  { %v1114_v9 = vadd.f32 %v1113_v2, %v500_v23  ;;  %v1246_v10 = vadd.f32 %v1245_v1, %v1183_v6  ;;  %v1195_v1 = vmul.f32 %v1799_v53, %v1799_v53 }
 0x127   :  { %v1247_v12 = vadd.f32 %v1246_v10, %v1184_v8  ;;  %v1115_v17 = vadd.f32 %v1114_v9, %v503_v47  ;;  %v1198_v10 = vmul.f32 %v1821_v5, %v1821_v5 }
 0x129   :  { %v1116_v18 = vadd.f32 %v1115_v17, %v1689_v48  ;;  %v1248_v19 = vadd.f32 %v1247_v12, %v1185_v11  ;;  %v1199_v17 = vmul.f32 %v1843_v22, %v1843_v22 }
 0x12b   :  { %v1117_v20 = vadd.f32 %v1116_v18, %v1711_v56  ;;  %v1249_v27 = vadd.f32 %v1248_v19, %v1186_v40 }
 0x12d   :  { %v1118_v23 = vadd.f32 %v1117_v20, %v1678_v44  ;;  %v1250_v31 = vadd.f32 %v1249_v27, %v1187_v25  ;;  %v1192_v44 = vmul.f32 %v1722_v0, %v1722_v0  ;;  %v1202_v25 = vmul.f32 %v1865_v38, %v1865_v38 }
 0x12f   :  { %v1251_v34 = vadd.f32 %v1250_v31, %v1188_v29  ;;  %v1119_v36 = vadd.f32 %v1118_v23, %v1700_v52  ;;  %v1193_v52 = vmul.f32 %v1744_v14, %v1744_v14  ;;  %v1203_v23 = vmul.f32 %v1887_v59, %v1887_v59 }
 0x131   :  { %v1120_v48 = vadd.f32 %v1119_v36, %v1733_v7  ;;  %v1252_v42 = vadd.f32 %v1251_v34, %v1189_v32 }
 0x133   :  { %v1253_v56 = vadd.f32 %v1252_v42, %v1190_v39  ;;  %v1121_v46 = vadd.f32 %v1120_v48, %v1755_v21  ;;  %v1206_v48 = vmul.f32 %v1909_v15, %v1909_v15 }
 0x135   :  { %v1122_v47 = vadd.f32 %v1121_v46, %v1722_v0  ;;  %v1254_v50 = vadd.f32 %v1253_v56, %v1191_v41  ;;  %v1196_v0 = vmul.f32 %v1766_v28, %v1766_v28  ;;  %v1207_v56 = vmul.f32 %v1931_v33, %v1931_v33 }
 0x137   :  { %v1255_v54 = vadd.f32 %v1254_v50, %v1192_v44  ;;  %v1123_v55 = vadd.f32 %v1122_v47, %v1744_v14  ;;  %v1197_v14 = vmul.f32 %v1788_v43, %v1788_v43  ;;  %v1210_v50 = vmul.f32 %v1953_v57, %v1953_v57 }
 0x139   :  { %v1124_v7 = vadd.f32 %v1123_v55, %v1777_v35  ;;  %v1256_v60 = vadd.f32 %v1255_v54, %v1193_v52  ;;  %v1211_v55 = vmul.f32 %v1975_v16, %v1975_v16 }
 0x13b   :  { %v1257_v62 = vadd.f32 %v1256_v60, %v1194_v58  ;;  %v1125_v21 = vadd.f32 %v1124_v7, %v1799_v53 }
 0x13d   :  { %v1126_v2 = vadd.f32 %v1125_v21, %v1766_v28  ;;  %v1258_v6 = vadd.f32 %v1257_v62, %v1195_v1  ;;  %v1200_v28 = vmul.f32 %v1810_v61, %v1810_v61  ;;  %v1214_v21 = vmul.f32 %v1997_v37, %v1997_v37 }
 0x13f   :  { %v1259_v8 = vadd.f32 %v1258_v6, %v1196_v0  ;;  %v1127_v9 = vadd.f32 %v1126_v2, %v1788_v43  ;;  %v1201_v43 = vmul.f32 %v1832_v13, %v1832_v13  ;;  %v1215_v2 = vmul.f32 %v2019_v63, %v2019_v63 }
 0x141   :  { %v1128_v35 = vadd.f32 %v1127_v9, %v1821_v5  ;;  %v1260_v11 = vadd.f32 %v1259_v8, %v1197_v14 }
 0x143   :  { %v1261_v12 = vadd.f32 %v1260_v11, %v1198_v10  ;;  %v1129_v53 = vadd.f32 %v1128_v35, %v1843_v22  ;;  %v699_v10 = vlaneseq }
 0x145   :  { %v1130_v40 = vadd.f32 %v1129_v53, %v1810_v61  ;;  %v1262_v18 = vadd.f32 %v1261_v12, %v1199_v17  ;;  %v1204_v61 = vmul.f32 %v1854_v30, %v1854_v30 }
 0x147   :  { %v1263_v19 = vadd.f32 %v1262_v18, %v1200_v28  ;;  %v1131_v20 = vadd.f32 %v1130_v40, %v1832_v13  ;;  %v1205_v13 = vmul.f32 %v1876_v49, %v1876_v49 }
 0x149   :  { %v1132_v5 = vadd.f32 %v1131_v20, %v1865_v38  ;;  %v1264_v27 = vadd.f32 %v1263_v19, %v1201_v43 }
 0x14b   :  { %v1265_v29 = vadd.f32 %v1264_v27, %v1202_v25  ;;  %v1133_v22 = vadd.f32 %v1132_v5, %v1887_v59 }
 0x14d   :  { %v1134_v31 = vadd.f32 %v1133_v22, %v1854_v30  ;;  %v1266_v32 = vadd.f32 %v1265_v29, %v1203_v23  ;;  %v1208_v30 = vmul.f32 %v1898_v4, %v1898_v4 }
 0x14f   :  { %v1267_v34 = vadd.f32 %v1266_v32, %v1204_v61  ;;  %v1135_v36 = vadd.f32 %v1134_v31, %v1876_v49  ;;  %v1209_v49 = vmul.f32 %v1920_v24, %v1920_v24 }
 0x151   :  { %v1136_v38 = vadd.f32 %v1135_v36, %v1909_v15  ;;  %v1268_v39 = vadd.f32 %v1267_v34, %v1205_v13 }
 0x153   :  { %v1269_v42 = vadd.f32 %v1268_v39, %v1206_v48  ;;  %v1137_v59 = vadd.f32 %v1136_v38, %v1931_v33 }
 0x155   :  { %v1138_v46 = vadd.f32 %v1137_v59, %v1898_v4  ;;  %v1270_v41 = vadd.f32 %v1269_v42, %v1207_v56  ;;  %v1212_v4 = vmul.f32 %v1942_v45, %v1942_v45 }
 0x157   :  { %v1271_v44 = vadd.f32 %v1270_v41, %v1208_v30  ;;  %v1139_v47 = vadd.f32 %v1138_v46, %v1920_v24  ;;  %v1213_v24 = vmul.f32 %v1964_v3, %v1964_v3 }
 0x159   :  { %v1140_v15 = vadd.f32 %v1139_v47, %v1953_v57  ;;  %v1272_v52 = vadd.f32 %v1271_v44, %v1209_v49 }
 0x15b   :  { %v1273_v54 = vadd.f32 %v1272_v52, %v1210_v50  ;;  %v1141_v33 = vadd.f32 %v1140_v15, %v1975_v16 }
 0x15d   :  { %v1142_v7 = vadd.f32 %v1141_v33, %v1942_v45  ;;  %v1274_v58 = vadd.f32 %v1273_v54, %v1211_v55  ;;  %v1216_v45 = vmul.f32 %v1986_v26, %v1986_v26 }
 0x15f   :  { %v1275_v60 = vadd.f32 %v1274_v58, %v1212_v4  ;;  %v1143_v62 = vadd.f32 %v1142_v7, %v1964_v3  ;;  %v1217_v3 = vmul.f32 %v2008_v51, %v2008_v51 }
 0x161   :  { %v1144_v57 = vadd.f32 %v1143_v62, %v1997_v37  ;;  %v1276_v1 = vadd.f32 %v1275_v60, %v1213_v24 }
 0x163   :  { %v1277_v0 = vadd.f32 %v1276_v1, %v1214_v21  ;;  %v1145_v16 = vadd.f32 %v1144_v57, %v2019_v63  ;;  %v700_v63 = vshrl.u32 %v699_v10, 7 }
 0x165   :  { %v1146_v6 = vadd.f32 %v1145_v16, %v1986_v26  ;;  %v1278_v14 = vadd.f32 %v1277_v0, %v1215_v2  ;;  %vm1287_vm0 = vcmp.eq.s32.totalorder %v700_v63, 0 }
 0x167   :  { %v1147_v8 = vadd.f32 %v1146_v6, %v2008_v51  ;;  %v1279_v9 = vadd.f32 %v1278_v14, %v1216_v45 }
 0x169   :  { %v1148_v37 = vrot.slane %v1147_v8, 4  ;;  %v1280_v35 = vadd.f32 %v1279_v9, %v1217_v3 }
 0x16b   :  { %v1149_v11 = vadd.f32 %v1148_v37, %v1147_v8  ;;  %v1281_v12 = vrot.slane %v1280_v35, 4 }
 0x16d   :  { %v1150_v53 = vrot.slane %v1149_v11, 2  ;;  %v1282_v17 = vadd.f32 %v1281_v12, %v1280_v35 }
 0x16f   :  { %v1151_v28 = vadd.f32 %v1150_v53, %v1149_v11  ;;  %v1283_v40 = vrot.slane %v1282_v17, 2 }
 0x171   :  { %v1152_v18 = vrot.slane %v1151_v28, 1  ;;  %v1284_v43 = vadd.f32 %v1283_v40, %v1282_v17 }
 0x173   :  { %v1153_v26 = vadd.f32 %v1152_v18, %v1151_v28  ;;  %v1285_v19 = vrot.slane %v1284_v43, 1 }
 0x175   :  { %v1286_v20 = vadd.f32 %v1285_v19, %v1284_v43  ;;  %v1288_v5 = vsel %vm1287_vm0, %v1153_v26, 0.0 }
 0x176   :  { %1289 = vst [vmem:[%s2134_s4] sm:$0xff] %v1288_v5 }
 0x177   :  { %v1290_v51 = vsel %vm1287_vm0, %v1286_v20, 0.0 }
 0x178   :  { %1291 = vst [vmem:[%s2135_s5] sm:$0xff] %v1290_v51 }

// kernel: rsu7_forward.33
= control target key start
LH: loop header
LB: loop body
LE: loop exit
PB: predicated region body
PF: predicated region fallthrough
CT: control target
= control target key end

     0   :  { %s254_s0 = inlined_call_operand.vmem [shape: f32[128,128], index: 0, kind: input, shape index: {}, may-alias: {0,3}]   ;;  %s255_s1 = inlined_call_operand.vmem [shape: f32[1,128], index: 1, kind: input, shape index: {}]   ;;  %s256_s2 = inlined_call_operand.vmem [shape: f32[1,128], index: 2, kind: input, shape index: {}]   ;;  %s257_s3 = inlined_call_operand.vmem [shape: f32[128,128], index: 3, kind: output, shape index: {}, may-alias: {0,3}]  }
   0x1   :  { %v14_v0 = vld [vmem:[%s254_s0] sm:$0xff]  ;;  %v15_v4 = vld [vmem:[%s254_s0 + $0x8] sm:$0xff]  ;;  %v16_v5 = vld [vmem:[%s254_s0 + $0x10] sm:$0xff] }
   0x2   :  { %v112_v1 = vld [vmem:[%s255_s1] ss:$0 sm:$0xff]  ;;  %v17_v6 = vld [vmem:[%s254_s0 + $0x18] sm:$0xff]  ;;  %v19_v11 = vld [vmem:[%s254_s0 + $0x28] sm:$0xff] }
   0x3   :  { %v143_v2 = vld [vmem:[%s256_s2] ss:$0 sm:$0xff]  ;;  %v37_v3 = vmul.f32 %v112_v1, %v14_v0  ;;  %v38_v7 = vmul.f32 %v112_v1, %v15_v4  ;;  %v39_v8 = vmul.f32 %v112_v1, %v16_v5  ;;  %v40_v9 = vmul.f32 %v112_v1, %v17_v6  ;;  %v20_v12 = vld [vmem:[%s254_s0 + $0x30] sm:$0xff]  ;;  %v21_v17 = vld [vmem:[%s254_s0 + $0x38] sm:$0xff] }
   0x4   :  { %v18_v10 = vld [vmem:[%s254_s0 + $0x20] sm:$0xff]  ;;  %v42_v15 = vmul.f32 %v112_v1, %v19_v11  ;;  %v43_v16 = vmul.f32 %v112_v1, %v20_v12  ;;  %v44_v21 = vmul.f32 %v112_v1, %v21_v17  ;;  %v23_v27 = vld [vmem:[%s254_s0 + $0x48] sm:$0xff]  ;;  %v24_v28 = vld [vmem:[%s254_s0 + $0x50] sm:$0xff] }
   0x5   :  { %v60_v13 = vadd.f32 %v143_v2, %v37_v3  ;;  %v41_v14 = vmul.f32 %v112_v1, %v18_v10  ;;  %v61_v18 = vadd.f32 %v143_v2, %v38_v7  ;;  %v62_v19 = vadd.f32 %v143_v2, %v39_v8  ;;  %v22_v22 = vld [vmem:[%s254_s0 + $0x40] sm:$0xff]  ;;  %v25_v29 = vld [vmem:[%s254_s0 + $0x58] sm:$0xff]  ;;  %v27_v35 = vld [vmem:[%s254_s0 + $0x68] sm:$0xff] }
   0x6   :  { %v63_v20 = vadd.f32 %v143_v2, %v40_v9  ;;  %v65_v25 = vadd.f32 %v143_v2, %v42_v15  ;;  %v66_v26 = vadd.f32 %v143_v2, %v43_v16  ;;  %v67_v33 = vadd.f32 %v143_v2, %v44_v21  ;;  %v26_v34 = vld [vmem:[%s254_s0 + $0x60] sm:$0xff]  ;;  %v28_v36 = vld [vmem:[%s254_s0 + $0x70] sm:$0xff] }
   0x7   :  { %v76_v23 = vmax.f32 %v60_v13, 0.0  ;;  %v64_v24 = vadd.f32 %v143_v2, %v41_v14  ;;  %v77_v30 = vmax.f32 %v61_v18, 0.0  ;;  %v78_v31 = vmax.f32 %v62_v19, 0.0 }
   0x8   :  { %v79_v32 = vmax.f32 %v63_v20, 0.0  ;;  %v81_v38 = vmax.f32 %v65_v25, 0.0  ;;  %v82_v39 = vmax.f32 %v66_v26, 0.0  ;;  %v45_v40 = vmul.f32 %v112_v1, %v22_v22 }
   0x9   :  { %92 = vst [vmem:[%s257_s3] sm:$0xff] %v76_v23  ;;  %v80_v37 = vmax.f32 %v64_v24, 0.0  ;;  %v83_v42 = vmax.f32 %v67_v33, 0.0  ;;  %v46_v43 = vmul.f32 %v112_v1, %v23_v27  ;;  %v47_v44 = vmul.f32 %v112_v1, %v24_v28 }
   0xa   :  { %v48_v45 = vmul.f32 %v112_v1, %v25_v29  ;;  %v68_v46 = vadd.f32 %v143_v2, %v45_v40  ;;  %v49_v47 = vmul.f32 %v112_v1, %v26_v34  ;;  %v50_v48 = vmul.f32 %v112_v1, %v27_v35 }
   0xb   :  { %v51_v49 = vmul.f32 %v112_v1, %v28_v36  ;;  %v69_v50 = vadd.f32 %v143_v2, %v46_v43  ;;  %v70_v51 = vadd.f32 %v143_v2, %v47_v44 }
   0xc   :  { %v71_v52 = vadd.f32 %v143_v2, %v48_v45  ;;  %v84_v54 = vmax.f32 %v68_v46, 0.0  ;;  %v72_v55 = vadd.f32 %v143_v2, %v49_v47  ;;  %v73_v56 = vadd.f32 %v143_v2, %v50_v48 }
   0xd   :  { %v74_v57 = vadd.f32 %v143_v2, %v51_v49  ;;  %v85_v58 = vmax.f32 %v69_v50, 0.0  ;;  %v86_v59 = vmax.f32 %v70_v51, 0.0 }
   0xe   :  { %v87_v60 = vmax.f32 %v71_v52, 0.0  ;;  %v88_v62 = vmax.f32 %v72_v55, 0.0  ;;  %v89_v63 = vmax.f32 %v73_v56, 0.0 }
   0xf   :  { %v90_v0 = vmax.f32 %v74_v57, 0.0 }
  0x10   :  { %v29_v41 = vld [vmem:[%s254_s0 + $0x78] sm:$0xff] }
  0x11   :  { %93 = vst [vmem:[%s257_s3 + $0x8] sm:$0xff] %v77_v30  ;;  %94 = vst [vmem:[%s257_s3 + $0x10] sm:$0xff] %v78_v31  ;;  %v52_v53 = vmul.f32 %v112_v1, %v29_v41 }
  0x12   :  { %95 = vst [vmem:[%s257_s3 + $0x18] sm:$0xff] %v79_v32  ;;  %96 = vst [vmem:[%s257_s3 + $0x20] sm:$0xff] %v80_v37 }
  0x13   :  { %97 = vst [vmem:[%s257_s3 + $0x28] sm:$0xff] %v81_v38  ;;  %98 = vst [vmem:[%s257_s3 + $0x30] sm:$0xff] %v82_v39  ;;  %v75_v61 = vadd.f32 %v143_v2, %v52_v53 }
  0x14   :  { %99 = vst [vmem:[%s257_s3 + $0x38] sm:$0xff] %v83_v42  ;;  %100 = vst [vmem:[%s257_s3 + $0x40] sm:$0xff] %v84_v54 }
  0x15   :  { %101 = vst [vmem:[%s257_s3 + $0x48] sm:$0xff] %v85_v58  ;;  %102 = vst [vmem:[%s257_s3 + $0x50] sm:$0xff] %v86_v59  ;;  %v91_v1 = vmax.f32 %v75_v61, 0.0 }
  0x16   :  { %103 = vst [vmem:[%s257_s3 + $0x58] sm:$0xff] %v87_v60  ;;  %104 = vst [vmem:[%s257_s3 + $0x60] sm:$0xff] %v88_v62 }
  0x17   :  { %105 = vst [vmem:[%s257_s3 + $0x68] sm:$0xff] %v89_v63  ;;  %106 = vst [vmem:[%s257_s3 + $0x70] sm:$0xff] %v90_v0 }
  0x18   :  { %107 = vst [vmem:[%s257_s3 + $0x78] sm:$0xff] %v91_v1 }

// kernel: rsu7_forward.32
= control target key start
LH: loop header
LB: loop body
LE: loop exit
PB: predicated region body
PF: predicated region fallthrough
CT: control target
= control target key end

     0   :  { %s684_s1 = inlined_call_operand.vmem [shape: bf16[128,128], index: 1, kind: input, shape index: {}]   ;;  %s685_s0 = inlined_call_operand.vmem [shape: bf16[128,128], index: 0, kind: input, shape index: {}]   ;;  %s686_s2 = inlined_call_operand.vmem [shape: f32[1,128], index: 2, kind: input, shape index: {}]   ;;  %s687_s3 = inlined_call_operand.vmem [shape: f32[128,128], index: 3, kind: output, shape index: {0}]   ;;  %s688_s4 = inlined_call_operand.vmem [shape: f32[8,128], index: 4, kind: output, shape index: {1}]   ;;  %s689_s5 = inlined_call_operand.vmem [shape: f32[8,128], index: 5, kind: output, shape index: {2}]  }
   0x1   :  { %v521_v0 = vld [vmem:[%s684_s1 + $0x38] sm:$0xff]   ;;  %v522_v1 = vld [vmem:[%s684_s1 + $0x30] sm:$0xff]   ;;  %v523_v2 = vld [vmem:[%s684_s1 + $0x28] sm:$0xff]  }
   0x2   :  { %473 = vmatprep.subr.bf16.mxu0 %v521_v0  ;;  %505 = vmatprep.subr.bf16.mxu1 %v521_v0  ;;  %v524_v3 = vld [vmem:[%s684_s1 + $0x20] sm:$0xff]   ;;  %v525_v5 = vld [vmem:[%s684_s1 + $0x18] sm:$0xff]   ;;  %v526_v7 = vld [vmem:[%s684_s1 + $0x10] sm:$0xff]  }
   0x3   :  { %474 = vmatpush3.bf16.msra.mxu0 %v521_v0  ;;  %513 = vmatpush3.bf16.msra.mxu1 %v521_v0  ;;  %v529_v4 = vld [vmem:[%s685_s0] sm:$0xff]   ;;  %v527_v8 = vld [vmem:[%s684_s1 + $0x8] sm:$0xff]   ;;  %v531_v12 = vld [vmem:[%s685_s0 + $0x10] sm:$0xff]  }
   0x4   :  { %475 = vmatprep.subr.bf16.mxu0 %v522_v1  ;;  %506 = vmatprep.subr.bf16.mxu1 %v522_v1  ;;  %v533_v6 = vld [vmem:[%s685_s0 + $0x20] sm:$0xff]   ;;  %v530_v10 = vld [vmem:[%s685_s0 + $0x8] sm:$0xff]   ;;  %v535_v13 = vld [vmem:[%s685_s0 + $0x30] sm:$0xff]  }
   0x5   :  { %489 = vmatprep.mubr.bf16.mxu0 %v529_v4  ;;  %497 = vmatprep.mubr.bf16.mxu1 %v533_v6  ;;  %v528_v9 = vld [vmem:[%s684_s1] sm:$0xff]   ;;  %v534_v11 = vld [vmem:[%s685_s0 + $0x28] sm:$0xff]   ;;  %v532_v14 = vld [vmem:[%s685_s0 + $0x18] sm:$0xff]  }
   0x6   :  { %v536_v15 = vld [vmem:[%s685_s0 + $0x38] sm:$0xff]   ;;  %v440_v16 = vld [vmem:[%s686_s2] ss:$0 sm:$0xff] }
   0x7   :  { %476 = vmatpush3.bf16.msra.mxu0 %v522_v1  ;;  %514 = vmatpush3.bf16.msra.mxu1 %v522_v1 }
   0x8   :  { %477 = vmatprep.subr.bf16.mxu0 %v523_v2  ;;  %507 = vmatprep.subr.bf16.mxu1 %v523_v2 }
   0xb   :  { %478 = vmatpush3.bf16.msra.mxu0 %v523_v2  ;;  %515 = vmatpush3.bf16.msra.mxu1 %v523_v2 }
   0xc   :  { %479 = vmatprep.subr.bf16.mxu0 %v524_v3  ;;  %508 = vmatprep.subr.bf16.mxu1 %v524_v3 }
   0xf   :  { %480 = vmatpush3.bf16.msra.mxu0 %v524_v3  ;;  %516 = vmatpush3.bf16.msra.mxu1 %v524_v3 }
  0x10   :  { %481 = vmatprep.subr.bf16.mxu0 %v525_v5  ;;  %509 = vmatprep.subr.bf16.mxu1 %v525_v5 }
  0x13   :  { %482 = vmatpush3.bf16.msra.mxu0 %v525_v5  ;;  %517 = vmatpush3.bf16.msra.mxu1 %v525_v5 }
  0x14   :  { %483 = vmatprep.subr.bf16.mxu0 %v526_v7  ;;  %510 = vmatprep.subr.bf16.mxu1 %v526_v7 }
  0x17   :  { %484 = vmatpush3.bf16.msra.mxu0 %v526_v7  ;;  %518 = vmatpush3.bf16.msra.mxu1 %v526_v7 }
  0x18   :  { %485 = vmatprep.subr.bf16.mxu0 %v527_v8  ;;  %511 = vmatprep.subr.bf16.mxu1 %v527_v8 }
  0x1b   :  { %486 = vmatpush3.bf16.msra.mxu0 %v527_v8  ;;  %519 = vmatpush3.bf16.msra.mxu1 %v527_v8 }
  0x1c   :  { %487 = vmatprep.subr.bf16.mxu0 %v528_v9  ;;  %512 = vmatprep.subr.bf16.mxu1 %v528_v9 }
  0x1f   :  { %488 = vmatpush3.bf16.msra.mxu0 %v528_v9  ;;  %520 = vmatpush3.bf16.msra.mxu1 %v528_v9 }
  0x22   :  { %490 = vmatmul.mubr.bf16.vlgmr.msra.gmra.mxu0 %v530_v10  ;;  %498 = vmatmul.mubr.bf16.vlgmr.msra.gmra.mxu1 %v534_v11 }
  0x23   :  { %493 = vmatprep.mubr.bf16.mxu0 %v531_v12  ;;  %501 = vmatprep.mubr.bf16.mxu1 %v535_v13 }
  0x2a   :  { %494 = vmatmul.mubr.bf16.gmra.mxu0 %v532_v14  ;;  %502 = vmatmul.mubr.bf16.gmra.mxu1 %v536_v15 }
  0xe2   :  { %v491_v17 = vpop.f32.mrf.mxu0  ;;  %v499_v18 = vpop.f32.mrf.mxu1 }
  0xe3   :  { %v196_v19 = vadd.f32 %v491_v17, %v440_v16  ;;  %v618_v20 = vadd.f32 %v499_v18, %v440_v16 }
  0xe4   :  { %v187_v21 = vpop.f32.mrf.mxu0  ;;  %v219_v22 = vpop.f32.mrf.mxu1 }
  0xe5   :  { %252 = vst [vmem:[%s687_s3 + $0x10] sm:$0xff] %v196_v19  ;;  %v188_v23 = vadd.f32 %v440_v16, %v187_v21  ;;  %260 = vst [vmem:[%s687_s3 + $0x50] sm:$0xff] %v618_v20  ;;  %v220_v24 = vadd.f32 %v440_v16, %v219_v22  ;;  %v388_v42 = vmul.f32 %v196_v19, %v196_v19 }
  0xe6   :  { %v492_v25 = vpop.f32.mrf.mxu0  ;;  %v500_v26 = vpop.f32.mrf.mxu1  ;;  %v396_v12 = vmul.f32 %v618_v20, %v618_v20 }
  0xe7   :  { %250 = vst [vmem:[%s687_s3] sm:$0xff] %v188_v23  ;;  %v199_v27 = vadd.f32 %v492_v25, %v440_v16  ;;  %258 = vst [vmem:[%s687_s3 + $0x40] sm:$0xff] %v220_v24  ;;  %v633_v28 = vadd.f32 %v500_v26, %v440_v16  ;;  %v386_v35 = vmul.f32 %v188_v23, %v188_v23 }
  0xe8   :  { %v190_v29 = vpop.f32.mrf.mxu0  ;;  %v222_v30 = vpop.f32.mrf.mxu1  ;;  %v394_v6 = vmul.f32 %v220_v24, %v220_v24 }
  0xe9   :  { %253 = vst [vmem:[%s687_s3 + $0x18] sm:$0xff] %v199_v27  ;;  %v191_v31 = vadd.f32 %v440_v16, %v190_v29  ;;  %261 = vst [vmem:[%s687_s3 + $0x58] sm:$0xff] %v633_v28  ;;  %v223_v32 = vadd.f32 %v440_v16, %v222_v30  ;;  %v389_v49 = vmul.f32 %v199_v27, %v199_v27 }
  0xea   :  { %v495_v33 = vpop.f32.mrf.mxu0  ;;  %v503_v34 = vpop.f32.mrf.mxu1  ;;  %v397_v15 = vmul.f32 %v633_v28, %v633_v28 }
  0xeb   :  { %251 = vst [vmem:[%s687_s3 + $0x8] sm:$0xff] %v191_v31  ;;  %v365_v36 = vadd.f32 %v191_v31, %v188_v23  ;;  %v387_v37 = vmul.f32 %v191_v31, %v191_v31  ;;  %v212_v38 = vadd.f32 %v495_v33, %v440_v16  ;;  %259 = vst [vmem:[%s687_s3 + $0x48] sm:$0xff] %v223_v32  ;;  %v267_v33 = vlaneseq }
  0xec   :  { %v203_v39 = vpop.f32.mrf.mxu0  ;;  %v244_v40 = vadd.f32 %v503_v34, %v440_v16  ;;  %v235_v41 = vpop.f32.mrf.mxu1  ;;  %v395_v10 = vmul.f32 %v223_v32, %v223_v32 }
  0xed   :  { %v366_v43 = vadd.f32 %v365_v36, %v196_v19  ;;  %v402_v44 = vadd.f32 %v387_v37, %v386_v35  ;;  %256 = vst [vmem:[%s687_s3 + $0x30] sm:$0xff] %v212_v38  ;;  %v204_v45 = vadd.f32 %v440_v16, %v203_v39  ;;  %v236_v47 = vadd.f32 %v440_v16, %v235_v41 }
  0xee   :  { %v496_v46 = vpop.f32.mrf.mxu0  ;;  %264 = vst [vmem:[%s687_s3 + $0x70] sm:$0xff] %v244_v40  ;;  %v504_v48 = vpop.f32.mrf.mxu1  ;;  %v392_v0 = vmul.f32 %v212_v38, %v212_v38  ;;  %v400_v25 = vmul.f32 %v244_v40, %v244_v40 }
  0xef   :  { %v403_v50 = vadd.f32 %v402_v44, %v388_v42  ;;  %254 = vst [vmem:[%s687_s3 + $0x20] sm:$0xff] %v204_v45  ;;  %v367_v51 = vadd.f32 %v366_v43, %v199_v27  ;;  %v215_v52 = vadd.f32 %v496_v46, %v440_v16  ;;  %262 = vst [vmem:[%s687_s3 + $0x60] sm:$0xff] %v236_v47 }
  0xf0   :  { %v206_v53 = vpop.f32.mrf.mxu0  ;;  %v247_v54 = vadd.f32 %v504_v48, %v440_v16  ;;  %v238_v55 = vpop.f32.mrf.mxu1  ;;  %v390_v57 = vmul.f32 %v204_v45, %v204_v45  ;;  %v398_v19 = vmul.f32 %v236_v47, %v236_v47 }
  0xf1   :  { %v368_v56 = vadd.f32 %v367_v51, %v204_v45  ;;  %v404_v58 = vadd.f32 %v403_v50, %v389_v49  ;;  %257 = vst [vmem:[%s687_s3 + $0x38] sm:$0xff] %v215_v52  ;;  %v207_v59 = vadd.f32 %v440_v16, %v206_v53  ;;  %v239_v60 = vadd.f32 %v440_v16, %v238_v55 }
  0xf2   :  { %265 = vst [vmem:[%s687_s3 + $0x78] sm:$0xff] %v247_v54  ;;  %v393_v3 = vmul.f32 %v215_v52, %v215_v52  ;;  %v401_v29 = vmul.f32 %v247_v54, %v247_v54 }
  0xf3   :  { %v405_v61 = vadd.f32 %v404_v58, %v390_v57  ;;  %255 = vst [vmem:[%s687_s3 + $0x28] sm:$0xff] %v207_v59  ;;  %v369_v62 = vadd.f32 %v368_v56, %v207_v59  ;;  %v391_v63 = vmul.f32 %v207_v59, %v207_v59  ;;  %263 = vst [vmem:[%s687_s3 + $0x68] sm:$0xff] %v239_v60 }
  0xf5   :  { %v370_v1 = vadd.f32 %v369_v62, %v212_v38  ;;  %v406_v2 = vadd.f32 %v405_v61, %v391_v63 }
  0xf7   :  { %v407_v4 = vadd.f32 %v406_v2, %v392_v0  ;;  %v371_v5 = vadd.f32 %v370_v1, %v215_v52 }
  0xf9   :  { %v372_v7 = vadd.f32 %v371_v5, %v220_v24  ;;  %v408_v8 = vadd.f32 %v407_v4, %v393_v3  ;;  %v399_v24 = vmul.f32 %v239_v60, %v239_v60 }
  0xfb   :  { %v373_v9 = vadd.f32 %v372_v7, %v223_v32  ;;  %v409_v11 = vadd.f32 %v408_v8, %v394_v6 }
  0xfd   :  { %v374_v13 = vadd.f32 %v373_v9, %v618_v20  ;;  %v410_v14 = vadd.f32 %v409_v11, %v395_v10 }
  0xff   :  { %v411_v16 = vadd.f32 %v410_v14, %v396_v12  ;;  %v375_v17 = vadd.f32 %v374_v13, %v633_v28  ;;  %v268_v28 = vshrl.u32 %v267_v33, 7 }
 0x101   :  { %v376_v18 = vadd.f32 %v375_v17, %v236_v47  ;;  %v412_v21 = vadd.f32 %v411_v16, %v397_v15  ;;  %vm423_vm0 = vcmp.eq.s32.totalorder %v268_v28, 0 }
 0x103   :  { %v413_v22 = vadd.f32 %v412_v21, %v398_v19  ;;  %v377_v23 = vadd.f32 %v376_v18, %v239_v60 }
 0x105   :  { %v378_v26 = vadd.f32 %v377_v23, %v244_v40  ;;  %v414_v27 = vadd.f32 %v413_v22, %v399_v24 }
 0x107   :  { %v379_v30 = vadd.f32 %v378_v26, %v247_v54  ;;  %v415_v31 = vadd.f32 %v414_v27, %v400_v25 }
 0x109   :  { %v380_v20 = vrot.slane %v379_v30, 4  ;;  %v416_v32 = vadd.f32 %v415_v31, %v401_v29 }
 0x10b   :  { %v381_v34 = vadd.f32 %v380_v20, %v379_v30  ;;  %v417_v35 = vrot.slane %v416_v32, 4 }
 0x10d   :  { %v382_v36 = vrot.slane %v381_v34, 2  ;;  %v418_v37 = vadd.f32 %v417_v35, %v416_v32 }
 0x10f   :  { %v383_v38 = vadd.f32 %v382_v36, %v381_v34  ;;  %v419_v39 = vrot.slane %v418_v37, 2 }
 0x111   :  { %v384_v41 = vrot.slane %v383_v38, 1  ;;  %v420_v42 = vadd.f32 %v419_v39, %v418_v37 }
 0x113   :  { %v385_v43 = vadd.f32 %v384_v41, %v383_v38  ;;  %v421_v44 = vrot.slane %v420_v42, 1 }
 0x115   :  { %v422_v40 = vadd.f32 %v421_v44, %v420_v42  ;;  %v424_v45 = vsel %vm423_vm0, %v385_v43, 0.0 }
 0x116   :  { %425 = vst [vmem:[%s688_s4] sm:$0xff] %v424_v45 }
 0x117   :  { %v426_v46 = vsel %vm423_vm0, %v422_v40, 0.0 }
 0x118   :  { %427 = vst [vmem:[%s689_s5] sm:$0xff] %v426_v46 }

// kernel: rsu7_forward.35
= control target key start
LH: loop header
LB: loop body
LE: loop exit
PB: predicated region body
PF: predicated region fallthrough
CT: control target
= control target key end

     0   :  { %s104_s0 = inlined_call_operand.vmem [shape: f32[32,128], index: 0, kind: input, shape index: {}, may-alias: {0,3}]   ;;  %s105_s1 = inlined_call_operand.vmem [shape: f32[1,128], index: 1, kind: input, shape index: {}]   ;;  %s106_s2 = inlined_call_operand.vmem [shape: f32[1,128], index: 2, kind: input, shape index: {}]   ;;  %s107_s3 = inlined_call_operand.vmem [shape: f32[32,128], index: 3, kind: output, shape index: {}, may-alias: {0,3}]  }
   0x1   :  { %v14_v0 = vld [vmem:[%s104_s0] sm:$0xff]  ;;  %v15_v4 = vld [vmem:[%s104_s0 + $0x8] sm:$0xff]  ;;  %v16_v5 = vld [vmem:[%s104_s0 + $0x10] sm:$0xff] }
   0x2   :  { %v52_v1 = vld [vmem:[%s105_s1] ss:$0 sm:$0xff]  ;;  %v17_v6 = vld [vmem:[%s104_s0 + $0x18] sm:$0xff] }
   0x3   :  { %v53_v2 = vld [vmem:[%s106_s2] ss:$0 sm:$0xff]  ;;  %v25_v3 = vmul.f32 %v52_v1, %v14_v0  ;;  %v26_v7 = vmul.f32 %v52_v1, %v15_v4  ;;  %v27_v8 = vmul.f32 %v52_v1, %v16_v5  ;;  %v28_v9 = vmul.f32 %v52_v1, %v17_v6 }
   0x5   :  { %v36_v10 = vadd.f32 %v53_v2, %v25_v3  ;;  %v37_v11 = vadd.f32 %v53_v2, %v26_v7  ;;  %v38_v12 = vadd.f32 %v53_v2, %v27_v8  ;;  %v39_v13 = vadd.f32 %v53_v2, %v28_v9 }
   0x7   :  { %v40_v14 = vmax.f32 %v36_v10, 0.0  ;;  %v41_v15 = vmax.f32 %v37_v11, 0.0  ;;  %v42_v16 = vmax.f32 %v38_v12, 0.0  ;;  %v43_v17 = vmax.f32 %v39_v13, 0.0 }
   0x9   :  { %44 = vst [vmem:[%s107_s3] sm:$0xff] %v40_v14  ;;  %45 = vst [vmem:[%s107_s3 + $0x8] sm:$0xff] %v41_v15 }
   0xa   :  { %46 = vst [vmem:[%s107_s3 + $0x10] sm:$0xff] %v42_v16  ;;  %47 = vst [vmem:[%s107_s3 + $0x18] sm:$0xff] %v43_v17 }

// kernel: rsu7_forward.34
= control target key start
LH: loop header
LB: loop body
LE: loop exit
PB: predicated region body
PF: predicated region fallthrough
CT: control target
= control target key end

     0   :  { %v159_v30 = vlaneseq  ;;  %s356_s1 = inlined_call_operand.vmem [shape: bf16[128,128], index: 1, kind: input, shape index: {}]   ;;  %s357_s0 = inlined_call_operand.vmem [shape: bf16[32,128], index: 0, kind: input, shape index: {}]   ;;  %s358_s2 = inlined_call_operand.vmem [shape: f32[1,128], index: 2, kind: input, shape index: {}]   ;;  %s359_s3 = inlined_call_operand.vmem [shape: f32[32,128], index: 3, kind: output, shape index: {0}]   ;;  %s360_s4 = inlined_call_operand.vmem [shape: f32[8,128], index: 4, kind: output, shape index: {1}]   ;;  %s361_s5 = inlined_call_operand.vmem [shape: f32[8,128], index: 5, kind: output, shape index: {2}]  }
   0x1   :  { %v265_v0 = vld [vmem:[%s356_s1 + $0x38] sm:$0xff]   ;;  %v266_v1 = vld [vmem:[%s356_s1 + $0x30] sm:$0xff]   ;;  %v267_v2 = vld [vmem:[%s356_s1 + $0x28] sm:$0xff]  }
   0x2   :  { %245 = vmatprep.subr.bf16.mxu0 %v265_v0  ;;  %v268_v3 = vld [vmem:[%s356_s1 + $0x20] sm:$0xff]   ;;  %v269_v5 = vld [vmem:[%s356_s1 + $0x18] sm:$0xff]   ;;  %v270_v6 = vld [vmem:[%s356_s1 + $0x10] sm:$0xff]   ;;  %v160_v35 = vshrl.u32 %v159_v30, 7 }
   0x3   :  { %246 = vmatpush3.bf16.msra.mxu0 %v265_v0  ;;  %v273_v4 = vld [vmem:[%s357_s0] sm:$0xff]   ;;  %v271_v7 = vld [vmem:[%s356_s1 + $0x8] sm:$0xff]  }
   0x4   :  { %247 = vmatprep.subr.bf16.mxu0 %v266_v1  ;;  %261 = vmatprep.mubr.bf16.mxu0 %v273_v4  ;;  %v272_v8 = vld [vmem:[%s356_s1] sm:$0xff]   ;;  %v274_v9 = vld [vmem:[%s357_s0 + $0x8] sm:$0xff]   ;;  %vm207_vm0 = vcmp.eq.s32.totalorder %v160_v35, 0 }
   0x5   :  { %v224_v10 = vld [vmem:[%s358_s2] ss:$0 sm:$0xff] }
   0x7   :  { %248 = vmatpush3.bf16.msra.mxu0 %v266_v1 }
   0x8   :  { %249 = vmatprep.subr.bf16.mxu0 %v267_v2 }
   0xb   :  { %250 = vmatpush3.bf16.msra.mxu0 %v267_v2 }
   0xc   :  { %251 = vmatprep.subr.bf16.mxu0 %v268_v3 }
   0xf   :  { %252 = vmatpush3.bf16.msra.mxu0 %v268_v3 }
  0x10   :  { %253 = vmatprep.subr.bf16.mxu0 %v269_v5 }
  0x13   :  { %254 = vmatpush3.bf16.msra.mxu0 %v269_v5 }
  0x14   :  { %255 = vmatprep.subr.bf16.mxu0 %v270_v6 }
  0x17   :  { %256 = vmatpush3.bf16.msra.mxu0 %v270_v6 }
  0x18   :  { %257 = vmatprep.subr.bf16.mxu0 %v271_v7 }
  0x1b   :  { %258 = vmatpush3.bf16.msra.mxu0 %v271_v7 }
  0x1c   :  { %259 = vmatprep.subr.bf16.mxu0 %v272_v8 }
  0x1f   :  { %260 = vmatpush3.bf16.msra.mxu0 %v272_v8 }
  0x22   :  { %262 = vmatmul.mubr.bf16.vlgmr.msra.gmra.mxu0 %v274_v9 }
  0xe2   :  { %v263_v11 = vpop.f32.mrf.mxu0 }
  0xe3   :  { %v148_v12 = vadd.f32 %v263_v11, %v224_v10 }
  0xe4   :  { %v139_v13 = vpop.f32.mrf.mxu0 }
  0xe5   :  { %156 = vst [vmem:[%s359_s3 + $0x10] sm:$0xff] %v148_v12  ;;  %v140_v14 = vadd.f32 %v224_v10, %v139_v13  ;;  %v196_v22 = vmul.f32 %v148_v12, %v148_v12 }
  0xe6   :  { %v264_v15 = vpop.f32.mrf.mxu0 }
  0xe7   :  { %154 = vst [vmem:[%s359_s3] sm:$0xff] %v140_v14  ;;  %v151_v16 = vadd.f32 %v264_v15, %v224_v10  ;;  %v194_v19 = vmul.f32 %v140_v14, %v140_v14 }
  0xe8   :  { %v142_v17 = vpop.f32.mrf.mxu0 }
  0xe9   :  { %157 = vst [vmem:[%s359_s3 + $0x18] sm:$0xff] %v151_v16  ;;  %v143_v18 = vadd.f32 %v224_v10, %v142_v17  ;;  %v197_v25 = vmul.f32 %v151_v16, %v151_v16 }
  0xeb   :  { %155 = vst [vmem:[%s359_s3 + $0x8] sm:$0xff] %v143_v18  ;;  %v185_v20 = vadd.f32 %v143_v18, %v140_v14  ;;  %v195_v21 = vmul.f32 %v143_v18, %v143_v18 }
  0xed   :  { %v186_v23 = vadd.f32 %v185_v20, %v148_v12  ;;  %v198_v24 = vadd.f32 %v195_v21, %v194_v19 }
  0xef   :  { %v187_v26 = vadd.f32 %v186_v23, %v151_v16  ;;  %v199_v27 = vadd.f32 %v198_v24, %v196_v22 }
  0xf1   :  { %v188_v28 = vrot.slane %v187_v26, 4  ;;  %v200_v29 = vadd.f32 %v199_v27, %v197_v25 }
  0xf3   :  { %v189_v31 = vadd.f32 %v188_v28, %v187_v26  ;;  %v201_v32 = vrot.slane %v200_v29, 4 }
  0xf5   :  { %v190_v33 = vrot.slane %v189_v31, 2  ;;  %v202_v34 = vadd.f32 %v201_v32, %v200_v29 }
  0xf7   :  { %v191_v36 = vadd.f32 %v190_v33, %v189_v31  ;;  %v203_v37 = vrot.slane %v202_v34, 2 }
  0xf9   :  { %v192_v38 = vrot.slane %v191_v36, 1  ;;  %v204_v39 = vadd.f32 %v203_v37, %v202_v34 }
  0xfb   :  { %v193_v40 = vadd.f32 %v192_v38, %v191_v36  ;;  %v205_v41 = vrot.slane %v204_v39, 1 }
  0xfd   :  { %v206_v42 = vadd.f32 %v205_v41, %v204_v39  ;;  %v208_v43 = vsel %vm207_vm0, %v193_v40, 0.0 }
  0xfe   :  { %209 = vst [vmem:[%s360_s4] sm:$0xff] %v208_v43 }
  0xff   :  { %v210_v44 = vsel %vm207_vm0, %v206_v42, 0.0 }
 0x100   :  { %211 = vst [vmem:[%s361_s5] sm:$0xff] %v210_v44 }

// kernel: rsu7_forward.37
= control target key start
LH: loop header
LB: loop body
LE: loop exit
PB: predicated region body
PF: predicated region fallthrough
CT: control target
= control target key end

     0   :  { %s71_s0 = inlined_call_operand.vmem [shape: f32[8,128], index: 0, kind: input, shape index: {}, may-alias: {0,3}]   ;;  %s72_s1 = inlined_call_operand.vmem [shape: f32[1,128], index: 1, kind: input, shape index: {}]   ;;  %s73_s2 = inlined_call_operand.vmem [shape: f32[1,128], index: 2, kind: input, shape index: {}]   ;;  %s74_s3 = inlined_call_operand.vmem [shape: f32[8,128], index: 3, kind: output, shape index: {}, may-alias: {0,3}]  }
   0x1   :  { %v14_v0 = vld [vmem:[%s71_s0] sm:$0xff] }
   0x2   :  { %v37_v1 = vld [vmem:[%s72_s1] ss:$0 sm:$0xff] }
   0x3   :  { %v38_v2 = vld [vmem:[%s73_s2] ss:$0 sm:$0xff]  ;;  %v22_v3 = vmul.f32 %v37_v1, %v14_v0 }
   0x5   :  { %v30_v4 = vadd.f32 %v38_v2, %v22_v3 }
   0x7   :  { %v31_v5 = vmax.f32 %v30_v4, 0.0 }
   0x9   :  { %32 = vst [vmem:[%s74_s3] sm:$0xff] %v31_v5 }

// kernel: rsu7_forward.36
= control target key start
LH: loop header
LB: loop body
LE: loop exit
PB: predicated region body
PF: predicated region fallthrough
CT: control target
= control target key end

     0   :  { %v218_v0 = vmov 0.0   ;;  %vm219_vm0 = vmmov 0   ;;  %v132_v16 = vlaneseq  ;;  %s289_s1 = inlined_call_operand.vmem [shape: bf16[128,128], index: 1, kind: input, shape index: {}]   ;;  %s290_s0 = inlined_call_operand.vmem [shape: bf16[8,128], index: 0, kind: input, shape index: {}]   ;;  %s291_s2 = inlined_call_operand.vmem [shape: f32[1,128], index: 2, kind: input, shape index: {}]   ;;  %s292_s3 = inlined_call_operand.vmem [shape: f32[8,128], index: 3, kind: output, shape index: {0}]   ;;  %s293_s4 = inlined_call_operand.vmem [shape: f32[8,128], index: 4, kind: output, shape index: {1}]   ;;  %s294_s5 = inlined_call_operand.vmem [shape: f32[8,128], index: 5, kind: output, shape index: {2}]  }
   0x1   :  { %188 = vmatprep.subr.bf16.mxu0 %v218_v0  ;;  %v210_v1 = vld [vmem:[%s289_s1 + $0x38] sm:$0xff]   ;;  %204 = vmatprep.mubr.msk.bf16.mxu0 %vm219_vm0, %v218_v0  ;;  %v211_v2 = vld [vmem:[%s289_s1 + $0x30] sm:$0xff]   ;;  %v212_v3 = vld [vmem:[%s289_s1 + $0x28] sm:$0xff]  }
   0x2   :  { %189 = vmatpush3.bf16.msra.mxu0 %v210_v1  ;;  %v213_v4 = vld [vmem:[%s289_s1 + $0x20] sm:$0xff]   ;;  %v214_v5 = vld [vmem:[%s289_s1 + $0x18] sm:$0xff]   ;;  %v215_v6 = vld [vmem:[%s289_s1 + $0x10] sm:$0xff]   ;;  %v133_v23 = vshrl.u32 %v132_v16, 7 }
   0x3   :  { %190 = vmatprep.subr.bf16.mxu0 %v218_v0  ;;  %v216_v7 = vld [vmem:[%s289_s1 + $0x8] sm:$0xff]   ;;  %v217_v8 = vld [vmem:[%s289_s1] sm:$0xff]  }
   0x4   :  { %v18_v9 = vld [vmem:[%s290_s0] sm:$0xf]  ;;  %vm153_vm1 = vcmp.eq.s32.totalorder %v133_v23, 0 }
   0x5   :  { %v170_v10 = vld [vmem:[%s291_s2] ss:$0 sm:$0xff] }
   0x6   :  { %191 = vmatpush3.bf16.msra.mxu0 %v211_v2 }
   0x7   :  { %192 = vmatprep.subr.bf16.mxu0 %v218_v0 }
   0xa   :  { %193 = vmatpush3.bf16.msra.mxu0 %v212_v3 }
   0xb   :  { %194 = vmatprep.subr.bf16.mxu0 %v218_v0 }
   0xe   :  { %195 = vmatpush3.bf16.msra.mxu0 %v213_v4 }
   0xf   :  { %196 = vmatprep.subr.bf16.mxu0 %v218_v0 }
  0x12   :  { %197 = vmatpush3.bf16.msra.mxu0 %v214_v5 }
  0x13   :  { %198 = vmatprep.subr.bf16.mxu0 %v218_v0 }
  0x16   :  { %199 = vmatpush3.bf16.msra.mxu0 %v215_v6 }
  0x17   :  { %200 = vmatprep.subr.bf16.mxu0 %v218_v0 }
  0x1a   :  { %201 = vmatpush3.bf16.msra.mxu0 %v216_v7 }
  0x1b   :  { %202 = vmatprep.subr.bf16.mxu0 %v218_v0 }
  0x1e   :  { %203 = vmatpush3.bf16.msra.mxu0 %v217_v8 }
  0x21   :  { %205 = vmatmul.mubr.bf16.vlgmr.msra.gmra.mxu0 %v18_v9 }
  0xe1   :  { %v124_v11 = vpop.f32.mrf.mxu0 }
  0xe2   :  { %v125_v12 = vadd.f32 %v170_v10, %v124_v11 }
  0xe3   :  { %v206_v13 = vpop.f32.mrf.mxu0 }
  0xe4   :  { %130 = vst [vmem:[%s292_s3] sm:$0xff] %v125_v12  ;;  %v140_v14 = vrot.slane %v125_v12, 4  ;;  %v146_v15 = vmul.f32 %v125_v12, %v125_v12 }
  0xe5   :  { %v127_v17 = vpop.f32.mrf.mxu0 }
  0xe6   :  { %v141_v18 = vadd.f32 %v140_v14, %v125_v12  ;;  %v147_v19 = vrot.slane %v146_v15, 4 }
  0xe7   :  { %v207_v20 = vpop.f32.mrf.mxu0 }
  0xe8   :  { %v142_v21 = vrot.slane %v141_v18, 2  ;;  %v148_v22 = vadd.f32 %v147_v19, %v146_v15 }
  0xea   :  { %v143_v24 = vadd.f32 %v142_v21, %v141_v18  ;;  %v149_v25 = vrot.slane %v148_v22, 2 }
  0xec   :  { %v144_v26 = vrot.slane %v143_v24, 1  ;;  %v150_v27 = vadd.f32 %v149_v25, %v148_v22 }
  0xee   :  { %v145_v28 = vadd.f32 %v144_v26, %v143_v24  ;;  %v151_v29 = vrot.slane %v150_v27, 1 }
  0xf0   :  { %v152_v30 = vadd.f32 %v151_v29, %v150_v27  ;;  %v154_v31 = vsel %vm153_vm1, %v145_v28, 0.0 }
  0xf1   :  { %155 = vst [vmem:[%s293_s4] sm:$0xff] %v154_v31 }
  0xf2   :  { %v156_v32 = vsel %vm153_vm1, %v152_v30, 0.0 }
  0xf3   :  { %157 = vst [vmem:[%s294_s5] sm:$0xff] %v156_v32 }

// kernel: rsu7_forward.38
= control target key start
LH: loop header
LB: loop body
LE: loop exit
PB: predicated region body
PF: predicated region fallthrough
CT: control target
= control target key end

     0   :  { %v219_v0 = vmov 0.0   ;;  %vm220_vm0 = vmmov 0   ;;  %v132_v10 = vlaneseq  ;;  %s290_s1 = inlined_call_operand.vmem [shape: bf16[128,128], index: 1, kind: input, shape index: {}]   ;;  %s291_s0 = inlined_call_operand.vmem [shape: bf16[8,128], index: 0, kind: input, shape index: {}]   ;;  %s292_s2 = inlined_call_operand.vmem [shape: f32[1,128], index: 2, kind: input, shape index: {}]   ;;  %s293_s3 = inlined_call_operand.vmem [shape: f32[8,128], index: 3, kind: output, shape index: {0}]   ;;  %s294_s4 = inlined_call_operand.vmem [shape: f32[8,128], index: 4, kind: output, shape index: {1}]   ;;  %s295_s5 = inlined_call_operand.vmem [shape: f32[8,128], index: 5, kind: output, shape index: {2}]  }
   0x1   :  { %189 = vmatprep.subr.bf16.mxu0 %v219_v0  ;;  %v211_v1 = vld [vmem:[%s290_s1 + $0x38] sm:$0xff]   ;;  %205 = vmatprep.mubr.msk.bf16.mxu0 %vm220_vm0, %v219_v0  ;;  %v212_v2 = vld [vmem:[%s290_s1 + $0x30] sm:$0xff]   ;;  %v213_v3 = vld [vmem:[%s290_s1 + $0x28] sm:$0xff]  }
   0x2   :  { %190 = vmatpush3.bf16.msra.mxu0 %v211_v1  ;;  %v214_v4 = vld [vmem:[%s290_s1 + $0x20] sm:$0xff]   ;;  %v215_v5 = vld [vmem:[%s290_s1 + $0x18] sm:$0xff]   ;;  %v216_v6 = vld [vmem:[%s290_s1 + $0x10] sm:$0xff]   ;;  %v133_v11 = vshrl.u32 %v132_v10, 7 }
   0x3   :  { %191 = vmatprep.subr.bf16.mxu0 %v219_v0  ;;  %v217_v7 = vld [vmem:[%s290_s1 + $0x8] sm:$0xff]   ;;  %v218_v8 = vld [vmem:[%s290_s1] sm:$0xff]  }
   0x4   :  { %v18_v9 = vld [vmem:[%s291_s0] sm:$0xf]  ;;  %vm136_vm1 = vcmp.lt.s32.totalorder %v133_v11, 2  ;;  %vm153_vm2 = vcmp.eq.s32.totalorder %v133_v11, 0 }
   0x5   :  { %v170_v12 = vld [vmem:[%s292_s2] ss:$0 sm:$0xff]  ;;  %v179_v14 = vsel %vm136_vm1, 1.0, %v219_v0 }
   0x6   :  { %192 = vmatpush3.bf16.msra.mxu0 %v212_v2 }
   0x7   :  { %193 = vmatprep.subr.bf16.mxu0 %v219_v0 }
   0xa   :  { %194 = vmatpush3.bf16.msra.mxu0 %v213_v3 }
   0xb   :  { %195 = vmatprep.subr.bf16.mxu0 %v219_v0 }
   0xe   :  { %196 = vmatpush3.bf16.msra.mxu0 %v214_v4 }
   0xf   :  { %197 = vmatprep.subr.bf16.mxu0 %v219_v0 }
  0x12   :  { %198 = vmatpush3.bf16.msra.mxu0 %v215_v5 }
  0x13   :  { %199 = vmatprep.subr.bf16.mxu0 %v219_v0 }
  0x16   :  { %200 = vmatpush3.bf16.msra.mxu0 %v216_v6 }
  0x17   :  { %201 = vmatprep.subr.bf16.mxu0 %v219_v0 }
  0x1a   :  { %202 = vmatpush3.bf16.msra.mxu0 %v217_v7 }
  0x1b   :  { %203 = vmatprep.subr.bf16.mxu0 %v219_v0 }
  0x1e   :  { %204 = vmatpush3.bf16.msra.mxu0 %v218_v8 }
  0x21   :  { %206 = vmatmul.mubr.bf16.vlgmr.msra.gmra.mxu0 %v18_v9 }
  0xe1   :  { %v124_v13 = vpop.f32.mrf.mxu0 }
  0xe2   :  { %v125_v15 = vadd.f32 %v170_v12, %v124_v13 }
  0xe3   :  { %v207_v16 = vpop.f32.mrf.mxu0 }
  0xe4   :  { %130 = vst [vmem:[%s293_s3] sm:$0xff] %v125_v15  ;;  %v139_v17 = vmul.f32 %v179_v14, %v125_v15 }
  0xe5   :  { %v127_v18 = vpop.f32.mrf.mxu0 }
  0xe6   :  { %v140_v19 = vrot.slane %v139_v17, 4  ;;  %v146_v20 = vmul.f32 %v139_v17, %v125_v15 }
  0xe7   :  { %v208_v21 = vpop.f32.mrf.mxu0 }
  0xe8   :  { %v141_v22 = vadd.f32 %v140_v19, %v139_v17  ;;  %v147_v23 = vrot.slane %v146_v20, 4 }
  0xea   :  { %v142_v24 = vrot.slane %v141_v22, 2  ;;  %v148_v25 = vadd.f32 %v147_v23, %v146_v20 }
  0xec   :  { %v143_v26 = vadd.f32 %v142_v24, %v141_v22  ;;  %v149_v27 = vrot.slane %v148_v25, 2 }
  0xee   :  { %v144_v28 = vrot.slane %v143_v26, 1  ;;  %v150_v29 = vadd.f32 %v149_v27, %v148_v25 }
  0xf0   :  { %v145_v30 = vadd.f32 %v144_v28, %v143_v26  ;;  %v151_v31 = vrot.slane %v150_v29, 1 }
  0xf2   :  { %v152_v32 = vadd.f32 %v151_v31, %v150_v29  ;;  %v154_v33 = vsel %vm153_vm2, %v145_v30, 0.0 }
  0xf3   :  { %155 = vst [vmem:[%s294_s4] sm:$0xff] %v154_v33 }
  0xf4   :  { %v156_v34 = vsel %vm153_vm2, %v152_v32, 0.0 }
  0xf5   :  { %157 = vst [vmem:[%s295_s5] sm:$0xff] %v156_v34 }

// kernel: rsu7_forward.44
= control target key start
LH: loop header
LB: loop body
LE: loop exit
PB: predicated region body
PF: predicated region fallthrough
CT: control target
= control target key end

     0   :  { %v203_v19 = vlaneseq  ;;  %v302_v25 = vmov 0.0   ;;  %s396_s1 = inlined_call_operand.vmem [shape: bf16[256,128], index: 1, kind: input, shape index: {}]   ;;  %s397_s0 = inlined_call_operand.vmem [shape: bf16[8,256], index: 0, kind: input, shape index: {}]   ;;  %s398_s2 = inlined_call_operand.vmem [shape: f32[1,128], index: 2, kind: input, shape index: {}]   ;;  %s399_s3 = inlined_call_operand.vmem [shape: f32[8,128], index: 3, kind: output, shape index: {0}]   ;;  %s400_s4 = inlined_call_operand.vmem [shape: f32[8,128], index: 4, kind: output, shape index: {1}]   ;;  %s401_s5 = inlined_call_operand.vmem [shape: f32[8,128], index: 5, kind: output, shape index: {2}]  }
   0x1   :  { %v284_v0 = vld [vmem:[%s396_s1 + $0x78] sm:$0xff]   ;;  %v286_v2 = vld [vmem:[%s396_s1 + $0x70] sm:$0xff]   ;;  %v288_v4 = vld [vmem:[%s396_s1 + $0x68] sm:$0xff]  }
   0x2   :  { %v285_v1 = vld [vmem:[%s396_s1 + $0x38] sm:$0xff]   ;;  %261 = vmatprep.subr.bf16.mxu0 %v284_v0  ;;  %v287_v3 = vld [vmem:[%s396_s1 + $0x30] sm:$0xff]   ;;  %v289_v5 = vld [vmem:[%s396_s1 + $0x28] sm:$0xff]   ;;  %v204_v20 = vshrl.u32 %v203_v19, 7 }
   0x3   :  { %262 = vmatpush3.bf16.msra.mxu0 %v285_v1  ;;  %v290_v6 = vld [vmem:[%s396_s1 + $0x60] sm:$0xff]   ;;  %v292_v8 = vld [vmem:[%s396_s1 + $0x58] sm:$0xff]   ;;  %v294_v10 = vld [vmem:[%s396_s1 + $0x50] sm:$0xff]  }
   0x4   :  { %263 = vmatprep.subr.bf16.mxu0 %v286_v2  ;;  %v291_v7 = vld [vmem:[%s396_s1 + $0x20] sm:$0xff]   ;;  %v293_v9 = vld [vmem:[%s396_s1 + $0x18] sm:$0xff]   ;;  %v295_v13 = vld [vmem:[%s396_s1 + $0x10] sm:$0xff]   ;;  %vm207_vm0 = vcmp.lt.s32.totalorder %v204_v20, 2  ;;  %vm224_vm1 = vcmp.eq.s32.totalorder %v204_v20, 0 }
   0x5   :  { %v18_v11 = vld [vmem:[%s397_s0] sm:$0xff]  ;;  %v296_v14 = vld [vmem:[%s396_s1 + $0x48] sm:$0xff]   ;;  %v260_v26 = vsel %vm207_vm0, 1.0, %v302_v25 }
   0x6   :  { %v243_v12 = vcombine.high %v18_v11, %v18_v11  ;;  %v297_v15 = vld [vmem:[%s396_s1 + $0x8] sm:$0xff]   ;;  %v298_v16 = vld [vmem:[%s396_s1 + $0x40] sm:$0xff]   ;;  %v242_v18 = vcombine.low %v18_v11, %v18_v11 }
   0x7   :  { %264 = vmatpush3.bf16.msra.mxu0 %v287_v3  ;;  %v299_v17 = vld [vmem:[%s396_s1] sm:$0xff]  }
   0x8   :  { %265 = vmatprep.subr.bf16.mxu0 %v288_v4  ;;  %193 = vmatprep.mubr.bf16.mxu0 %v243_v12  ;;  %v241_v22 = vld [vmem:[%s398_s2] ss:$0 sm:$0xff] }
   0xb   :  { %266 = vmatpush3.bf16.msra.mxu0 %v289_v5 }
   0xc   :  { %267 = vmatprep.subr.bf16.mxu0 %v290_v6 }
   0xf   :  { %268 = vmatpush3.bf16.msra.mxu0 %v291_v7 }
  0x10   :  { %269 = vmatprep.subr.bf16.mxu0 %v292_v8 }
  0x13   :  { %270 = vmatpush3.bf16.msra.mxu0 %v293_v9 }
  0x14   :  { %271 = vmatprep.subr.bf16.mxu0 %v294_v10 }
  0x17   :  { %272 = vmatpush3.bf16.msra.mxu0 %v295_v13 }
  0x18   :  { %273 = vmatprep.subr.bf16.mxu0 %v296_v14 }
  0x1b   :  { %274 = vmatpush3.bf16.msra.mxu0 %v297_v15 }
  0x1c   :  { %275 = vmatprep.subr.bf16.mxu0 %v298_v16 }
  0x1f   :  { %276 = vmatpush3.bf16.msra.mxu0 %v299_v17 }
  0x22   :  { %194 = vmatmul.mubr.bf16.vlgmr.msra.gmra.mxu0 %v242_v18 }
  0xe2   :  { %v277_v21 = vpop.f32.mrf.mxu0 }
  0xe4   :  { %v278_v23 = vpop.f32.mrf.mxu0 }
  0xe5   :  { %v279_v24 = vadd.f32 %v278_v23, %v277_v21 }
  0xe6   :  { %v280_v27 = vpop.f32.mrf.mxu0 }
  0xe7   :  { %v196_v28 = vadd.f32 %v279_v24, %v241_v22 }
  0xe8   :  { %v281_v29 = vpop.f32.mrf.mxu0 }
  0xe9   :  { %201 = vst [vmem:[%s399_s3] sm:$0xff] %v196_v28  ;;  %v210_v30 = vmul.f32 %v260_v26, %v196_v28 }
  0xeb   :  { %v211_v31 = vrot.slane %v210_v30, 4  ;;  %v217_v32 = vmul.f32 %v210_v30, %v196_v28 }
  0xed   :  { %v212_v33 = vadd.f32 %v211_v31, %v210_v30  ;;  %v218_v34 = vrot.slane %v217_v32, 4 }
  0xef   :  { %v213_v35 = vrot.slane %v212_v33, 2  ;;  %v219_v36 = vadd.f32 %v218_v34, %v217_v32 }
  0xf1   :  { %v214_v37 = vadd.f32 %v213_v35, %v212_v33  ;;  %v220_v38 = vrot.slane %v219_v36, 2 }
  0xf3   :  { %v215_v39 = vrot.slane %v214_v37, 1  ;;  %v221_v40 = vadd.f32 %v220_v38, %v219_v36 }
  0xf5   :  { %v216_v41 = vadd.f32 %v215_v39, %v214_v37  ;;  %v222_v42 = vrot.slane %v221_v40, 1 }
  0xf7   :  { %v223_v43 = vadd.f32 %v222_v42, %v221_v40  ;;  %v225_v44 = vsel %vm224_vm1, %v216_v41, 0.0 }
  0xf8   :  { %226 = vst [vmem:[%s400_s4] sm:$0xff] %v225_v44 }
  0xf9   :  { %v227_v45 = vsel %vm224_vm1, %v223_v43, 0.0 }
  0xfa   :  { %228 = vst [vmem:[%s401_s5] sm:$0xff] %v227_v45 }

// kernel: rsu7_forward.48
= control target key start
LH: loop header
LB: loop body
LE: loop exit
PB: predicated region body
PF: predicated region fallthrough
CT: control target
= control target key end

     0   :  { %v203_v28 = vlaneseq  ;;  %s393_s1 = inlined_call_operand.vmem [shape: bf16[256,128], index: 1, kind: input, shape index: {}]   ;;  %s394_s0 = inlined_call_operand.vmem [shape: bf16[8,256], index: 0, kind: input, shape index: {}]   ;;  %s395_s2 = inlined_call_operand.vmem [shape: f32[1,128], index: 2, kind: input, shape index: {}]   ;;  %s396_s3 = inlined_call_operand.vmem [shape: f32[8,128], index: 3, kind: output, shape index: {0}]   ;;  %s397_s4 = inlined_call_operand.vmem [shape: f32[8,128], index: 4, kind: output, shape index: {1}]   ;;  %s398_s5 = inlined_call_operand.vmem [shape: f32[8,128], index: 5, kind: output, shape index: {2}]  }
   0x1   :  { %v282_v0 = vld [vmem:[%s393_s1 + $0x78] sm:$0xff]   ;;  %v284_v2 = vld [vmem:[%s393_s1 + $0x70] sm:$0xff]   ;;  %v286_v4 = vld [vmem:[%s393_s1 + $0x68] sm:$0xff]  }
   0x2   :  { %v283_v1 = vld [vmem:[%s393_s1 + $0x38] sm:$0xff]   ;;  %260 = vmatprep.subr.bf16.mxu0 %v282_v0  ;;  %v285_v3 = vld [vmem:[%s393_s1 + $0x30] sm:$0xff]   ;;  %v287_v5 = vld [vmem:[%s393_s1 + $0x28] sm:$0xff]   ;;  %v204_v33 = vshrl.u32 %v203_v28, 7 }
   0x3   :  { %261 = vmatpush3.bf16.msra.mxu0 %v283_v1  ;;  %v288_v6 = vld [vmem:[%s393_s1 + $0x60] sm:$0xff]   ;;  %v290_v8 = vld [vmem:[%s393_s1 + $0x58] sm:$0xff]   ;;  %v292_v10 = vld [vmem:[%s393_s1 + $0x50] sm:$0xff]  }
   0x4   :  { %262 = vmatprep.subr.bf16.mxu0 %v284_v2  ;;  %v289_v7 = vld [vmem:[%s393_s1 + $0x20] sm:$0xff]   ;;  %v291_v9 = vld [vmem:[%s393_s1 + $0x18] sm:$0xff]   ;;  %v293_v13 = vld [vmem:[%s393_s1 + $0x10] sm:$0xff]   ;;  %vm224_vm0 = vcmp.eq.s32.totalorder %v204_v33, 0 }
   0x5   :  { %v18_v11 = vld [vmem:[%s394_s0] sm:$0xff]  ;;  %v294_v14 = vld [vmem:[%s393_s1 + $0x48] sm:$0xff]  }
   0x6   :  { %v243_v12 = vcombine.high %v18_v11, %v18_v11  ;;  %v295_v15 = vld [vmem:[%s393_s1 + $0x8] sm:$0xff]   ;;  %v296_v16 = vld [vmem:[%s393_s1 + $0x40] sm:$0xff]   ;;  %v242_v18 = vcombine.low %v18_v11, %v18_v11 }
   0x7   :  { %263 = vmatpush3.bf16.msra.mxu0 %v285_v3  ;;  %v297_v17 = vld [vmem:[%s393_s1] sm:$0xff]  }
   0x8   :  { %264 = vmatprep.subr.bf16.mxu0 %v286_v4  ;;  %193 = vmatprep.mubr.bf16.mxu0 %v243_v12  ;;  %v241_v20 = vld [vmem:[%s395_s2] ss:$0 sm:$0xff] }
   0xb   :  { %265 = vmatpush3.bf16.msra.mxu0 %v287_v5 }
   0xc   :  { %266 = vmatprep.subr.bf16.mxu0 %v288_v6 }
   0xf   :  { %267 = vmatpush3.bf16.msra.mxu0 %v289_v7 }
  0x10   :  { %268 = vmatprep.subr.bf16.mxu0 %v290_v8 }
  0x13   :  { %269 = vmatpush3.bf16.msra.mxu0 %v291_v9 }
  0x14   :  { %270 = vmatprep.subr.bf16.mxu0 %v292_v10 }
  0x17   :  { %271 = vmatpush3.bf16.msra.mxu0 %v293_v13 }
  0x18   :  { %272 = vmatprep.subr.bf16.mxu0 %v294_v14 }
  0x1b   :  { %273 = vmatpush3.bf16.msra.mxu0 %v295_v15 }
  0x1c   :  { %274 = vmatprep.subr.bf16.mxu0 %v296_v16 }
  0x1f   :  { %275 = vmatpush3.bf16.msra.mxu0 %v297_v17 }
  0x22   :  { %194 = vmatmul.mubr.bf16.vlgmr.msra.gmra.mxu0 %v242_v18 }
  0xe2   :  { %v276_v19 = vpop.f32.mrf.mxu0 }
  0xe4   :  { %v277_v21 = vpop.f32.mrf.mxu0 }
  0xe5   :  { %v278_v22 = vadd.f32 %v277_v21, %v276_v19 }
  0xe6   :  { %v279_v23 = vpop.f32.mrf.mxu0 }
  0xe7   :  { %v196_v24 = vadd.f32 %v278_v22, %v241_v20 }
  0xe8   :  { %v280_v25 = vpop.f32.mrf.mxu0 }
  0xe9   :  { %201 = vst [vmem:[%s396_s3] sm:$0xff] %v196_v24  ;;  %v211_v26 = vrot.slane %v196_v24, 4  ;;  %v217_v27 = vmul.f32 %v196_v24, %v196_v24 }
  0xeb   :  { %v212_v29 = vadd.f32 %v211_v26, %v196_v24  ;;  %v218_v30 = vrot.slane %v217_v27, 4 }
  0xed   :  { %v213_v31 = vrot.slane %v212_v29, 2  ;;  %v219_v32 = vadd.f32 %v218_v30, %v217_v27 }
  0xef   :  { %v214_v34 = vadd.f32 %v213_v31, %v212_v29  ;;  %v220_v35 = vrot.slane %v219_v32, 2 }
  0xf1   :  { %v215_v36 = vrot.slane %v214_v34, 1  ;;  %v221_v37 = vadd.f32 %v220_v35, %v219_v32 }
  0xf3   :  { %v216_v38 = vadd.f32 %v215_v36, %v214_v34  ;;  %v222_v39 = vrot.slane %v221_v37, 1 }
  0xf5   :  { %v223_v40 = vadd.f32 %v222_v39, %v221_v37  ;;  %v225_v41 = vsel %vm224_vm0, %v216_v38, 0.0 }
  0xf6   :  { %226 = vst [vmem:[%s397_s4] sm:$0xff] %v225_v41 }
  0xf7   :  { %v227_v42 = vsel %vm224_vm0, %v223_v40, 0.0 }
  0xf8   :  { %228 = vst [vmem:[%s398_s5] sm:$0xff] %v227_v42 }

// kernel: rsu7_forward.50
= control target key start
LH: loop header
LB: loop body
LE: loop exit
PB: predicated region body
PF: predicated region fallthrough
CT: control target
= control target key end

     0   :  { %v231_v48 = vlaneseq  ;;  %s494_s1 = inlined_call_operand.vmem [shape: bf16[256,128], index: 1, kind: input, shape index: {}]   ;;  %s495_s0 = inlined_call_operand.vmem [shape: bf16[32,256], index: 0, kind: input, shape index: {}]   ;;  %s496_s2 = inlined_call_operand.vmem [shape: f32[1,128], index: 2, kind: input, shape index: {}]   ;;  %s497_s3 = inlined_call_operand.vmem [shape: f32[32,128], index: 3, kind: output, shape index: {0}]   ;;  %s498_s4 = inlined_call_operand.vmem [shape: f32[8,128], index: 4, kind: output, shape index: {1}]   ;;  %s499_s5 = inlined_call_operand.vmem [shape: f32[8,128], index: 5, kind: output, shape index: {2}]  }
   0x1   :  { %v361_v0 = vld [vmem:[%s494_s1 + $0x78] sm:$0xff]   ;;  %v363_v2 = vld [vmem:[%s494_s1 + $0x70] sm:$0xff]   ;;  %v365_v4 = vld [vmem:[%s494_s1 + $0x68] sm:$0xff]  }
   0x2   :  { %v362_v1 = vld [vmem:[%s494_s1 + $0x38] sm:$0xff]   ;;  %317 = vmatprep.subr.bf16.mxu0 %v361_v0  ;;  %345 = vmatprep.subr.bf16.mxu1 %v361_v0  ;;  %v364_v3 = vld [vmem:[%s494_s1 + $0x30] sm:$0xff]   ;;  %v366_v5 = vld [vmem:[%s494_s1 + $0x28] sm:$0xff]   ;;  %v232_v53 = vshrl.u32 %v231_v48, 7 }
   0x3   :  { %318 = vmatpush3.bf16.msra.mxu0 %v362_v1  ;;  %353 = vmatpush3.bf16.msra.mxu1 %v362_v1  ;;  %v367_v6 = vld [vmem:[%s494_s1 + $0x60] sm:$0xff]   ;;  %v369_v8 = vld [vmem:[%s494_s1 + $0x58] sm:$0xff]   ;;  %v371_v10 = vld [vmem:[%s494_s1 + $0x50] sm:$0xff]  }
   0x4   :  { %319 = vmatprep.subr.bf16.mxu0 %v363_v2  ;;  %346 = vmatprep.subr.bf16.mxu1 %v363_v2  ;;  %v368_v7 = vld [vmem:[%s494_s1 + $0x20] sm:$0xff]   ;;  %v370_v9 = vld [vmem:[%s494_s1 + $0x18] sm:$0xff]   ;;  %v372_v13 = vld [vmem:[%s494_s1 + $0x10] sm:$0xff]   ;;  %vm279_vm0 = vcmp.eq.s32.totalorder %v232_v53, 0 }
   0x5   :  { %v379_v11 = vld [vmem:[%s495_s0 + $0x4] ss:$8 sps:$4 sm:$0xff]   ;;  %v382_v12 = vld [vmem:[%s495_s0 + $0x14] ss:$8 sps:$4 sm:$0xff]   ;;  %v377_v18 = vld [vmem:[%s495_s0] ss:$8 sps:$4 sm:$0xff]  }
   0x6   :  { %v373_v14 = vld [vmem:[%s494_s1 + $0x48] sm:$0xff]   ;;  %209 = vmatprep.mubr.bf16.mxu0 %v379_v11  ;;  %217 = vmatprep.mubr.bf16.mxu1 %v382_v12  ;;  %v375_v16 = vld [vmem:[%s494_s1 + $0x40] sm:$0xff]   ;;  %v380_v19 = vld [vmem:[%s495_s0 + $0x10] ss:$8 sps:$4 sm:$0xff]  }
   0x7   :  { %320 = vmatpush3.bf16.msra.mxu0 %v364_v3  ;;  %354 = vmatpush3.bf16.msra.mxu1 %v364_v3  ;;  %v374_v15 = vld [vmem:[%s494_s1 + $0x8] sm:$0xff]   ;;  %v376_v17 = vld [vmem:[%s494_s1] sm:$0xff]  }
   0x8   :  { %321 = vmatprep.subr.bf16.mxu0 %v365_v4  ;;  %347 = vmatprep.subr.bf16.mxu1 %v365_v4  ;;  %v296_v22 = vld [vmem:[%s496_s2] ss:$0 sm:$0xff] }
   0xb   :  { %322 = vmatpush3.bf16.msra.mxu0 %v366_v5  ;;  %355 = vmatpush3.bf16.msra.mxu1 %v366_v5 }
   0xc   :  { %323 = vmatprep.subr.bf16.mxu0 %v367_v6  ;;  %348 = vmatprep.subr.bf16.mxu1 %v367_v6 }
   0xf   :  { %324 = vmatpush3.bf16.msra.mxu0 %v368_v7  ;;  %356 = vmatpush3.bf16.msra.mxu1 %v368_v7 }
  0x10   :  { %325 = vmatprep.subr.bf16.mxu0 %v369_v8  ;;  %349 = vmatprep.subr.bf16.mxu1 %v369_v8 }
  0x13   :  { %326 = vmatpush3.bf16.msra.mxu0 %v370_v9  ;;  %357 = vmatpush3.bf16.msra.mxu1 %v370_v9 }
  0x14   :  { %327 = vmatprep.subr.bf16.mxu0 %v371_v10  ;;  %350 = vmatprep.subr.bf16.mxu1 %v371_v10 }
  0x17   :  { %328 = vmatpush3.bf16.msra.mxu0 %v372_v13  ;;  %358 = vmatpush3.bf16.msra.mxu1 %v372_v13 }
  0x18   :  { %329 = vmatprep.subr.bf16.mxu0 %v373_v14  ;;  %351 = vmatprep.subr.bf16.mxu1 %v373_v14 }
  0x1b   :  { %330 = vmatpush3.bf16.msra.mxu0 %v374_v15  ;;  %359 = vmatpush3.bf16.msra.mxu1 %v374_v15 }
  0x1c   :  { %331 = vmatprep.subr.bf16.mxu0 %v375_v16  ;;  %352 = vmatprep.subr.bf16.mxu1 %v375_v16 }
  0x1f   :  { %332 = vmatpush3.bf16.msra.mxu0 %v376_v17  ;;  %360 = vmatpush3.bf16.msra.mxu1 %v376_v17 }
  0x22   :  { %210 = vmatmul.mubr.bf16.vlgmr.msra.gmra.mxu0 %v377_v18  ;;  %218 = vmatmul.mubr.bf16.vlgmr.msra.gmra.mxu1 %v380_v19 }
  0xe2   :  { %v333_v20 = vpop.f32.mrf.mxu0  ;;  %v339_v21 = vpop.f32.mrf.mxu1 }
  0xe4   :  { %v334_v23 = vpop.f32.mrf.mxu0  ;;  %v340_v24 = vpop.f32.mrf.mxu1 }
  0xe5   :  { %v335_v25 = vadd.f32 %v334_v23, %v333_v20  ;;  %v341_v26 = vadd.f32 %v340_v24, %v339_v21 }
  0xe6   :  { %v336_v27 = vpop.f32.mrf.mxu0  ;;  %v342_v28 = vpop.f32.mrf.mxu1 }
  0xe7   :  { %v212_v29 = vadd.f32 %v335_v25, %v296_v22  ;;  %v220_v30 = vadd.f32 %v341_v26, %v296_v22 }
  0xe8   :  { %v337_v31 = vpop.f32.mrf.mxu0  ;;  %v343_v32 = vpop.f32.mrf.mxu1 }
  0xe9   :  { %226 = vst [vmem:[%s497_s3] sm:$0xff] %v212_v29  ;;  %228 = vst [vmem:[%s497_s3 + $0x10] sm:$0xff] %v220_v30  ;;  %v338_v33 = vadd.f32 %v337_v31, %v336_v27  ;;  %v344_v34 = vadd.f32 %v343_v32, %v342_v28  ;;  %v266_v37 = vmul.f32 %v212_v29, %v212_v29 }
  0xea   :  { %v268_v40 = vmul.f32 %v220_v30, %v220_v30 }
  0xeb   :  { %v215_v35 = vadd.f32 %v338_v33, %v296_v22  ;;  %v223_v36 = vadd.f32 %v344_v34, %v296_v22 }
  0xed   :  { %227 = vst [vmem:[%s497_s3 + $0x8] sm:$0xff] %v215_v35  ;;  %v257_v38 = vadd.f32 %v215_v35, %v212_v29  ;;  %v267_v39 = vmul.f32 %v215_v35, %v215_v35  ;;  %229 = vst [vmem:[%s497_s3 + $0x18] sm:$0xff] %v223_v36  ;;  %v269_v44 = vmul.f32 %v223_v36, %v223_v36 }
  0xef   :  { %v270_v41 = vadd.f32 %v267_v39, %v266_v37  ;;  %v258_v42 = vadd.f32 %v257_v38, %v220_v30 }
  0xf1   :  { %v259_v43 = vadd.f32 %v258_v42, %v223_v36  ;;  %v271_v45 = vadd.f32 %v270_v41, %v268_v40 }
  0xf3   :  { %v260_v46 = vrot.slane %v259_v43, 4  ;;  %v272_v47 = vadd.f32 %v271_v45, %v269_v44 }
  0xf5   :  { %v261_v49 = vadd.f32 %v260_v46, %v259_v43  ;;  %v273_v50 = vrot.slane %v272_v47, 4 }
  0xf7   :  { %v262_v51 = vrot.slane %v261_v49, 2  ;;  %v274_v52 = vadd.f32 %v273_v50, %v272_v47 }
  0xf9   :  { %v263_v54 = vadd.f32 %v262_v51, %v261_v49  ;;  %v275_v55 = vrot.slane %v274_v52, 2 }
  0xfb   :  { %v264_v56 = vrot.slane %v263_v54, 1  ;;  %v276_v57 = vadd.f32 %v275_v55, %v274_v52 }
  0xfd   :  { %v265_v58 = vadd.f32 %v264_v56, %v263_v54  ;;  %v277_v59 = vrot.slane %v276_v57, 1 }
  0xff   :  { %v278_v60 = vadd.f32 %v277_v59, %v276_v57  ;;  %v280_v61 = vsel %vm279_vm0, %v265_v58, 0.0 }
 0x100   :  { %281 = vst [vmem:[%s498_s4] sm:$0xff] %v280_v61 }
 0x101   :  { %v282_v62 = vsel %vm279_vm0, %v278_v60, 0.0 }
 0x102   :  { %283 = vst [vmem:[%s499_s5] sm:$0xff] %v282_v62 }

// kernel: rsu7_forward.52
= control target key start
LH: loop header
LB: loop body
LE: loop exit
PB: predicated region body
PF: predicated region fallthrough
CT: control target
= control target key end

     0   :  { %s914_s1 = inlined_call_operand.vmem [shape: bf16[256,128], index: 1, kind: input, shape index: {}]   ;;  %s915_s0 = inlined_call_operand.vmem [shape: bf16[128,256], index: 0, kind: input, shape index: {}]   ;;  %s916_s2 = inlined_call_operand.vmem [shape: f32[1,128], index: 2, kind: input, shape index: {}]   ;;  %s917_s3 = inlined_call_operand.vmem [shape: f32[128,128], index: 3, kind: output, shape index: {0}]   ;;  %s918_s4 = inlined_call_operand.vmem [shape: f32[8,128], index: 4, kind: output, shape index: {1}]   ;;  %s919_s5 = inlined_call_operand.vmem [shape: f32[8,128], index: 5, kind: output, shape index: {2}]  }
   0x1   :  { %v649_v0 = vld [vmem:[%s914_s1 + $0x78] sm:$0xff]   ;;  %v651_v2 = vld [vmem:[%s914_s1 + $0x70] sm:$0xff]   ;;  %v653_v4 = vld [vmem:[%s914_s1 + $0x68] sm:$0xff]  }
   0x2   :  { %v650_v1 = vld [vmem:[%s914_s1 + $0x38] sm:$0xff]   ;;  %569 = vmatprep.subr.bf16.mxu0 %v649_v0  ;;  %633 = vmatprep.subr.bf16.mxu1 %v649_v0  ;;  %v652_v3 = vld [vmem:[%s914_s1 + $0x30] sm:$0xff]   ;;  %v654_v5 = vld [vmem:[%s914_s1 + $0x28] sm:$0xff]  }
   0x3   :  { %570 = vmatpush3.bf16.msra.mxu0 %v650_v1  ;;  %641 = vmatpush3.bf16.msra.mxu1 %v650_v1  ;;  %v655_v6 = vld [vmem:[%s914_s1 + $0x60] sm:$0xff]   ;;  %v657_v8 = vld [vmem:[%s914_s1 + $0x58] sm:$0xff]   ;;  %v659_v10 = vld [vmem:[%s914_s1 + $0x50] sm:$0xff]  }
   0x4   :  { %571 = vmatprep.subr.bf16.mxu0 %v651_v2  ;;  %634 = vmatprep.subr.bf16.mxu1 %v651_v2  ;;  %v656_v7 = vld [vmem:[%s914_s1 + $0x20] sm:$0xff]   ;;  %v658_v9 = vld [vmem:[%s914_s1 + $0x18] sm:$0xff]   ;;  %v660_v12 = vld [vmem:[%s914_s1 + $0x10] sm:$0xff]  }
   0x5   :  { %v667_v11 = vld [vmem:[%s915_s0 + $0x4] ss:$8 sps:$4 sm:$0xff]   ;;  %v665_v18 = vld [vmem:[%s915_s0] ss:$8 sps:$4 sm:$0xff]   ;;  %v668_v20 = vld [vmem:[%s915_s0 + $0x14] ss:$8 sps:$4 sm:$0xff]  }
   0x6   :  { %v673_v13 = vld [vmem:[%s915_s0 + $0x44] ss:$8 sps:$4 sm:$0xff]   ;;  %281 = vmatprep.mubr.bf16.mxu0 %v667_v11  ;;  %v671_v19 = vld [vmem:[%s915_s0 + $0x40] ss:$8 sps:$4 sm:$0xff]   ;;  %v677_v21 = vld [vmem:[%s915_s0 + $0x54] ss:$8 sps:$4 sm:$0xff]  }
   0x7   :  { %572 = vmatpush3.bf16.msra.mxu0 %v652_v3  ;;  %642 = vmatpush3.bf16.msra.mxu1 %v652_v3  ;;  %v661_v14 = vld [vmem:[%s914_s1 + $0x48] sm:$0xff]   ;;  %v663_v16 = vld [vmem:[%s914_s1 + $0x40] sm:$0xff]   ;;  %v670_v22 = vld [vmem:[%s915_s0 + $0x10] ss:$8 sps:$4 sm:$0xff]  }
   0x8   :  { %573 = vmatprep.subr.bf16.mxu0 %v653_v4  ;;  %635 = vmatprep.subr.bf16.mxu1 %v653_v4  ;;  %v662_v15 = vld [vmem:[%s914_s1 + $0x8] sm:$0xff]   ;;  %v664_v17 = vld [vmem:[%s914_s1] sm:$0xff]   ;;  %v679_v23 = vld [vmem:[%s915_s0 + $0x50] ss:$8 sps:$4 sm:$0xff]  }
   0x9   :  { %313 = vmatprep.mubr.bf16.mxu1 %v673_v13  ;;  %v674_v24 = vld [vmem:[%s915_s0 + $0x24] ss:$8 sps:$4 sm:$0xff]   ;;  %v676_v26 = vld [vmem:[%s915_s0 + $0x20] ss:$8 sps:$4 sm:$0xff]   ;;  %v680_v28 = vld [vmem:[%s915_s0 + $0x34] ss:$8 sps:$4 sm:$0xff]  }
   0xa   :  { %v683_v25 = vld [vmem:[%s915_s0 + $0x64] ss:$8 sps:$4 sm:$0xff]   ;;  %v685_v27 = vld [vmem:[%s915_s0 + $0x60] ss:$8 sps:$4 sm:$0xff]   ;;  %v686_v29 = vld [vmem:[%s915_s0 + $0x74] ss:$8 sps:$4 sm:$0xff]  }
   0xb   :  { %574 = vmatpush3.bf16.msra.mxu0 %v654_v5  ;;  %643 = vmatpush3.bf16.msra.mxu1 %v654_v5  ;;  %v682_v30 = vld [vmem:[%s915_s0 + $0x30] ss:$8 sps:$4 sm:$0xff]   ;;  %v818_v34 = vld [vmem:[%s916_s2] ss:$0 sm:$0xff] }
   0xc   :  { %575 = vmatprep.subr.bf16.mxu0 %v655_v6  ;;  %636 = vmatprep.subr.bf16.mxu1 %v655_v6  ;;  %v688_v31 = vld [vmem:[%s915_s0 + $0x70] ss:$8 sps:$4 sm:$0xff]  }
   0xf   :  { %576 = vmatpush3.bf16.msra.mxu0 %v656_v7  ;;  %644 = vmatpush3.bf16.msra.mxu1 %v656_v7 }
  0x10   :  { %577 = vmatprep.subr.bf16.mxu0 %v657_v8  ;;  %637 = vmatprep.subr.bf16.mxu1 %v657_v8 }
  0x13   :  { %578 = vmatpush3.bf16.msra.mxu0 %v658_v9  ;;  %645 = vmatpush3.bf16.msra.mxu1 %v658_v9 }
  0x14   :  { %579 = vmatprep.subr.bf16.mxu0 %v659_v10  ;;  %638 = vmatprep.subr.bf16.mxu1 %v659_v10 }
  0x17   :  { %580 = vmatpush3.bf16.msra.mxu0 %v660_v12  ;;  %646 = vmatpush3.bf16.msra.mxu1 %v660_v12 }
  0x18   :  { %581 = vmatprep.subr.bf16.mxu0 %v661_v14  ;;  %639 = vmatprep.subr.bf16.mxu1 %v661_v14 }
  0x1b   :  { %582 = vmatpush3.bf16.msra.mxu0 %v662_v15  ;;  %647 = vmatpush3.bf16.msra.mxu1 %v662_v15 }
  0x1c   :  { %583 = vmatprep.subr.bf16.mxu0 %v663_v16  ;;  %640 = vmatprep.subr.bf16.mxu1 %v663_v16 }
  0x1f   :  { %584 = vmatpush3.bf16.msra.mxu0 %v664_v17  ;;  %648 = vmatpush3.bf16.msra.mxu1 %v664_v17 }
  0x22   :  { %282 = vmatmul.mubr.bf16.vlgmr.msra.gmra.mxu0 %v665_v18  ;;  %314 = vmatmul.mubr.bf16.vlgmr.msra.gmra.mxu1 %v671_v19 }
  0x23   :  { %289 = vmatprep.mubr.bf16.mxu0 %v668_v20  ;;  %321 = vmatprep.mubr.bf16.mxu1 %v677_v21 }
  0x2a   :  { %290 = vmatmul.mubr.bf16.gmra.mxu0 %v670_v22  ;;  %322 = vmatmul.mubr.bf16.gmra.mxu1 %v679_v23 }
  0x2b   :  { %297 = vmatprep.mubr.bf16.mxu0 %v674_v24  ;;  %329 = vmatprep.mubr.bf16.mxu1 %v683_v25 }
  0x32   :  { %298 = vmatmul.mubr.bf16.gmra.mxu0 %v676_v26  ;;  %330 = vmatmul.mubr.bf16.gmra.mxu1 %v685_v27 }
  0x33   :  { %305 = vmatprep.mubr.bf16.mxu0 %v680_v28  ;;  %337 = vmatprep.mubr.bf16.mxu1 %v686_v29 }
  0x3a   :  { %306 = vmatmul.mubr.bf16.gmra.mxu0 %v682_v30  ;;  %338 = vmatmul.mubr.bf16.gmra.mxu1 %v688_v31 }
  0xe2   :  { %v585_v32 = vpop.f32.mrf.mxu0  ;;  %v609_v33 = vpop.f32.mrf.mxu1 }
  0xe4   :  { %v586_v35 = vpop.f32.mrf.mxu0  ;;  %v610_v36 = vpop.f32.mrf.mxu1 }
  0xe5   :  { %v587_v37 = vadd.f32 %v586_v35, %v585_v32  ;;  %v611_v38 = vadd.f32 %v610_v36, %v609_v33 }
  0xe6   :  { %v588_v39 = vpop.f32.mrf.mxu0  ;;  %v612_v40 = vpop.f32.mrf.mxu1 }
  0xe7   :  { %v284_v41 = vadd.f32 %v587_v37, %v818_v34  ;;  %v822_v42 = vadd.f32 %v611_v38, %v818_v34 }
  0xe8   :  { %v589_v43 = vpop.f32.mrf.mxu0  ;;  %v613_v44 = vpop.f32.mrf.mxu1 }
  0xe9   :  { %346 = vst [vmem:[%s917_s3] sm:$0xff] %v284_v41  ;;  %v590_v45 = vadd.f32 %v589_v43, %v588_v39  ;;  %354 = vst [vmem:[%s917_s3 + $0x40] sm:$0xff] %v822_v42  ;;  %v614_v46 = vadd.f32 %v613_v44, %v612_v40  ;;  %v482_v11 = vmul.f32 %v284_v41, %v284_v41 }
  0xea   :  { %v591_v47 = vpop.f32.mrf.mxu0  ;;  %v615_v48 = vpop.f32.mrf.mxu1 }
  0xeb   :  { %v287_v49 = vadd.f32 %v590_v45, %v818_v34  ;;  %v833_v50 = vadd.f32 %v614_v46, %v818_v34 }
  0xec   :  { %v592_v51 = vpop.f32.mrf.mxu0  ;;  %v616_v52 = vpop.f32.mrf.mxu1 }
  0xed   :  { %347 = vst [vmem:[%s917_s3 + $0x8] sm:$0xff] %v287_v49  ;;  %v593_v53 = vadd.f32 %v592_v51, %v591_v47  ;;  %355 = vst [vmem:[%s917_s3 + $0x48] sm:$0xff] %v833_v50  ;;  %v617_v55 = vadd.f32 %v616_v52, %v615_v48  ;;  %v483_v6 = vmul.f32 %v287_v49, %v287_v49 }
  0xee   :  { %v594_v54 = vpop.f32.mrf.mxu0  ;;  %v618_v56 = vpop.f32.mrf.mxu1  ;;  %v461_v16 = vadd.f32 %v287_v49, %v284_v41 }
  0xef   :  { %v292_v57 = vadd.f32 %v593_v53, %v818_v34  ;;  %v844_v59 = vadd.f32 %v617_v55, %v818_v34  ;;  %v498_v19 = vadd.f32 %v483_v6, %v482_v11 }
  0xf0   :  { %v595_v58 = vpop.f32.mrf.mxu0  ;;  %v619_v60 = vpop.f32.mrf.mxu1 }
  0xf1   :  { %348 = vst [vmem:[%s917_s3 + $0x10] sm:$0xff] %v292_v57  ;;  %v596_v61 = vadd.f32 %v595_v58, %v594_v54  ;;  %v620_v62 = vadd.f32 %v619_v60, %v618_v56  ;;  %356 = vst [vmem:[%s917_s3 + $0x50] sm:$0xff] %v844_v59  ;;  %v484_v12 = vmul.f32 %v292_v57, %v292_v57 }
  0xf2   :  { %v597_v63 = vpop.f32.mrf.mxu0  ;;  %v621_v0 = vpop.f32.mrf.mxu1  ;;  %v462_v23 = vadd.f32 %v461_v16, %v292_v57  ;;  %v490_v57 = vmul.f32 %v822_v42, %v822_v42 }
  0xf3   :  { %v295_v1 = vadd.f32 %v596_v61, %v818_v34  ;;  %v855_v2 = vadd.f32 %v620_v62, %v818_v34  ;;  %v499_v26 = vadd.f32 %v498_v19, %v484_v12 }
  0xf4   :  { %v598_v3 = vpop.f32.mrf.mxu0  ;;  %v622_v4 = vpop.f32.mrf.mxu1 }
  0xf5   :  { %349 = vst [vmem:[%s917_s3 + $0x18] sm:$0xff] %v295_v1  ;;  %v599_v5 = vadd.f32 %v598_v3, %v597_v63  ;;  %357 = vst [vmem:[%s917_s3 + $0x58] sm:$0xff] %v855_v2  ;;  %v623_v8 = vadd.f32 %v622_v4, %v621_v0  ;;  %v485_v20 = vmul.f32 %v295_v1, %v295_v1 }
  0xf6   :  { %v600_v7 = vpop.f32.mrf.mxu0  ;;  %v624_v9 = vpop.f32.mrf.mxu1  ;;  %v463_v30 = vadd.f32 %v462_v23, %v295_v1  ;;  %v492_v63 = vmul.f32 %v844_v59, %v844_v59  ;;  %v493_v3 = vmul.f32 %v855_v2, %v855_v2 }
  0xf7   :  { %v300_v10 = vadd.f32 %v599_v5, %v818_v34  ;;  %v332_v14 = vadd.f32 %v623_v8, %v818_v34  ;;  %v500_v32 = vadd.f32 %v499_v26, %v485_v20 }
  0xf8   :  { %v601_v13 = vpop.f32.mrf.mxu0  ;;  %v625_v15 = vpop.f32.mrf.mxu1 }
  0xf9   :  { %350 = vst [vmem:[%s917_s3 + $0x20] sm:$0xff] %v300_v10  ;;  %v602_v17 = vadd.f32 %v601_v13, %v600_v7  ;;  %v626_v18 = vadd.f32 %v625_v15, %v624_v9  ;;  %358 = vst [vmem:[%s917_s3 + $0x60] sm:$0xff] %v332_v14  ;;  %v486_v27 = vmul.f32 %v300_v10, %v300_v10 }
  0xfa   :  { %v603_v21 = vpop.f32.mrf.mxu0  ;;  %v627_v22 = vpop.f32.mrf.mxu1  ;;  %v464_v37 = vadd.f32 %v463_v30, %v300_v10 }
  0xfb   :  { %v303_v24 = vadd.f32 %v602_v17, %v818_v34  ;;  %v335_v25 = vadd.f32 %v626_v18, %v818_v34  ;;  %v501_v40 = vadd.f32 %v500_v32, %v486_v27  ;;  %v363_v18 = vlaneseq }
  0xfc   :  { %v604_v28 = vpop.f32.mrf.mxu0  ;;  %v628_v29 = vpop.f32.mrf.mxu1 }
  0xfd   :  { %351 = vst [vmem:[%s917_s3 + $0x28] sm:$0xff] %v303_v24  ;;  %v605_v31 = vadd.f32 %v604_v28, %v603_v21  ;;  %359 = vst [vmem:[%s917_s3 + $0x68] sm:$0xff] %v335_v25  ;;  %v629_v35 = vadd.f32 %v628_v29, %v627_v22  ;;  %v487_v38 = vmul.f32 %v303_v24, %v303_v24  ;;  %v364_v22 = vshrl.u32 %v363_v18, 7 }
  0xfe   :  { %v606_v33 = vpop.f32.mrf.mxu0  ;;  %v630_v36 = vpop.f32.mrf.mxu1  ;;  %v465_v45 = vadd.f32 %v464_v37, %v303_v24  ;;  %v495_v9 = vmul.f32 %v335_v25, %v335_v25 }
  0xff   :  { %v308_v39 = vadd.f32 %v605_v31, %v818_v34  ;;  %v340_v43 = vadd.f32 %v629_v35, %v818_v34  ;;  %v502_v49 = vadd.f32 %v501_v40, %v487_v38  ;;  %vm519_vm0 = vcmp.eq.s32.totalorder %v364_v22, 0 }
 0x100   :  { %v607_v41 = vpop.f32.mrf.mxu0  ;;  %v631_v44 = vpop.f32.mrf.mxu1 }
 0x101   :  { %352 = vst [vmem:[%s917_s3 + $0x30] sm:$0xff] %v308_v39  ;;  %v488_v46 = vmul.f32 %v308_v39, %v308_v39  ;;  %v608_v47 = vadd.f32 %v607_v41, %v606_v33  ;;  %v632_v48 = vadd.f32 %v631_v44, %v630_v36  ;;  %360 = vst [vmem:[%s917_s3 + $0x70] sm:$0xff] %v340_v43 }
 0x102   :  { %v466_v51 = vadd.f32 %v465_v45, %v308_v39  ;;  %v496_v12 = vmul.f32 %v340_v43, %v340_v43 }
 0x103   :  { %v311_v52 = vadd.f32 %v608_v47, %v818_v34  ;;  %v343_v53 = vadd.f32 %v632_v48, %v818_v34  ;;  %v503_v54 = vadd.f32 %v502_v49, %v488_v46  ;;  %v491_v34 = vmul.f32 %v833_v50, %v833_v50 }
 0x105   :  { %353 = vst [vmem:[%s917_s3 + $0x38] sm:$0xff] %v311_v52  ;;  %v467_v55 = vadd.f32 %v466_v51, %v311_v52  ;;  %v489_v56 = vmul.f32 %v311_v52, %v311_v52  ;;  %361 = vst [vmem:[%s917_s3 + $0x78] sm:$0xff] %v343_v53  ;;  %v497_v16 = vmul.f32 %v343_v53, %v343_v53 }
 0x107   :  { %v468_v58 = vadd.f32 %v467_v55, %v822_v42  ;;  %v504_v60 = vadd.f32 %v503_v54, %v489_v56  ;;  %v494_v42 = vmul.f32 %v332_v14, %v332_v14 }
 0x109   :  { %v469_v61 = vadd.f32 %v468_v58, %v833_v50  ;;  %v505_v62 = vadd.f32 %v504_v60, %v490_v57 }
 0x10b   :  { %v506_v0 = vadd.f32 %v505_v62, %v491_v34  ;;  %v470_v1 = vadd.f32 %v469_v61, %v844_v59 }
 0x10d   :  { %v471_v4 = vadd.f32 %v470_v1, %v855_v2  ;;  %v507_v5 = vadd.f32 %v506_v0, %v492_v63 }
 0x10f   :  { %v472_v6 = vadd.f32 %v471_v4, %v332_v14  ;;  %v508_v7 = vadd.f32 %v507_v5, %v493_v3 }
 0x111   :  { %v473_v8 = vadd.f32 %v472_v6, %v335_v25  ;;  %v509_v10 = vadd.f32 %v508_v7, %v494_v42 }
 0x113   :  { %v510_v50 = vadd.f32 %v509_v10, %v495_v9  ;;  %v474_v11 = vadd.f32 %v473_v8, %v340_v43 }
 0x115   :  { %v511_v13 = vadd.f32 %v510_v50, %v496_v12  ;;  %v475_v15 = vadd.f32 %v474_v11, %v343_v53 }
 0x117   :  { %v476_v17 = vrot.slane %v475_v15, 4  ;;  %v512_v59 = vadd.f32 %v511_v13, %v497_v16 }
 0x119   :  { %v477_v19 = vadd.f32 %v476_v17, %v475_v15  ;;  %v513_v20 = vrot.slane %v512_v59, 4 }
 0x11b   :  { %v478_v21 = vrot.slane %v477_v19, 2  ;;  %v514_v2 = vadd.f32 %v513_v20, %v512_v59 }
 0x11d   :  { %v479_v23 = vadd.f32 %v478_v21, %v477_v19  ;;  %v515_v14 = vrot.slane %v514_v2, 2 }
 0x11f   :  { %v480_v24 = vrot.slane %v479_v23, 1  ;;  %v516_v26 = vadd.f32 %v515_v14, %v514_v2 }
 0x121   :  { %v481_v25 = vadd.f32 %v480_v24, %v479_v23  ;;  %v517_v27 = vrot.slane %v516_v26, 1 }
 0x123   :  { %v518_v28 = vadd.f32 %v517_v27, %v516_v26  ;;  %v520_v29 = vsel %vm519_vm0, %v481_v25, 0.0 }
 0x124   :  { %521 = vst [vmem:[%s918_s4] sm:$0xff] %v520_v29 }
 0x125   :  { %v522_v30 = vsel %vm519_vm0, %v518_v28, 0.0 }
 0x126   :  { %523 = vst [vmem:[%s919_s5] sm:$0xff] %v522_v30 }

// kernel: rsu7_forward.54
= control target key start
LH: loop header
LB: loop body
LE: loop exit
PB: predicated region body
PF: predicated region fallthrough
CT: control target
= control target key end

     0   :  { %v1722_v0 = vmov 0   ;;  %s2622_s1 = inlined_call_operand.vmem [shape: bf16[256,128], index: 1, kind: input, shape index: {}]   ;;  %s2623_s0 = inlined_call_operand.vmem [shape: bf16[512,256], index: 0, kind: input, shape index: {}]   ;;  %s2624_s2 = inlined_call_operand.vmem [shape: f32[1,128], index: 2, kind: input, shape index: {}]   ;;  %s2625_s3 = inlined_call_operand.vmem [shape: f32[512,128], index: 3, kind: output, shape index: {0}]   ;;  %s2626_s4 = inlined_call_operand.vmem [shape: f32[8,128], index: 4, kind: output, shape index: {1}]   ;;  %s2627_s5 = inlined_call_operand.vmem [shape: f32[8,128], index: 5, kind: output, shape index: {2}]  }
   0x1   :  { %537 = vmatprep.subr.bf16.mxu0 %v1722_v0  ;;  %v1610_v1 = vld [vmem:[%s2622_s1 + $0x38] sm:$0xff]   ;;  %1577 = vmatprep.subr.bf16.mxu1 %v1722_v0  ;;  %v1611_v2 = vld [vmem:[%s2622_s1 + $0x30] sm:$0xff]   ;;  %v1612_v3 = vld [vmem:[%s2622_s1 + $0x28] sm:$0xff]  }
   0x2   :  { %538 = vmatpush1.bf16.msra.mxu0 %v1610_v1  ;;  %1593 = vmatpush1.bf16.msra.mxu1 %v1610_v1  ;;  %v1613_v4 = vld [vmem:[%s2622_s1 + $0x20] sm:$0xff]   ;;  %v1614_v5 = vld [vmem:[%s2622_s1 + $0x18] sm:$0xff]   ;;  %v1615_v7 = vld [vmem:[%s2622_s1 + $0x10] sm:$0xff]  }
   0x3   :  { %539 = vmatprep.subr.bf16.mxu0 %v1722_v0  ;;  %1578 = vmatprep.subr.bf16.mxu1 %v1722_v0  ;;  %v1628_v6 = vld [vmem:[%s2623_s0 + $0x4] ss:$8 sps:$4 sm:$0xff]   ;;  %v1618_v11 = vld [vmem:[%s2622_s1 + $0x78] sm:$0xff]   ;;  %v1619_v12 = vld [vmem:[%s2622_s1 + $0x70] sm:$0xff]  }
   0x4   :  { %569 = vmatprep.mubr.bf16.mxu0 %v1628_v6  ;;  %v1616_v8 = vld [vmem:[%s2622_s1 + $0x8] sm:$0xff]   ;;  %v1617_v9 = vld [vmem:[%s2622_s1] sm:$0xff]   ;;  %v1622_v15 = vld [vmem:[%s2622_s1 + $0x58] sm:$0xff]  }
   0x5   :  { %v1652_v10 = vld [vmem:[%s2623_s0 + $0x104] ss:$8 sps:$4 sm:$0xff]   ;;  %v1623_v16 = vld [vmem:[%s2622_s1 + $0x50] sm:$0xff]   ;;  %v1626_v19 = vld [vmem:[%s2623_s0] ss:$8 sps:$4 sm:$0xff]  }
   0x6   :  { %540 = vmatpush1.bf16.msra.mxu0 %v1611_v2  ;;  %1594 = vmatpush1.bf16.msra.mxu1 %v1611_v2  ;;  %v1620_v13 = vld [vmem:[%s2622_s1 + $0x68] sm:$0xff]   ;;  %v1621_v14 = vld [vmem:[%s2622_s1 + $0x60] sm:$0xff]   ;;  %v1629_v21 = vld [vmem:[%s2623_s0 + $0x14] ss:$8 sps:$4 sm:$0xff]  }
   0x7   :  { %541 = vmatprep.subr.bf16.mxu0 %v1722_v0  ;;  %1579 = vmatprep.subr.bf16.mxu1 %v1722_v0  ;;  %v1624_v17 = vld [vmem:[%s2622_s1 + $0x48] sm:$0xff]   ;;  %v1625_v18 = vld [vmem:[%s2622_s1 + $0x40] sm:$0xff]   ;;  %v1656_v22 = vld [vmem:[%s2623_s0 + $0x114] ss:$8 sps:$4 sm:$0xff]  }
   0x8   :  { %697 = vmatprep.mubr.bf16.mxu1 %v1652_v10  ;;  %v1650_v20 = vld [vmem:[%s2623_s0 + $0x100] ss:$8 sps:$4 sm:$0xff]   ;;  %v1631_v23 = vld [vmem:[%s2623_s0 + $0x10] ss:$8 sps:$4 sm:$0xff]   ;;  %v1632_v25 = vld [vmem:[%s2623_s0 + $0x24] ss:$8 sps:$4 sm:$0xff]  }
   0x9   :  { %v1658_v24 = vld [vmem:[%s2623_s0 + $0x110] ss:$8 sps:$4 sm:$0xff]   ;;  %v1662_v26 = vld [vmem:[%s2623_s0 + $0x124] ss:$8 sps:$4 sm:$0xff]   ;;  %v1634_v27 = vld [vmem:[%s2623_s0 + $0x20] ss:$8 sps:$4 sm:$0xff]  }
   0xa   :  { %542 = vmatpush1.bf16.msra.mxu0 %v1612_v3  ;;  %1595 = vmatpush1.bf16.msra.mxu1 %v1612_v3  ;;  %v1664_v28 = vld [vmem:[%s2623_s0 + $0x120] ss:$8 sps:$4 sm:$0xff]   ;;  %v1635_v29 = vld [vmem:[%s2623_s0 + $0x34] ss:$8 sps:$4 sm:$0xff]   ;;  %v1637_v31 = vld [vmem:[%s2623_s0 + $0x30] ss:$8 sps:$4 sm:$0xff]  }
   0xb   :  { %543 = vmatprep.subr.bf16.mxu0 %v1722_v0  ;;  %1580 = vmatprep.subr.bf16.mxu1 %v1722_v0  ;;  %v1668_v30 = vld [vmem:[%s2623_s0 + $0x134] ss:$8 sps:$4 sm:$0xff]   ;;  %v1670_v32 = vld [vmem:[%s2623_s0 + $0x130] ss:$8 sps:$4 sm:$0xff]   ;;  %v1638_v33 = vld [vmem:[%s2623_s0 + $0x44] ss:$8 sps:$4 sm:$0xff]  }
   0xc   :  { %v1674_v34 = vld [vmem:[%s2623_s0 + $0x144] ss:$8 sps:$4 sm:$0xff]   ;;  %v1640_v35 = vld [vmem:[%s2623_s0 + $0x40] ss:$8 sps:$4 sm:$0xff]   ;;  %v1641_v37 = vld [vmem:[%s2623_s0 + $0x54] ss:$8 sps:$4 sm:$0xff]  }
   0xd   :  { %v1676_v36 = vld [vmem:[%s2623_s0 + $0x140] ss:$8 sps:$4 sm:$0xff]   ;;  %v1680_v38 = vld [vmem:[%s2623_s0 + $0x154] ss:$8 sps:$4 sm:$0xff]   ;;  %v1643_v39 = vld [vmem:[%s2623_s0 + $0x50] ss:$8 sps:$4 sm:$0xff]  }
   0xe   :  { %544 = vmatpush1.bf16.msra.mxu0 %v1613_v4  ;;  %1596 = vmatpush1.bf16.msra.mxu1 %v1613_v4  ;;  %v1682_v40 = vld [vmem:[%s2623_s0 + $0x150] ss:$8 sps:$4 sm:$0xff]   ;;  %v1644_v41 = vld [vmem:[%s2623_s0 + $0x64] ss:$8 sps:$4 sm:$0xff]   ;;  %v1646_v43 = vld [vmem:[%s2623_s0 + $0x60] ss:$8 sps:$4 sm:$0xff]  }
   0xf   :  { %545 = vmatprep.subr.bf16.mxu0 %v1722_v0  ;;  %1581 = vmatprep.subr.bf16.mxu1 %v1722_v0  ;;  %v1686_v42 = vld [vmem:[%s2623_s0 + $0x164] ss:$8 sps:$4 sm:$0xff]   ;;  %v1688_v44 = vld [vmem:[%s2623_s0 + $0x160] ss:$8 sps:$4 sm:$0xff]   ;;  %v1647_v45 = vld [vmem:[%s2623_s0 + $0x74] ss:$8 sps:$4 sm:$0xff]  }
  0x10   :  { %v1692_v46 = vld [vmem:[%s2623_s0 + $0x174] ss:$8 sps:$4 sm:$0xff]   ;;  %v1649_v47 = vld [vmem:[%s2623_s0 + $0x70] ss:$8 sps:$4 sm:$0xff]   ;;  %v1653_v49 = vld [vmem:[%s2623_s0 + $0x84] ss:$8 sps:$4 sm:$0xff]  }
  0x11   :  { %v1694_v48 = vld [vmem:[%s2623_s0 + $0x170] ss:$8 sps:$4 sm:$0xff]   ;;  %v1698_v50 = vld [vmem:[%s2623_s0 + $0x184] ss:$8 sps:$4 sm:$0xff]   ;;  %v1655_v51 = vld [vmem:[%s2623_s0 + $0x80] ss:$8 sps:$4 sm:$0xff]  }
  0x12   :  { %546 = vmatpush1.bf16.msra.mxu0 %v1614_v5  ;;  %1597 = vmatpush1.bf16.msra.mxu1 %v1614_v5  ;;  %v1700_v52 = vld [vmem:[%s2623_s0 + $0x180] ss:$8 sps:$4 sm:$0xff]   ;;  %v1659_v53 = vld [vmem:[%s2623_s0 + $0x94] ss:$8 sps:$4 sm:$0xff]   ;;  %v1661_v55 = vld [vmem:[%s2623_s0 + $0x90] ss:$8 sps:$4 sm:$0xff]  }
  0x13   :  { %547 = vmatprep.subr.bf16.mxu0 %v1722_v0  ;;  %1582 = vmatprep.subr.bf16.mxu1 %v1722_v0  ;;  %v1701_v54 = vld [vmem:[%s2623_s0 + $0x194] ss:$8 sps:$4 sm:$0xff]   ;;  %v1703_v56 = vld [vmem:[%s2623_s0 + $0x190] ss:$8 sps:$4 sm:$0xff]   ;;  %v1665_v57 = vld [vmem:[%s2623_s0 + $0xa4] ss:$8 sps:$4 sm:$0xff]  }
  0x14   :  { %v1704_v58 = vld [vmem:[%s2623_s0 + $0x1a4] ss:$8 sps:$4 sm:$0xff]   ;;  %v1667_v59 = vld [vmem:[%s2623_s0 + $0xa0] ss:$8 sps:$4 sm:$0xff]   ;;  %v1671_v61 = vld [vmem:[%s2623_s0 + $0xb4] ss:$8 sps:$4 sm:$0xff]  }
  0x15   :  { %v1706_v60 = vld [vmem:[%s2623_s0 + $0x1a0] ss:$8 sps:$4 sm:$0xff]   ;;  %v1707_v62 = vld [vmem:[%s2623_s0 + $0x1b4] ss:$8 sps:$4 sm:$0xff]   ;;  %v1673_v63 = vld [vmem:[%s2623_s0 + $0xb0] ss:$8 sps:$4 sm:$0xff]  }
  0x16   :  { %548 = vmatpush1.bf16.msra.mxu0 %v1615_v7  ;;  %1598 = vmatpush1.bf16.msra.mxu1 %v1615_v7  ;;  %v1677_v1 = vld [vmem:[%s2623_s0 + $0xc4] ss:$8 sps:$4 sm:$0xff]   ;;  %v1679_v3 = vld [vmem:[%s2623_s0 + $0xc0] ss:$8 sps:$4 sm:$0xff]   ;;  %v1683_v5 = vld [vmem:[%s2623_s0 + $0xd4] ss:$8 sps:$4 sm:$0xff]  }
  0x17   :  { %549 = vmatprep.subr.bf16.mxu0 %v1722_v0  ;;  %1583 = vmatprep.subr.bf16.mxu1 %v1722_v0  ;;  %v1710_v2 = vld [vmem:[%s2623_s0 + $0x1c4] ss:$8 sps:$4 sm:$0xff]   ;;  %v1712_v4 = vld [vmem:[%s2623_s0 + $0x1c0] ss:$8 sps:$4 sm:$0xff]   ;;  %v1713_v6 = vld [vmem:[%s2623_s0 + $0x1d4] ss:$8 sps:$4 sm:$0xff]  }
  0x18   :  { %v1685_v7 = vld [vmem:[%s2623_s0 + $0xd0] ss:$8 sps:$4 sm:$0xff]   ;;  %v1716_v10 = vld [vmem:[%s2623_s0 + $0x1e4] ss:$8 sps:$4 sm:$0xff]  }
  0x1a   :  { %550 = vmatpush1.bf16.msra.mxu0 %v1616_v8  ;;  %1599 = vmatpush1.bf16.msra.mxu1 %v1616_v8  ;;  %v1715_v8 = vld [vmem:[%s2623_s0 + $0x1d0] ss:$8 sps:$4 sm:$0xff]  }
  0x1b   :  { %551 = vmatprep.subr.bf16.mxu0 %v1722_v0  ;;  %1584 = vmatprep.subr.bf16.mxu1 %v1722_v0 }
  0x1e   :  { %552 = vmatpush1.bf16.msra.mxu0 %v1617_v9  ;;  %1600 = vmatpush1.bf16.msra.mxu1 %v1617_v9  ;;  %v1689_v9 = vld [vmem:[%s2623_s0 + $0xe4] ss:$8 sps:$4 sm:$0xff]  }
  0x1f   :  { %553 = vmatprep.subr.bf16.mxu0 %v1722_v0  ;;  %1585 = vmatprep.subr.bf16.mxu1 %v1722_v0 }
  0x22   :  { %554 = vmatpush2.bf16.msra.mxu0 %v1618_v11  ;;  %1601 = vmatpush2.bf16.msra.mxu1 %v1618_v11  ;;  %v1691_v11 = vld [vmem:[%s2623_s0 + $0xe0] ss:$8 sps:$4 sm:$0xff]  }
  0x23   :  { %555 = vmatprep.subr.bf16.mxu0 %v1722_v0  ;;  %1586 = vmatprep.subr.bf16.mxu1 %v1722_v0 }
  0x26   :  { %556 = vmatpush2.bf16.msra.mxu0 %v1619_v12  ;;  %1602 = vmatpush2.bf16.msra.mxu1 %v1619_v12  ;;  %v1718_v12 = vld [vmem:[%s2623_s0 + $0x1e0] ss:$8 sps:$4 sm:$0xff]  }
  0x27   :  { %557 = vmatprep.subr.bf16.mxu0 %v1722_v0  ;;  %1587 = vmatprep.subr.bf16.mxu1 %v1722_v0 }
  0x2a   :  { %558 = vmatpush2.bf16.msra.mxu0 %v1620_v13  ;;  %1603 = vmatpush2.bf16.msra.mxu1 %v1620_v13  ;;  %v1695_v13 = vld [vmem:[%s2623_s0 + $0xf4] ss:$8 sps:$4 sm:$0xff]  }
  0x2b   :  { %559 = vmatprep.subr.bf16.mxu0 %v1722_v0  ;;  %1588 = vmatprep.subr.bf16.mxu1 %v1722_v0 }
  0x2e   :  { %560 = vmatpush2.bf16.msra.mxu0 %v1621_v14  ;;  %1604 = vmatpush2.bf16.msra.mxu1 %v1621_v14  ;;  %v1719_v14 = vld [vmem:[%s2623_s0 + $0x1f4] ss:$8 sps:$4 sm:$0xff]  }
  0x2f   :  { %561 = vmatprep.subr.bf16.mxu0 %v1722_v0  ;;  %1589 = vmatprep.subr.bf16.mxu1 %v1722_v0 }
  0x32   :  { %562 = vmatpush2.bf16.msra.mxu0 %v1622_v15  ;;  %1605 = vmatpush2.bf16.msra.mxu1 %v1622_v15  ;;  %v1697_v15 = vld [vmem:[%s2623_s0 + $0xf0] ss:$8 sps:$4 sm:$0xff]  }
  0x33   :  { %563 = vmatprep.subr.bf16.mxu0 %v1722_v0  ;;  %1590 = vmatprep.subr.bf16.mxu1 %v1722_v0 }
  0x36   :  { %564 = vmatpush2.bf16.msra.mxu0 %v1623_v16  ;;  %1606 = vmatpush2.bf16.msra.mxu1 %v1623_v16  ;;  %v1721_v16 = vld [vmem:[%s2623_s0 + $0x1f0] ss:$8 sps:$4 sm:$0xff]  }
  0x37   :  { %565 = vmatprep.subr.bf16.mxu0 %v1722_v0  ;;  %1591 = vmatprep.subr.bf16.mxu1 %v1722_v0 }
  0x3a   :  { %566 = vmatpush2.bf16.msra.mxu0 %v1624_v17  ;;  %1607 = vmatpush2.bf16.msra.mxu1 %v1624_v17  ;;  %v2028_v17 = vld [vmem:[%s2624_s2] ss:$0 sm:$0xff] }
  0x3b   :  { %567 = vmatprep.subr.bf16.mxu0 %v1722_v0  ;;  %1592 = vmatprep.subr.bf16.mxu1 %v1722_v0  ;;  %v1709_v0 = vld [vmem:[%s2623_s0 + $0x1b0] ss:$8 sps:$4 sm:$0xff]  }
  0x3e   :  { %568 = vmatpush2.bf16.msra.mxu0 %v1625_v18  ;;  %1608 = vmatpush2.bf16.msra.mxu1 %v1625_v18 }
  0x41   :  { %570 = vmatmul.mubr.bf16.vlgmr.msra.gmra.mxu0 %v1626_v19  ;;  %698 = vmatmul.mubr.bf16.vlgmr.msra.gmra.mxu1 %v1650_v20 }
  0x42   :  { %577 = vmatprep.mubr.bf16.mxu0 %v1629_v21  ;;  %705 = vmatprep.mubr.bf16.mxu1 %v1656_v22 }
  0x49   :  { %578 = vmatmul.mubr.bf16.gmra.mxu0 %v1631_v23  ;;  %706 = vmatmul.mubr.bf16.gmra.mxu1 %v1658_v24 }
  0x4a   :  { %585 = vmatprep.mubr.bf16.mxu0 %v1632_v25  ;;  %713 = vmatprep.mubr.bf16.mxu1 %v1662_v26 }
  0x51   :  { %586 = vmatmul.mubr.bf16.gmra.mxu0 %v1634_v27  ;;  %714 = vmatmul.mubr.bf16.gmra.mxu1 %v1664_v28 }
  0x52   :  { %593 = vmatprep.mubr.bf16.mxu0 %v1635_v29  ;;  %721 = vmatprep.mubr.bf16.mxu1 %v1668_v30 }
  0x59   :  { %594 = vmatmul.mubr.bf16.gmra.mxu0 %v1637_v31  ;;  %722 = vmatmul.mubr.bf16.gmra.mxu1 %v1670_v32 }
  0x5a   :  { %601 = vmatprep.mubr.bf16.mxu0 %v1638_v33  ;;  %729 = vmatprep.mubr.bf16.mxu1 %v1674_v34 }
  0x61   :  { %602 = vmatmul.mubr.bf16.gmra.mxu0 %v1640_v35  ;;  %730 = vmatmul.mubr.bf16.gmra.mxu1 %v1676_v36 }
  0x62   :  { %609 = vmatprep.mubr.bf16.mxu0 %v1641_v37  ;;  %737 = vmatprep.mubr.bf16.mxu1 %v1680_v38 }
  0x69   :  { %610 = vmatmul.mubr.bf16.gmra.mxu0 %v1643_v39  ;;  %738 = vmatmul.mubr.bf16.gmra.mxu1 %v1682_v40 }
  0x6a   :  { %617 = vmatprep.mubr.bf16.mxu0 %v1644_v41  ;;  %745 = vmatprep.mubr.bf16.mxu1 %v1686_v42 }
  0x71   :  { %618 = vmatmul.mubr.bf16.gmra.mxu0 %v1646_v43  ;;  %746 = vmatmul.mubr.bf16.gmra.mxu1 %v1688_v44 }
  0x72   :  { %625 = vmatprep.mubr.bf16.mxu0 %v1647_v45  ;;  %753 = vmatprep.mubr.bf16.mxu1 %v1692_v46 }
  0x79   :  { %626 = vmatmul.mubr.bf16.gmra.mxu0 %v1649_v47  ;;  %754 = vmatmul.mubr.bf16.gmra.mxu1 %v1694_v48 }
  0x7a   :  { %633 = vmatprep.mubr.bf16.mxu0 %v1653_v49  ;;  %761 = vmatprep.mubr.bf16.mxu1 %v1698_v50 }
  0x81   :  { %634 = vmatmul.mubr.bf16.gmra.mxu0 %v1655_v51  ;;  %762 = vmatmul.mubr.bf16.gmra.mxu1 %v1700_v52 }
  0x82   :  { %641 = vmatprep.mubr.bf16.mxu0 %v1659_v53  ;;  %769 = vmatprep.mubr.bf16.mxu1 %v1701_v54 }
  0x89   :  { %642 = vmatmul.mubr.bf16.gmra.mxu0 %v1661_v55  ;;  %770 = vmatmul.mubr.bf16.gmra.mxu1 %v1703_v56 }
  0x8a   :  { %649 = vmatprep.mubr.bf16.mxu0 %v1665_v57  ;;  %777 = vmatprep.mubr.bf16.mxu1 %v1704_v58 }
  0x91   :  { %650 = vmatmul.mubr.bf16.gmra.mxu0 %v1667_v59  ;;  %778 = vmatmul.mubr.bf16.gmra.mxu1 %v1706_v60 }
  0x92   :  { %657 = vmatprep.mubr.bf16.mxu0 %v1671_v61  ;;  %785 = vmatprep.mubr.bf16.mxu1 %v1707_v62 }
  0x99   :  { %658 = vmatmul.mubr.bf16.gmra.mxu0 %v1673_v63  ;;  %786 = vmatmul.mubr.bf16.gmra.mxu1 %v1709_v0 }
  0x9a   :  { %665 = vmatprep.mubr.bf16.mxu0 %v1677_v1  ;;  %793 = vmatprep.mubr.bf16.mxu1 %v1710_v2 }
  0xa1   :  { %666 = vmatmul.mubr.bf16.gmra.mxu0 %v1679_v3  ;;  %794 = vmatmul.mubr.bf16.gmra.mxu1 %v1712_v4 }
  0xa2   :  { %673 = vmatprep.mubr.bf16.mxu0 %v1683_v5  ;;  %801 = vmatprep.mubr.bf16.mxu1 %v1713_v6 }
  0xa9   :  { %674 = vmatmul.mubr.bf16.gmra.mxu0 %v1685_v7  ;;  %802 = vmatmul.mubr.bf16.gmra.mxu1 %v1715_v8 }
  0xaa   :  { %681 = vmatprep.mubr.bf16.mxu0 %v1689_v9  ;;  %809 = vmatprep.mubr.bf16.mxu1 %v1716_v10 }
  0xb1   :  { %682 = vmatmul.mubr.bf16.gmra.mxu0 %v1691_v11  ;;  %810 = vmatmul.mubr.bf16.gmra.mxu1 %v1718_v12 }
  0xb2   :  { %689 = vmatprep.mubr.bf16.mxu0 %v1695_v13  ;;  %817 = vmatprep.mubr.bf16.mxu1 %v1719_v14 }
  0xb9   :  { %690 = vmatmul.mubr.bf16.gmra.mxu0 %v1697_v15  ;;  %818 = vmatmul.mubr.bf16.gmra.mxu1 %v1721_v16 }
 0x101   :  { %v571_v18 = vpop.f32.mrf.mxu0  ;;  %v699_v19 = vpop.f32.mrf.mxu1 }
 0x102   :  { %v2031_v20 = vadd.f32 %v2028_v17, %v571_v18  ;;  %v2034_v21 = vadd.f32 %v2028_v17, %v699_v19 }
 0x103   :  { %v573_v22 = vpop.f32.mrf.mxu0  ;;  %v701_v23 = vpop.f32.mrf.mxu1 }
 0x104   :  { %826 = vst [vmem:[%s2625_s3] sm:$0xff] %v2031_v20  ;;  %858 = vst [vmem:[%s2625_s3 + $0x100] sm:$0xff] %v2034_v21 }
 0x105   :  { %v574_v24 = vpop.f32.mrf.mxu0  ;;  %v702_v25 = vpop.f32.mrf.mxu1 }
 0x106   :  { %v2045_v26 = vadd.f32 %v2028_v17, %v574_v24  ;;  %v2048_v27 = vadd.f32 %v2028_v17, %v702_v25 }
 0x107   :  { %v576_v28 = vpop.f32.mrf.mxu0  ;;  %v704_v29 = vpop.f32.mrf.mxu1 }
 0x108   :  { %827 = vst [vmem:[%s2625_s3 + $0x8] sm:$0xff] %v2045_v26  ;;  %859 = vst [vmem:[%s2625_s3 + $0x108] sm:$0xff] %v2048_v27 }
 0x109   :  { %v579_v30 = vpop.f32.mrf.mxu0  ;;  %v707_v31 = vpop.f32.mrf.mxu1 }
 0x10a   :  { %v2059_v32 = vadd.f32 %v2028_v17, %v579_v30  ;;  %v2062_v33 = vadd.f32 %v2028_v17, %v707_v31 }
 0x10b   :  { %v581_v34 = vpop.f32.mrf.mxu0  ;;  %v709_v35 = vpop.f32.mrf.mxu1 }
 0x10c   :  { %828 = vst [vmem:[%s2625_s3 + $0x10] sm:$0xff] %v2059_v32  ;;  %860 = vst [vmem:[%s2625_s3 + $0x110] sm:$0xff] %v2062_v33 }
 0x10d   :  { %v582_v36 = vpop.f32.mrf.mxu0  ;;  %v710_v37 = vpop.f32.mrf.mxu1 }
 0x10e   :  { %v2073_v38 = vadd.f32 %v2028_v17, %v582_v36  ;;  %v2076_v39 = vadd.f32 %v2028_v17, %v710_v37 }
 0x10f   :  { %v584_v40 = vpop.f32.mrf.mxu0  ;;  %v712_v41 = vpop.f32.mrf.mxu1 }
 0x110   :  { %829 = vst [vmem:[%s2625_s3 + $0x18] sm:$0xff] %v2073_v38  ;;  %861 = vst [vmem:[%s2625_s3 + $0x118] sm:$0xff] %v2076_v39 }
 0x111   :  { %v587_v42 = vpop.f32.mrf.mxu0  ;;  %v715_v43 = vpop.f32.mrf.mxu1 }
 0x112   :  { %v2087_v44 = vadd.f32 %v2028_v17, %v587_v42  ;;  %v2090_v45 = vadd.f32 %v2028_v17, %v715_v43 }
 0x113   :  { %v589_v46 = vpop.f32.mrf.mxu0  ;;  %v717_v47 = vpop.f32.mrf.mxu1 }
 0x114   :  { %830 = vst [vmem:[%s2625_s3 + $0x20] sm:$0xff] %v2087_v44  ;;  %862 = vst [vmem:[%s2625_s3 + $0x120] sm:$0xff] %v2090_v45 }
 0x115   :  { %v590_v48 = vpop.f32.mrf.mxu0  ;;  %v718_v49 = vpop.f32.mrf.mxu1 }
 0x116   :  { %v2101_v50 = vadd.f32 %v2028_v17, %v590_v48  ;;  %v2104_v51 = vadd.f32 %v2028_v17, %v718_v49 }
 0x117   :  { %v592_v52 = vpop.f32.mrf.mxu0  ;;  %v720_v53 = vpop.f32.mrf.mxu1 }
 0x118   :  { %831 = vst [vmem:[%s2625_s3 + $0x28] sm:$0xff] %v2101_v50  ;;  %863 = vst [vmem:[%s2625_s3 + $0x128] sm:$0xff] %v2104_v51 }
 0x119   :  { %v595_v54 = vpop.f32.mrf.mxu0  ;;  %v723_v55 = vpop.f32.mrf.mxu1 }
 0x11a   :  { %v2115_v56 = vadd.f32 %v2028_v17, %v595_v54  ;;  %v2118_v57 = vadd.f32 %v2028_v17, %v723_v55 }
 0x11b   :  { %v597_v58 = vpop.f32.mrf.mxu0  ;;  %v725_v59 = vpop.f32.mrf.mxu1 }
 0x11c   :  { %832 = vst [vmem:[%s2625_s3 + $0x30] sm:$0xff] %v2115_v56  ;;  %864 = vst [vmem:[%s2625_s3 + $0x130] sm:$0xff] %v2118_v57 }
 0x11d   :  { %v598_v60 = vpop.f32.mrf.mxu0  ;;  %v726_v61 = vpop.f32.mrf.mxu1 }
 0x11e   :  { %v2129_v62 = vadd.f32 %v2028_v17, %v598_v60  ;;  %v2132_v63 = vadd.f32 %v2028_v17, %v726_v61 }
 0x11f   :  { %v600_v0 = vpop.f32.mrf.mxu0  ;;  %v728_v1 = vpop.f32.mrf.mxu1 }
 0x120   :  { %833 = vst [vmem:[%s2625_s3 + $0x38] sm:$0xff] %v2129_v62  ;;  %865 = vst [vmem:[%s2625_s3 + $0x138] sm:$0xff] %v2132_v63 }
 0x121   :  { %v603_v2 = vpop.f32.mrf.mxu0  ;;  %v731_v3 = vpop.f32.mrf.mxu1 }
 0x122   :  { %v2143_v4 = vadd.f32 %v2028_v17, %v603_v2  ;;  %v2146_v5 = vadd.f32 %v2028_v17, %v731_v3  ;;  %v1347_v3 = vmul.f32 %v2045_v26, %v2045_v26 }
 0x123   :  { %v605_v6 = vpop.f32.mrf.mxu0  ;;  %v733_v7 = vpop.f32.mrf.mxu1 }
 0x124   :  { %834 = vst [vmem:[%s2625_s3 + $0x40] sm:$0xff] %v2143_v4  ;;  %866 = vst [vmem:[%s2625_s3 + $0x140] sm:$0xff] %v2146_v5 }
 0x125   :  { %v606_v8 = vpop.f32.mrf.mxu0  ;;  %v734_v9 = vpop.f32.mrf.mxu1 }
 0x126   :  { %v2157_v10 = vadd.f32 %v2028_v17, %v606_v8  ;;  %v2160_v11 = vadd.f32 %v2028_v17, %v734_v9 }
 0x127   :  { %v608_v12 = vpop.f32.mrf.mxu0  ;;  %v736_v13 = vpop.f32.mrf.mxu1 }
 0x128   :  { %835 = vst [vmem:[%s2625_s3 + $0x48] sm:$0xff] %v2157_v10  ;;  %867 = vst [vmem:[%s2625_s3 + $0x148] sm:$0xff] %v2160_v11  ;;  %v1346_v12 = vmul.f32 %v2031_v20, %v2031_v20  ;;  %v1348_v13 = vmul.f32 %v2059_v32, %v2059_v32 }
 0x129   :  { %v611_v14 = vpop.f32.mrf.mxu0  ;;  %v739_v15 = vpop.f32.mrf.mxu1 }
 0x12a   :  { %v2171_v16 = vadd.f32 %v2028_v17, %v611_v14  ;;  %v2174_v18 = vadd.f32 %v2028_v17, %v739_v15 }
 0x12b   :  { %v613_v19 = vpop.f32.mrf.mxu0  ;;  %v741_v22 = vpop.f32.mrf.mxu1 }
 0x12c   :  { %836 = vst [vmem:[%s2625_s3 + $0x50] sm:$0xff] %v2171_v16  ;;  %868 = vst [vmem:[%s2625_s3 + $0x150] sm:$0xff] %v2174_v18  ;;  %v1277_v19 = vadd.f32 %v2045_v26, %v2031_v20  ;;  %v1410_v22 = vadd.f32 %v1347_v3, %v1346_v12 }
 0x12d   :  { %v614_v23 = vpop.f32.mrf.mxu0  ;;  %v742_v24 = vpop.f32.mrf.mxu1 }
 0x12e   :  { %v2185_v25 = vadd.f32 %v2028_v17, %v614_v23  ;;  %v2188_v28 = vadd.f32 %v2028_v17, %v742_v24  ;;  %v1349_v23 = vmul.f32 %v2073_v38, %v2073_v38 }
 0x12f   :  { %v616_v29 = vpop.f32.mrf.mxu0  ;;  %v744_v30 = vpop.f32.mrf.mxu1 }
 0x130   :  { %837 = vst [vmem:[%s2625_s3 + $0x58] sm:$0xff] %v2185_v25  ;;  %869 = vst [vmem:[%s2625_s3 + $0x158] sm:$0xff] %v2188_v28  ;;  %v1278_v30 = vadd.f32 %v1277_v19, %v2059_v32 }
 0x131   :  { %v619_v31 = vpop.f32.mrf.mxu0  ;;  %v747_v34 = vpop.f32.mrf.mxu1 }
 0x132   :  { %v2199_v35 = vadd.f32 %v2028_v17, %v619_v31  ;;  %v2202_v36 = vadd.f32 %v2028_v17, %v747_v34  ;;  %v1411_v31 = vadd.f32 %v1410_v22, %v1348_v13  ;;  %v1350_v34 = vmul.f32 %v2087_v44, %v2087_v44 }
 0x133   :  { %v621_v37 = vpop.f32.mrf.mxu0  ;;  %v749_v40 = vpop.f32.mrf.mxu1 }
 0x134   :  { %838 = vst [vmem:[%s2625_s3 + $0x60] sm:$0xff] %v2199_v35  ;;  %870 = vst [vmem:[%s2625_s3 + $0x160] sm:$0xff] %v2202_v36  ;;  %v1412_v32 = vadd.f32 %v1411_v31, %v1349_v23  ;;  %v1355_v23 = vmul.f32 %v2157_v10, %v2157_v10 }
 0x135   :  { %v622_v41 = vpop.f32.mrf.mxu0  ;;  %v750_v42 = vpop.f32.mrf.mxu1 }
 0x136   :  { %v2213_v43 = vadd.f32 %v2028_v17, %v622_v41  ;;  %v2216_v46 = vadd.f32 %v2028_v17, %v750_v42  ;;  %v1279_v41 = vadd.f32 %v1278_v30, %v2073_v38  ;;  %v1351_v42 = vmul.f32 %v2101_v50, %v2101_v50 }
 0x137   :  { %v624_v47 = vpop.f32.mrf.mxu0  ;;  %v752_v48 = vpop.f32.mrf.mxu1 }
 0x138   :  { %839 = vst [vmem:[%s2625_s3 + $0x68] sm:$0xff] %v2213_v43  ;;  %871 = vst [vmem:[%s2625_s3 + $0x168] sm:$0xff] %v2216_v46 }
 0x139   :  { %v627_v49 = vpop.f32.mrf.mxu0  ;;  %v755_v52 = vpop.f32.mrf.mxu1 }
 0x13a   :  { %v2227_v53 = vadd.f32 %v2028_v17, %v627_v49  ;;  %v2230_v54 = vadd.f32 %v2028_v17, %v755_v52  ;;  %v1280_v49 = vadd.f32 %v1279_v41, %v2087_v44 }
 0x13b   :  { %v629_v55 = vpop.f32.mrf.mxu0  ;;  %v757_v58 = vpop.f32.mrf.mxu1 }
 0x13c   :  { %840 = vst [vmem:[%s2625_s3 + $0x70] sm:$0xff] %v2227_v53  ;;  %872 = vst [vmem:[%s2625_s3 + $0x170] sm:$0xff] %v2230_v54  ;;  %v1413_v55 = vadd.f32 %v1412_v32, %v1350_v34  ;;  %v1352_v58 = vmul.f32 %v2115_v56, %v2115_v56 }
 0x13d   :  { %v630_v59 = vpop.f32.mrf.mxu0  ;;  %v758_v60 = vpop.f32.mrf.mxu1 }
 0x13e   :  { %v2241_v61 = vadd.f32 %v2028_v17, %v630_v59  ;;  %v2244_v0 = vadd.f32 %v2028_v17, %v758_v60  ;;  %v1414_v44 = vadd.f32 %v1413_v55, %v1351_v42  ;;  %v1357_v42 = vmul.f32 %v2185_v25, %v2185_v25 }
 0x13f   :  { %v632_v1 = vpop.f32.mrf.mxu0  ;;  %v760_v2 = vpop.f32.mrf.mxu1 }
 0x140   :  { %841 = vst [vmem:[%s2625_s3 + $0x78] sm:$0xff] %v2241_v61  ;;  %873 = vst [vmem:[%s2625_s3 + $0x178] sm:$0xff] %v2244_v0  ;;  %v1281_v1 = vadd.f32 %v1280_v49, %v2101_v50  ;;  %v1353_v2 = vmul.f32 %v2129_v62, %v2129_v62  ;;  %v1415_v13 = vadd.f32 %v1414_v44, %v1352_v58 }
 0x141   :  { %v635_v6 = vpop.f32.mrf.mxu0  ;;  %v763_v7 = vpop.f32.mrf.mxu1 }
 0x142   :  { %v2257_v8 = vadd.f32 %v2028_v17, %v635_v6  ;;  %v2260_v9 = vadd.f32 %v2028_v17, %v763_v7  ;;  %v1282_v7 = vadd.f32 %v1281_v1, %v2115_v56  ;;  %v1416_v56 = vadd.f32 %v1415_v13, %v1353_v2 }
 0x143   :  { %v637_v14 = vpop.f32.mrf.mxu0  ;;  %v765_v15 = vpop.f32.mrf.mxu1  ;;  %v1359_v2 = vmul.f32 %v2213_v43, %v2213_v43 }
 0x144   :  { %842 = vst [vmem:[%s2625_s3 + $0x80] sm:$0xff] %v2257_v8  ;;  %874 = vst [vmem:[%s2625_s3 + $0x180] sm:$0xff] %v2260_v9  ;;  %v1354_v14 = vmul.f32 %v2143_v4, %v2143_v4  ;;  %v1283_v22 = vadd.f32 %v1282_v7, %v2129_v62 }
 0x145   :  { %v638_v24 = vpop.f32.mrf.mxu0  ;;  %v766_v29 = vpop.f32.mrf.mxu1 }
 0x146   :  { %v2280_v20 = vadd.f32 %v2028_v17, %v638_v24  ;;  %v2283_v26 = vadd.f32 %v2028_v17, %v766_v29  ;;  %v1284_v30 = vadd.f32 %v1283_v22, %v2143_v4  ;;  %v1417_v34 = vadd.f32 %v1416_v56, %v1354_v14 }
 0x147   :  { %v640_v37 = vpop.f32.mrf.mxu0  ;;  %v768_v40 = vpop.f32.mrf.mxu1 }
 0x148   :  { %843 = vst [vmem:[%s2625_s3 + $0x88] sm:$0xff] %v2280_v20  ;;  %875 = vst [vmem:[%s2625_s3 + $0x188] sm:$0xff] %v2283_v26  ;;  %v1356_v37 = vmul.f32 %v2171_v16, %v2171_v16  ;;  %v1285_v32 = vadd.f32 %v1284_v30, %v2157_v10  ;;  %v1418_v4 = vadd.f32 %v1417_v34, %v1355_v23 }
 0x149   :  { %v643_v47 = vpop.f32.mrf.mxu0  ;;  %v771_v48 = vpop.f32.mrf.mxu1  ;;  %v1361_v23 = vmul.f32 %v2241_v61, %v2241_v61 }
 0x14a   :  { %v2300_v38 = vadd.f32 %v2028_v17, %v643_v47  ;;  %v2303_v52 = vadd.f32 %v2028_v17, %v771_v48  ;;  %v1286_v49 = vadd.f32 %v1285_v32, %v2171_v16  ;;  %v1419_v58 = vadd.f32 %v1418_v4, %v1356_v37 }
 0x14b   :  { %v645_v59 = vpop.f32.mrf.mxu0  ;;  %v773_v60 = vpop.f32.mrf.mxu1 }
 0x14c   :  { %844 = vst [vmem:[%s2625_s3 + $0x90] sm:$0xff] %v2300_v38  ;;  %876 = vst [vmem:[%s2625_s3 + $0x190] sm:$0xff] %v2303_v52  ;;  %v1358_v59 = vmul.f32 %v2199_v35, %v2199_v35  ;;  %v1287_v44 = vadd.f32 %v1286_v49, %v2185_v25  ;;  %v1420_v16 = vadd.f32 %v1419_v58, %v1357_v42 }
 0x14d   :  { %v646_v3 = vpop.f32.mrf.mxu0  ;;  %v774_v6 = vpop.f32.mrf.mxu1  ;;  %v1363_v42 = vmul.f32 %v2280_v20, %v2280_v20 }
 0x14e   :  { %v2320_v50 = vadd.f32 %v2028_v17, %v646_v3  ;;  %v2323_v12 = vadd.f32 %v2028_v17, %v774_v6  ;;  %v1288_v7 = vadd.f32 %v1287_v44, %v2199_v35  ;;  %v1421_v14 = vadd.f32 %v1420_v16, %v1358_v59 }
 0x14f   :  { %v648_v15 = vpop.f32.mrf.mxu0  ;;  %v776_v19 = vpop.f32.mrf.mxu1 }
 0x150   :  { %845 = vst [vmem:[%s2625_s3 + $0x98] sm:$0xff] %v2320_v50  ;;  %877 = vst [vmem:[%s2625_s3 + $0x198] sm:$0xff] %v2323_v12  ;;  %v1360_v15 = vmul.f32 %v2227_v53, %v2227_v53  ;;  %v1289_v56 = vadd.f32 %v1288_v7, %v2213_v43  ;;  %v1422_v35 = vadd.f32 %v1421_v14, %v1359_v2 }
 0x151   :  { %v651_v24 = vpop.f32.mrf.mxu0  ;;  %v779_v29 = vpop.f32.mrf.mxu1  ;;  %v1365_v2 = vmul.f32 %v2320_v50, %v2320_v50 }
 0x152   :  { %v2340_v62 = vadd.f32 %v2028_v17, %v651_v24  ;;  %v2343_v31 = vadd.f32 %v2028_v17, %v779_v29  ;;  %v1290_v30 = vadd.f32 %v1289_v56, %v2227_v53  ;;  %v1423_v37 = vadd.f32 %v1422_v35, %v1360_v15 }
 0x153   :  { %v653_v40 = vpop.f32.mrf.mxu0  ;;  %v781_v41 = vpop.f32.mrf.mxu1 }
 0x154   :  { %846 = vst [vmem:[%s2625_s3 + $0xa0] sm:$0xff] %v2340_v62  ;;  %878 = vst [vmem:[%s2625_s3 + $0x1a0] sm:$0xff] %v2343_v31  ;;  %v1362_v40 = vmul.f32 %v2257_v8, %v2257_v8  ;;  %v1291_v4 = vadd.f32 %v1290_v30, %v2241_v61  ;;  %v1424_v53 = vadd.f32 %v1423_v37, %v1361_v23 }
 0x155   :  { %v654_v47 = vpop.f32.mrf.mxu0  ;;  %v782_v48 = vpop.f32.mrf.mxu1 }
 0x156   :  { %v2360_v10 = vadd.f32 %v2028_v17, %v654_v47  ;;  %v2363_v55 = vadd.f32 %v2028_v17, %v782_v48  ;;  %v1292_v49 = vadd.f32 %v1291_v4, %v2257_v8  ;;  %v1425_v59 = vadd.f32 %v1424_v53, %v1362_v40 }
 0x157   :  { %v656_v60 = vpop.f32.mrf.mxu0  ;;  %v784_v1 = vpop.f32.mrf.mxu1 }
 0x158   :  { %847 = vst [vmem:[%s2625_s3 + $0xa8] sm:$0xff] %v2360_v10  ;;  %879 = vst [vmem:[%s2625_s3 + $0x1a8] sm:$0xff] %v2363_v55  ;;  %v1364_v60 = vmul.f32 %v2300_v38, %v2300_v38  ;;  %v1293_v16 = vadd.f32 %v1292_v49, %v2280_v20  ;;  %v1426_v8 = vadd.f32 %v1425_v59, %v1363_v42 }
 0x159   :  { %v659_v3 = vpop.f32.mrf.mxu0  ;;  %v787_v6 = vpop.f32.mrf.mxu1  ;;  %v1367_v23 = vmul.f32 %v2360_v10, %v2360_v10 }
 0x15a   :  { %v2380_v25 = vadd.f32 %v2028_v17, %v659_v3  ;;  %v2383_v13 = vadd.f32 %v2028_v17, %v787_v6  ;;  %v1294_v7 = vadd.f32 %v1293_v16, %v2300_v38  ;;  %v1427_v15 = vadd.f32 %v1426_v8, %v1364_v60 }
 0x15b   :  { %v661_v19 = vpop.f32.mrf.mxu0  ;;  %v789_v22 = vpop.f32.mrf.mxu1 }
 0x15c   :  { %848 = vst [vmem:[%s2625_s3 + $0xb0] sm:$0xff] %v2380_v25  ;;  %880 = vst [vmem:[%s2625_s3 + $0x1b0] sm:$0xff] %v2383_v13  ;;  %v1366_v19 = vmul.f32 %v2340_v62, %v2340_v62  ;;  %v1295_v35 = vadd.f32 %v1294_v7, %v2320_v50  ;;  %v1428_v38 = vadd.f32 %v1427_v15, %v1365_v2 }
 0x15d   :  { %v662_v24 = vpop.f32.mrf.mxu0  ;;  %v790_v29 = vpop.f32.mrf.mxu1 }
 0x15e   :  { %v663_v43 = vadd.f32 %v2028_v17, %v662_v24  ;;  %v2401_v34 = vadd.f32 %v2028_v17, %v790_v29  ;;  %v1296_v30 = vadd.f32 %v1295_v35, %v2340_v62  ;;  %v1429_v40 = vadd.f32 %v1428_v38, %v1366_v19 }
 0x15f   :  { %v664_v41 = vpop.f32.mrf.mxu0  ;;  %v792_v32 = vpop.f32.mrf.mxu1 }
 0x160   :  { %849 = vst [vmem:[%s2625_s3 + $0xb8] sm:$0xff] %v663_v43  ;;  %881 = vst [vmem:[%s2625_s3 + $0x1b8] sm:$0xff] %v2401_v34  ;;  %v1368_v41 = vmul.f32 %v2380_v25, %v2380_v25  ;;  %v1297_v53 = vadd.f32 %v1296_v30, %v2360_v10  ;;  %v1430_v62 = vadd.f32 %v1429_v40, %v1367_v23 }
 0x161   :  { %v667_v47 = vpop.f32.mrf.mxu0  ;;  %v795_v48 = vpop.f32.mrf.mxu1  ;;  %v1369_v42 = vmul.f32 %v663_v43, %v663_v43 }
 0x162   :  { %v668_v58 = vadd.f32 %v2028_v17, %v667_v47  ;;  %v2418_v61 = vadd.f32 %v2028_v17, %v795_v48  ;;  %v1298_v49 = vadd.f32 %v1297_v53, %v2380_v25  ;;  %v1431_v10 = vadd.f32 %v1430_v62, %v1368_v41 }
 0x163   :  { %v669_v1 = vpop.f32.mrf.mxu0  ;;  %v797_v44 = vpop.f32.mrf.mxu1 }
 0x164   :  { %850 = vst [vmem:[%s2625_s3 + $0xc0] sm:$0xff] %v668_v58  ;;  %882 = vst [vmem:[%s2625_s3 + $0x1c0] sm:$0xff] %v2418_v61  ;;  %v1370_v1 = vmul.f32 %v668_v58, %v668_v58  ;;  %v1299_v8 = vadd.f32 %v1298_v49, %v663_v43  ;;  %v1432_v25 = vadd.f32 %v1431_v10, %v1369_v42 }
 0x165   :  { %v670_v3 = vpop.f32.mrf.mxu0  ;;  %v798_v6 = vpop.f32.mrf.mxu1 }
 0x166   :  { %v671_v14 = vadd.f32 %v2028_v17, %v670_v3  ;;  %v2435_v20 = vadd.f32 %v2028_v17, %v798_v6  ;;  %v1300_v7 = vadd.f32 %v1299_v8, %v668_v58  ;;  %v1433_v43 = vadd.f32 %v1432_v25, %v1370_v1 }
 0x167   :  { %v672_v22 = vpop.f32.mrf.mxu0  ;;  %v800_v56 = vpop.f32.mrf.mxu1 }
 0x168   :  { %851 = vst [vmem:[%s2625_s3 + $0xc8] sm:$0xff] %v671_v14  ;;  %883 = vst [vmem:[%s2625_s3 + $0x1c8] sm:$0xff] %v2435_v20  ;;  %v1371_v2 = vmul.f32 %v671_v14, %v671_v14  ;;  %v1301_v38 = vadd.f32 %v1300_v7, %v671_v14 }
 0x169   :  { %v675_v24 = vpop.f32.mrf.mxu0  ;;  %v803_v29 = vpop.f32.mrf.mxu1 }
 0x16a   :  { %v676_v37 = vadd.f32 %v2028_v17, %v675_v24  ;;  %v2452_v50 = vadd.f32 %v2028_v17, %v803_v29  ;;  %v1434_v58 = vadd.f32 %v1433_v43, %v1371_v2 }
 0x16b   :  { %v677_v32 = vpop.f32.mrf.mxu0  ;;  %v805_v4 = vpop.f32.mrf.mxu1 }
 0x16c   :  { %852 = vst [vmem:[%s2625_s3 + $0xd0] sm:$0xff] %v676_v37  ;;  %884 = vst [vmem:[%s2625_s3 + $0x1d0] sm:$0xff] %v2452_v50  ;;  %v1372_v22 = vmul.f32 %v676_v37, %v676_v37  ;;  %v1302_v30 = vadd.f32 %v1301_v38, %v676_v37 }
 0x16d   :  { %v678_v47 = vpop.f32.mrf.mxu0  ;;  %v806_v48 = vpop.f32.mrf.mxu1 }
 0x16e   :  { %v679_v59 = vadd.f32 %v2028_v17, %v678_v47  ;;  %v2467_v60 = vadd.f32 %v2028_v17, %v806_v48  ;;  %v1435_v14 = vadd.f32 %v1434_v58, %v1372_v22 }
 0x16f   :  { %v680_v44 = vpop.f32.mrf.mxu0  ;;  %v808_v16 = vpop.f32.mrf.mxu1 }
 0x170   :  { %853 = vst [vmem:[%s2625_s3 + $0xd8] sm:$0xff] %v679_v59  ;;  %885 = vst [vmem:[%s2625_s3 + $0x1d8] sm:$0xff] %v2467_v60  ;;  %v1373_v23 = vmul.f32 %v679_v59, %v679_v59  ;;  %v1303_v53 = vadd.f32 %v1302_v30, %v679_v59 }
 0x171   :  { %v683_v3 = vpop.f32.mrf.mxu0  ;;  %v811_v6 = vpop.f32.mrf.mxu1 }
 0x172   :  { %v684_v15 = vadd.f32 %v2028_v17, %v683_v3  ;;  %v2478_v19 = vadd.f32 %v2028_v17, %v811_v6  ;;  %v1436_v37 = vadd.f32 %v1435_v14, %v1373_v23  ;;  %v1378_v23 = vmul.f32 %v2034_v21, %v2034_v21 }
 0x173   :  { %v685_v56 = vpop.f32.mrf.mxu0  ;;  %v813_v35 = vpop.f32.mrf.mxu1  ;;  %v1380_v14 = vmul.f32 %v2062_v33, %v2062_v33 }
 0x174   :  { %854 = vst [vmem:[%s2625_s3 + $0xe0] sm:$0xff] %v684_v15  ;;  %886 = vst [vmem:[%s2625_s3 + $0x1e0] sm:$0xff] %v2478_v19  ;;  %v1374_v62 = vmul.f32 %v684_v15, %v684_v15  ;;  %v1304_v48 = vadd.f32 %v1303_v53, %v684_v15  ;;  %v1381_v53 = vmul.f32 %v2076_v39, %v2076_v39 }
 0x175   :  { %v686_v24 = vpop.f32.mrf.mxu0  ;;  %v814_v29 = vpop.f32.mrf.mxu1 }
 0x176   :  { %v687_v40 = vadd.f32 %v2028_v17, %v686_v24  ;;  %v2489_v41 = vadd.f32 %v2028_v17, %v814_v29  ;;  %v1437_v16 = vadd.f32 %v1436_v37, %v1374_v62  ;;  %v1379_v29 = vmul.f32 %v2048_v27, %v2048_v27 }
 0x177   :  { %v688_v32 = vpop.f32.mrf.mxu0  ;;  %v816_v4 = vpop.f32.mrf.mxu1 }
 0x178   :  { %855 = vst [vmem:[%s2625_s3 + $0xe8] sm:$0xff] %v687_v40  ;;  %887 = vst [vmem:[%s2625_s3 + $0x1e8] sm:$0xff] %v2489_v41  ;;  %v1375_v49 = vmul.f32 %v687_v40, %v687_v40  ;;  %v1305_v8 = vadd.f32 %v1304_v48, %v687_v40 }
 0x179   :  { %v691_v42 = vpop.f32.mrf.mxu0  ;;  %v819_v47 = vpop.f32.mrf.mxu1 }
 0x17a   :  { %v692_v10 = vadd.f32 %v2028_v17, %v691_v42  ;;  %v2500_v1 = vadd.f32 %v2028_v17, %v819_v47  ;;  %v1438_v6 = vadd.f32 %v1437_v16, %v1375_v49 }
 0x17b   :  { %v693_v59 = vpop.f32.mrf.mxu0  ;;  %v821_v44 = vpop.f32.mrf.mxu1 }
 0x17c   :  { %856 = vst [vmem:[%s2625_s3 + $0xf0] sm:$0xff] %v692_v10  ;;  %v1376_v25 = vmul.f32 %v692_v10, %v692_v10  ;;  %888 = vst [vmem:[%s2625_s3 + $0x1f0] sm:$0xff] %v2500_v1  ;;  %v1306_v7 = vadd.f32 %v1305_v8, %v692_v10 }
 0x17d   :  { %v694_v2 = vpop.f32.mrf.mxu0  ;;  %v822_v3 = vpop.f32.mrf.mxu1 }
 0x17e   :  { %v695_v15 = vadd.f32 %v2028_v17, %v694_v2  ;;  %v2511_v43 = vadd.f32 %v2028_v17, %v822_v3  ;;  %v1439_v35 = vadd.f32 %v1438_v6, %v1376_v25 }
 0x17f   :  { %v696_v22 = vpop.f32.mrf.mxu0  ;;  %v824_v56 = vpop.f32.mrf.mxu1 }
 0x180   :  { %857 = vst [vmem:[%s2625_s3 + $0xf8] sm:$0xff] %v695_v15  ;;  %v1307_v38 = vadd.f32 %v1306_v7, %v695_v15  ;;  %v1377_v58 = vmul.f32 %v695_v15, %v695_v15  ;;  %889 = vst [vmem:[%s2625_s3 + $0x1f8] sm:$0xff] %v2511_v43 }
 0x182   :  { %v1308_v17 = vadd.f32 %v1307_v38, %v2034_v21  ;;  %v1440_v24 = vadd.f32 %v1439_v35, %v1377_v58  ;;  %v1382_v21 = vmul.f32 %v2090_v45, %v2090_v45 }
 0x184   :  { %v1309_v30 = vadd.f32 %v1308_v17, %v2048_v27  ;;  %v1441_v40 = vadd.f32 %v1440_v24, %v1378_v23  ;;  %v1383_v27 = vmul.f32 %v2104_v51, %v2104_v51 }
 0x186   :  { %v1310_v32 = vadd.f32 %v1309_v30, %v2062_v33  ;;  %v1442_v4 = vadd.f32 %v1441_v40, %v1379_v29  ;;  %v1384_v33 = vmul.f32 %v2118_v57, %v2118_v57 }
 0x188   :  { %v1311_v62 = vadd.f32 %v1310_v32, %v2076_v39  ;;  %v1443_v37 = vadd.f32 %v1442_v4, %v1380_v14  ;;  %v1385_v39 = vmul.f32 %v2132_v63, %v2132_v63  ;;  %v1395_v14 = vmul.f32 %v2283_v26, %v2283_v26 }
 0x18a   :  { %v1312_v42 = vadd.f32 %v1311_v62, %v2090_v45  ;;  %v1444_v47 = vadd.f32 %v1443_v37, %v1381_v53  ;;  %v1386_v45 = vmul.f32 %v2146_v5, %v2146_v5  ;;  %v1396_v53 = vmul.f32 %v2303_v52, %v2303_v52 }
 0x18b   :  { %v1397_v37 = vmul.f32 %v2323_v12, %v2323_v12 }
 0x18c   :  { %v1313_v48 = vadd.f32 %v1312_v42, %v2104_v51  ;;  %v1445_v49 = vadd.f32 %v1444_v47, %v1382_v21  ;;  %v1387_v51 = vmul.f32 %v2160_v11, %v2160_v11  ;;  %v1398_v42 = vmul.f32 %v2343_v31, %v2343_v31 }
 0x18e   :  { %v1314_v10 = vadd.f32 %v1313_v48, %v2118_v57  ;;  %v1446_v59 = vadd.f32 %v1445_v49, %v1383_v27  ;;  %v1388_v57 = vmul.f32 %v2174_v18, %v2174_v18  ;;  %v1399_v27 = vmul.f32 %v2363_v55, %v2363_v55 }
 0x18f   :  { %v1400_v49 = vmul.f32 %v2383_v13, %v2383_v13 }
 0x190   :  { %v1315_v44 = vadd.f32 %v1314_v10, %v2132_v63  ;;  %v1447_v16 = vadd.f32 %v1446_v59, %v1384_v33  ;;  %v1389_v63 = vmul.f32 %v2188_v28, %v2188_v28  ;;  %v1401_v10 = vmul.f32 %v2401_v34, %v2401_v34 }
 0x192   :  { %v1448_v8 = vadd.f32 %v1447_v16, %v1385_v39  ;;  %v1316_v25 = vadd.f32 %v1315_v44, %v2146_v5  ;;  %v1390_v5 = vmul.f32 %v2202_v36, %v2202_v36  ;;  %v1402_v39 = vmul.f32 %v2418_v61, %v2418_v61 }
 0x193   :  { %v1403_v16 = vmul.f32 %v2435_v20, %v2435_v20 }
 0x194   :  { %v1317_v2 = vadd.f32 %v1316_v25, %v2160_v11  ;;  %v1449_v3 = vadd.f32 %v1448_v8, %v1386_v45  ;;  %v1391_v11 = vmul.f32 %v2216_v46, %v2216_v46  ;;  %v1404_v8 = vmul.f32 %v2452_v50, %v2452_v50 }
 0x196   :  { %v1318_v6 = vadd.f32 %v1317_v2, %v2174_v18  ;;  %v1450_v7 = vadd.f32 %v1449_v3, %v1387_v51  ;;  %v1392_v18 = vmul.f32 %v2230_v54, %v2230_v54  ;;  %v1405_v51 = vmul.f32 %v2467_v60, %v2467_v60 }
 0x197   :  { %v1406_v3 = vmul.f32 %v2478_v19, %v2478_v19 }
 0x198   :  { %v1319_v15 = vadd.f32 %v1318_v6, %v2188_v28  ;;  %v1451_v22 = vadd.f32 %v1450_v7, %v1388_v57  ;;  %v1393_v28 = vmul.f32 %v2244_v0, %v2244_v0  ;;  %v1407_v6 = vmul.f32 %v2489_v41, %v2489_v41 }
 0x19a   :  { %v1320_v56 = vadd.f32 %v1319_v15, %v2202_v36  ;;  %v1452_v35 = vadd.f32 %v1451_v22, %v1389_v63  ;;  %v1394_v36 = vmul.f32 %v2260_v9, %v2260_v9  ;;  %v1408_v63 = vmul.f32 %v2500_v1, %v2500_v1 }
 0x19b   :  { %v1409_v22 = vmul.f32 %v2511_v43, %v2511_v43 }
 0x19c   :  { %v1321_v38 = vadd.f32 %v1320_v56, %v2216_v46  ;;  %v1453_v58 = vadd.f32 %v1452_v35, %v1390_v5  ;;  %v891_v56 = vlaneseq }
 0x19e   :  { %v1322_v23 = vadd.f32 %v1321_v38, %v2230_v54  ;;  %v1454_v17 = vadd.f32 %v1453_v58, %v1391_v11 }
 0x1a0   :  { %v1323_v24 = vadd.f32 %v1322_v23, %v2244_v0  ;;  %v1455_v29 = vadd.f32 %v1454_v17, %v1392_v18 }
 0x1a2   :  { %v1324_v30 = vadd.f32 %v1323_v24, %v2260_v9  ;;  %v1456_v40 = vadd.f32 %v1455_v29, %v1393_v28 }
 0x1a4   :  { %v1325_v46 = vadd.f32 %v1324_v30, %v2283_v26  ;;  %v1457_v32 = vadd.f32 %v1456_v40, %v1394_v36 }
 0x1a6   :  { %v1458_v54 = vadd.f32 %v1457_v32, %v1395_v14  ;;  %v1326_v4 = vadd.f32 %v1325_v46, %v2303_v52 }
 0x1a8   :  { %v1459_v0 = vadd.f32 %v1458_v54, %v1396_v53  ;;  %v1327_v62 = vadd.f32 %v1326_v4, %v2323_v12 }
 0x1aa   :  { %v1460_v9 = vadd.f32 %v1459_v0, %v1397_v37  ;;  %v1328_v21 = vadd.f32 %v1327_v62, %v2343_v31 }
 0x1ac   :  { %v1461_v26 = vadd.f32 %v1460_v9, %v1398_v42  ;;  %v1329_v47 = vadd.f32 %v1328_v21, %v2363_v55 }
 0x1ae   :  { %v1462_v48 = vadd.f32 %v1461_v26, %v1399_v27  ;;  %v1330_v52 = vadd.f32 %v1329_v47, %v2383_v13 }
 0x1b0   :  { %v1463_v33 = vadd.f32 %v1462_v48, %v1400_v49  ;;  %v1331_v12 = vadd.f32 %v1330_v52, %v2401_v34 }
 0x1b2   :  { %v1464_v59 = vadd.f32 %v1463_v33, %v1401_v10  ;;  %v1332_v31 = vadd.f32 %v1331_v12, %v2418_v61 }
 0x1b4   :  { %v1465_v44 = vadd.f32 %v1464_v59, %v1402_v39  ;;  %v1333_v55 = vadd.f32 %v1332_v31, %v2435_v20 }
 0x1b6   :  { %v1466_v45 = vadd.f32 %v1465_v44, %v1403_v16  ;;  %v1334_v13 = vadd.f32 %v1333_v55, %v2452_v50 }
 0x1b8   :  { %v1467_v25 = vadd.f32 %v1466_v45, %v1404_v8  ;;  %v1335_v34 = vadd.f32 %v1334_v13, %v2467_v60 }
 0x1ba   :  { %v1468_v2 = vadd.f32 %v1467_v25, %v1405_v51  ;;  %v1336_v61 = vadd.f32 %v1335_v34, %v2478_v19 }
 0x1bc   :  { %v1469_v57 = vadd.f32 %v1468_v2, %v1406_v3  ;;  %v1337_v20 = vadd.f32 %v1336_v61, %v2489_v41  ;;  %v892_v41 = vshrl.u32 %v891_v56, 7 }
 0x1be   :  { %v1470_v7 = vadd.f32 %v1469_v57, %v1407_v6  ;;  %v1338_v50 = vadd.f32 %v1337_v20, %v2500_v1  ;;  %vm1479_vm0 = vcmp.eq.s32.totalorder %v892_v41, 0 }
 0x1c0   :  { %v1471_v15 = vadd.f32 %v1470_v7, %v1408_v63  ;;  %v1339_v60 = vadd.f32 %v1338_v50, %v2511_v43 }
 0x1c2   :  { %v1340_v5 = vrot.slane %v1339_v60, 4  ;;  %v1472_v19 = vadd.f32 %v1471_v15, %v1409_v22 }
 0x1c4   :  { %v1341_v35 = vadd.f32 %v1340_v5, %v1339_v60  ;;  %v1473_v11 = vrot.slane %v1472_v19, 4 }
 0x1c6   :  { %v1342_v38 = vrot.slane %v1341_v35, 2  ;;  %v1474_v58 = vadd.f32 %v1473_v11, %v1472_v19 }
 0x1c8   :  { %v1343_v18 = vadd.f32 %v1342_v38, %v1341_v35  ;;  %v1475_v23 = vrot.slane %v1474_v58, 2 }
 0x1ca   :  { %v1344_v17 = vrot.slane %v1343_v18, 1  ;;  %v1476_v28 = vadd.f32 %v1475_v23, %v1474_v58 }
 0x1cc   :  { %v1345_v1 = vadd.f32 %v1344_v17, %v1343_v18  ;;  %v1477_v24 = vrot.slane %v1476_v28, 1 }
 0x1ce   :  { %v1478_v29 = vadd.f32 %v1477_v24, %v1476_v28  ;;  %v1480_v36 = vsel %vm1479_vm0, %v1345_v1, 0.0 }
 0x1cf   :  { %1481 = vst [vmem:[%s2626_s4] sm:$0xff] %v1480_v36 }
 0x1d0   :  { %v1482_v43 = vsel %vm1479_vm0, %v1478_v29, 0.0 }
 0x1d1   :  { %1483 = vst [vmem:[%s2627_s5] sm:$0xff] %v1482_v43 }

</bundles_post_ra>
